<compile_context>
chip_gen: v5e
topology: v5e:2x2
jax: 0.10.0
libtpu: 0.0.40
codegen_flags: <defaults>
</compile_context>

<pallas_src>
import functools
import math

import jax
import jax.numpy as jnp
from jax.experimental import pallas as pl
from jax.experimental.pallas import tpu as pltpu


# ----------------------------------------------------------------------------
# Single fused kernel for the whole forward pass.
#   Activations are 2-D, time-major-flattened: row r = t * B + b.
#   The two LSTM directions are carried as one "stacked" state of shape
#   (2B, H): rows [0:B] = fwd chain (time t), rows [B:2B] = bwd chain
#   (time S-1-t).
# ----------------------------------------------------------------------------
def _fused_forward_kernel(x_ref, slab_ref, logits_ref, act_f_ref, act_b_ref, *,
                          layout, num_layers, hidden_dim, seq_len, batch, scale):
    H = hidden_dim
    S = seq_len
    B = batch
    f32 = jnp.float32
    bf16 = jnp.bfloat16

    def sec(name):
        r0, nr, nc = layout[name]
        return slab_ref[r0:r0 + nr, 0:nc]

    # ---- input embedding: tanh(Linear); dropout is identity at inference ----
    cur = jnp.tanh(
        jnp.dot(x_ref[...], sec("w_e"), preferred_element_type=f32) + sec("b_e")
    )                                                      # (S*B, H//2)

    # Direction mask for the stacked layout (hoisted out of all loops).
    dir_mask = jax.lax.broadcasted_iota(jnp.int32, (2 * B, 4 * H), 0) < B

    # ---- stacked bidirectional LSTM (PyTorch gate order i, f, g, o) ----
    for layer in range(num_layers):
        wih = sec(f"wih{layer}").astype(bf16)              # (F, 8H)  [fwd | bwd]
        whh = sec(f"whh{layer}").astype(bf16)              # (H, 8H)  [fwd | bwd]
        bias = sec(f"b{layer}")                            # (1, 8H)  b_ih + b_hh

        # Hoisted input projections for BOTH directions in one bf16 matmul.
        xp = jnp.dot(cur.astype(bf16), wih, preferred_element_type=f32) + bias
        xp_f = xp[:, :4 * H]                               # (S*B, 4H), vreg-aligned
        xp_b = xp[:, 4 * H:]                               # (S*B, 4H), vreg-aligned

        h = jnp.zeros((2 * B, H), f32)                     # [h_f ; h_b]
        c = jnp.zeros((2 * B, H), f32)

        # Fully unrolled time loop; per step ONE (2B,H)x(H,8H) bf16 MXU dot
        # covers both directions and one sigmoid / tanh pass covers both
        # directions' gates.
        # TODO(synk): for long sequences switch to lax.fori_loop(unroll=4..8)
        # carrying (h, c), with activations written to the split scratches.
        for t in range(S):
            tb = S - 1 - t
            res = jnp.dot(h.astype(bf16), whh,
                          preferred_element_type=f32)      # (2B, 8H)
            xps = jnp.concatenate(
                [xp_f[t * B:(t + 1) * B, :], xp_b[tb * B:(tb + 1) * B, :]],
                axis=0)                                    # (2B, 4H)
            # fwd rows take the W_hh_f half, bwd rows take the W_hh_b half.
            gates = jnp.where(dir_mask, res[:, :4 * H], res[:, 4 * H:]) + xps
            sg = jax.nn.sigmoid(gates)                     # one EUP pass (4,128)
            tg = jnp.tanh(gates)                           # one EUP pass (4,128)
            i_g = sg[:, 0:H]
            f_g = sg[:, H:2 * H]
            g_g = tg[:, 2 * H:3 * H]
            o_g = sg[:, 3 * H:4 * H]
            c = f_g * c + i_g * g_g
            h = o_g * jnp.tanh(c)
            act_f_ref[t * B:(t + 1) * B, :] = h[0:B, :]
            act_b_ref[tb * B:(tb + 1) * B, :] = h[B:2 * B, :]

        cur = jnp.concatenate([act_f_ref[...], act_b_ref[...]], axis=1)  # (S*B, 2H)

    out2d = cur                                            # final LSTM output

    # ---- additive attention scores; w_a1 / w_a2 lane-padded -> lane-dense ----
    h1 = jnp.maximum(
        jnp.dot(out2d, sec("w_a1"), preferred_element_type=f32) + sec("b_a1"),
        0.0)                                               # (S*B, 128)
    # second attention linear has one output unit -> mul + lane reduce.
    # NOTE: matches PyTorch exactly — scale is applied AFTER the b_a2 bias.
    e = (jnp.sum(h1 * sec("w_a2"), axis=-1, keepdims=True) + sec("b_a2")) * scale

    # ---- online-softmax attention pooling + plain sum pooling over time ----
    m = e[0:B, :]
    l = jnp.ones((B, 1), f32)
    acc = out2d[0:B, :]
    p_sum = out2d[0:B, :]
    for t in range(1, S):
        e_t = e[t * B:(t + 1) * B, :]
        o_t = out2d[t * B:(t + 1) * B, :]
        m_new = jnp.maximum(m, e_t)
        alpha = jnp.exp(m - m_new)
        p = jnp.exp(e_t - m_new)
        l = alpha * l + p
        acc = alpha * acc + p * o_t
        p_sum = p_sum + o_t
        m = m_new
    w_sum = acc / l                                        # softmax-weighted sum

    # ---- label linear; concat avoided by splitting w_l into its two halves ----
    logits_ref[...] = (
        jnp.dot(w_sum, sec("w_l_top"), preferred_element_type=f32)
        + jnp.dot(p_sum, sec("w_l_bot"), preferred_element_type=f32)
        + sec("b_l")
    )


# ----------------------------------------------------------------------------
# Host wrapper: one grid-less pallas_call for the whole model.
# ----------------------------------------------------------------------------
def attention_model_forward(x, slab, *, layout, hidden_dim, recurrent_layers,
                            output_dim):
    B, S, din = x.shape
    H = hidden_dim
    # Single tiny relayout of the *raw input* to time-major rows (r = t*B + b).
    x_tm = jnp.transpose(x, (1, 0, 2)).reshape(S * B, din)
    pad_out = layout["b_l"][2]                             # lane-dense output width

    kernel = functools.partial(
        _fused_forward_kernel,
        layout=layout, num_layers=recurrent_layers, hidden_dim=H,
        seq_len=S, batch=B, scale=1.0 / math.sqrt(H))

    # Grid-less call: both inputs (raw x + the packed weight slab) and the
    # padded output live whole in VMEM -> 2 input DMAs + 1 lane-dense store.
    # TODO(synk): on v7x the fwd/bwd chains could be split across the two
    # TensorCores via pl.core_map; not worth it at these toy sizes.
    logits_pad = pl.pallas_call(
        kernel,
        out_shape=jax.ShapeDtypeStruct((B, pad_out), jnp.float32),
        scratch_shapes=[pltpu.VMEM((S * B, H), jnp.float32),   # fwd activations
                        pltpu.VMEM((S * B, H), jnp.float32)],  # bwd activations
    )(x_tm, slab)
    return logits_pad[:, :output_dim]


# ----------------------------------------------------------------------------
# Deterministic parameter init (PyTorch-style uniform bounds). Weights stored
# pre-transposed as (in_features, out_features).
# ----------------------------------------------------------------------------
def init_params(key, input_dim, hidden_dim, output_dim, recurrent_layers):
    H = hidden_dim

    def uniform(k, shape, fan_in):
        bound = 1.0 / math.sqrt(fan_in)
        return jax.random.uniform(k, shape, jnp.float32, -bound, bound)

    keys = iter(jax.random.split(key, 8 + 4 * recurrent_layers * 2))
    params = {}

    # input_embeded: Linear(input_dim, H//2)
    params["w_e"] = uniform(next(keys), (input_dim, H // 2), input_dim)
    params["b_e"] = uniform(next(keys), (1, H // 2), input_dim)

    # LSTM: per layer, per direction; biases combined (b_ih + b_hh).
    lstm = []
    for layer in range(recurrent_layers):
        in_size = H // 2 if layer == 0 else 2 * H
        layer_params = {}
        for direction in ("fwd", "bwd"):
            w_ih = uniform(next(keys), (in_size, 4 * H), H)
            w_hh = uniform(next(keys), (H, 4 * H), H)
            b_ih = uniform(next(keys), (4 * H,), H)
            b_hh = uniform(next(keys), (4 * H,), H)
            # The reference __init__ fills bias[H:2H] = 1.0 for EVERY bias
            # parameter (both b_ih and b_hh) -> combined forget-gate bias 2.0.
            b_ih = b_ih.at[H:2 * H].set(1.0)
            b_hh = b_hh.at[H:2 * H].set(1.0)
            b = (b_ih + b_hh).reshape(1, 4 * H)
            layer_params[direction] = (w_ih, w_hh, b)
        lstm.append(layer_params)
    params["lstm"] = lstm

    # self_attention: Linear(2H, 2H) -> ReLU -> Linear(2H, 1)
    params["w_a1"] = uniform(next(keys), (2 * H, 2 * H), 2 * H)
    params["b_a1"] = uniform(next(keys), (1, 2 * H), 2 * H)
    params["w_a2"] = uniform(next(keys), (1, 2 * H), 2 * H)   # row of Linear(2H, 1)
    params["b_a2"] = uniform(next(keys), (1, 1), 2 * H)

    # label: Linear(4H, output_dim)
    params["w_l"] = uniform(next(keys), (4 * H, output_dim), 4 * H)
    params["b_l"] = uniform(next(keys), (1, output_dim), 4 * H)
    # TODO(synk): output_linear (Linear(2H, H)) exists in __init__ but is
    # unused in forward(), so it is not materialized here.
    return params


# ----------------------------------------------------------------------------
# Pack every weight into ONE lane-dense f32 slab so the kernel prologue issues
# a single weight DMA.  Section row offsets are 8-aligned (sublane tiles),
# attention / label sections are lane-padded to 128.
# ----------------------------------------------------------------------------
def pack_params(params, *, hidden_dim, recurrent_layers, lane_pad=128):
    H = hidden_dim
    output_dim = params["w_l"].shape[1]
    pad_out = max(lane_pad, ((output_dim + lane_pad - 1) // lane_pad) * lane_pad)
    attn_cols = max(lane_pad, ((2 * H + lane_pad - 1) // lane_pad) * lane_pad)
    width = max(8 * H, pad_out, attn_cols)

    sections = []
    layout = {}
    row = 0

    def add(name, arr, ncols=None):
        nonlocal row
        r, c = arr.shape
        nc = c if ncols is None else ncols
        rp = ((r + 7) // 8) * 8
        block = jnp.zeros((rp, width), jnp.float32).at[:r, :c].set(
            arr.astype(jnp.float32))
        sections.append(block)
        layout[name] = (row, r, nc)
        row += rp

    add("w_e", params["w_e"])
    add("b_e", params["b_e"])
    for layer in range(recurrent_layers):
        wih_f, whh_f, b_f = params["lstm"][layer]["fwd"]
        wih_b, whh_b, b_b = params["lstm"][layer]["bwd"]
        add(f"wih{layer}", jnp.concatenate([wih_f, wih_b], axis=1))   # (F, 8H)
        add(f"whh{layer}", jnp.concatenate([whh_f, whh_b], axis=1))   # (H, 8H)
        add(f"b{layer}", jnp.concatenate([b_f, b_b], axis=1))         # (1, 8H)
    add("w_a1", params["w_a1"], ncols=attn_cols)   # zero-padded lanes -> dense h1
    add("b_a1", params["b_a1"], ncols=attn_cols)
    add("w_a2", params["w_a2"], ncols=attn_cols)
    add("b_a2", params["b_a2"])
    add("w_l_top", params["w_l"][:2 * H], ncols=pad_out)
    add("w_l_bot", params["w_l"][2 * H:], ncols=pad_out)
    add("b_l", params["b_l"], ncols=pad_out)

    slab = jnp.concatenate(sections, axis=0)
    return slab, layout


# ----------------------------------------------------------------------------
# Pure-JAX reference (mirrors the PyTorch forward) for a correctness check.
# ----------------------------------------------------------------------------
def _reference_forward(x, params, hidden_dim, recurrent_layers, output_dim):
    B, S, din = x.shape
    H = hidden_dim
    emb = jnp.tanh(x.reshape(B * S, din) @ params["w_e"] + params["b_e"])
    layer_in = jnp.transpose(emb.reshape(B, S, H // 2), (1, 0, 2))   # (S, B, F)
    for layer in range(recurrent_layers):
        outs = []
        for direction, rev in (("fwd", False), ("bwd", True)):
            w_ih, w_hh, b = params["lstm"][layer][direction]
            seq = layer_in[::-1] if rev else layer_in
            h = jnp.zeros((B, H), jnp.float32)
            c = jnp.zeros((B, H), jnp.float32)
            hs = []
            for t in range(S):
                gates = seq[t] @ w_ih + h @ w_hh + b
                i = jax.nn.sigmoid(gates[:, :H])
                f = jax.nn.sigmoid(gates[:, H:2 * H])
                g = jnp.tanh(gates[:, 2 * H:3 * H])
                o = jax.nn.sigmoid(gates[:, 3 * H:])
                c = f * c + i * g
                h = o * jnp.tanh(c)
                hs.append(h)
            out = jnp.stack(hs, axis=0)
            if rev:
                out = out[::-1]
            outs.append(out)
        layer_in = jnp.concatenate(outs, axis=-1)                    # (S, B, 2H)
    output = jnp.transpose(layer_in, (1, 0, 2))                      # (B, S, 2H)
    h1 = jax.nn.relu(output.reshape(B * S, 2 * H) @ params["w_a1"] + params["b_a1"])
    e = (h1 @ params["w_a2"].T + params["b_a2"]).reshape(B, S)
    e = e * (1.0 / math.sqrt(H))
    attns = jax.nn.softmax(e, axis=1)[:, :, None]
    w_sum = jnp.sum(output * attns, axis=1)
    p_sum = jnp.sum(output, axis=1)
    return jnp.concatenate([w_sum, p_sum], axis=1) @ params["w_l"] + params["b_l"]


if __name__ == "__main__":
    batch = 2
    seq = 8
    input_dim = 16
    hidden_dim = 32
    output_dim = 8
    recurrent_layers = 2
    # dropout_p = 0.5 -> identity at inference

    key = jax.random.PRNGKey(0)
    x = jax.random.normal(key, (batch, seq, input_dim), dtype=jnp.float32)
    params = init_params(jax.random.PRNGKey(42), input_dim, hidden_dim,
                         output_dim, recurrent_layers)
    slab, layout = pack_params(params, hidden_dim=hidden_dim,
                               recurrent_layers=recurrent_layers)

    fwd = jax.jit(functools.partial(
        attention_model_forward,
        layout=layout, hidden_dim=hidden_dim,
        recurrent_layers=recurrent_layers, output_dim=output_dim))
    logits = jax.block_until_ready(fwd(x, slab))

    assert logits.shape == (batch, output_dim)
    assert bool(jnp.all(jnp.isfinite(logits)))

    ref = _reference_forward(x, params, hidden_dim, recurrent_layers, output_dim)
    # bf16 recurrent matmuls (f32 accumulation) vs. the f32 reference: allow a
    # little extra headroom over the previous all-f32 tolerance.
    assert bool(jnp.allclose(logits, ref, atol=2e-2, rtol=2e-2)), (logits, ref)

    print("KERNEL_OK")
</pallas_src>

<mosaic_0001>
module attributes {stable_mosaic.version = 11 : i64} {
  func.func @_fused_forward_kernel(%arg0: memref<16x16xf32, #tpu.memory_space<vmem>>, %arg1: memref<408x256xf32, #tpu.memory_space<vmem>>, %arg2: memref<2x128xf32, #tpu.memory_space<vmem>>, %arg3: memref<16x32xf32, #tpu.memory_space<vmem>>, %arg4: memref<16x32xf32, #tpu.memory_space<vmem>>) attributes {dimension_semantics = [], scalar_prefetch = 0 : i64, scratch_operands = 2 : i64, tpu.core_type = #tpu.core_type<tc>} {
    %c0 = arith.constant 0 : index
    %c0_0 = arith.constant 0 : index
    %0 = vector.load %arg0[%c0, %c0_0] : memref<16x16xf32, #tpu.memory_space<vmem>>, vector<16x16xf32>
    %c0_1 = arith.constant 0 : index
    %c0_2 = arith.constant 0 : index
    %1 = vector.load %arg1[%c0_1, %c0_2] : memref<408x256xf32, #tpu.memory_space<vmem>>, vector<16x16xf32>
    %cst = arith.constant dense<0.000000e+00> : vector<16x16xf32>
    %2 = tpu.matmul %0, %1, %cst {dimension_numbers = #tpu.dot_dimension_numbers<[1], [0], [0], [1], [0, 0, 1, 1], [], []>} : vector<16x16xf32>, vector<16x16xf32>, vector<16x16xf32> -> vector<16x16xf32>
    %c16 = arith.constant 16 : index
    %c0_3 = arith.constant 0 : index
    %3 = vector.load %arg1[%c16, %c0_3] : memref<408x256xf32, #tpu.memory_space<vmem>>, vector<1x16xf32>
    %4 = vector.broadcast %3 : vector<1x16xf32> to vector<16x16xf32>
    %5 = arith.addf %2, %4 : vector<16x16xf32>
    %6 = math.tanh %5 : vector<16x16xf32>
    %7 = tpu.iota {dimensions = array<i32: 0>} : vector<4x128xi32>
    %c2_i32 = arith.constant 2 : i32
    %8 = vector.broadcast %c2_i32 : i32 to vector<4x128xi32>
    %9 = arith.cmpi slt, %7, %8 : vector<4x128xi32>
    %c24 = arith.constant 24 : index
    %c0_4 = arith.constant 0 : index
    %10 = vector.load %arg1[%c24, %c0_4] : memref<408x256xf32, #tpu.memory_space<vmem>>, vector<16x256xf32>
    %11 = arith.truncf %10 : vector<16x256xf32> to vector<16x256xbf16>
    %c40 = arith.constant 40 : index
    %c0_5 = arith.constant 0 : index
    %12 = vector.load %arg1[%c40, %c0_5] : memref<408x256xf32, #tpu.memory_space<vmem>>, vector<32x256xf32>
    %13 = arith.truncf %12 : vector<32x256xf32> to vector<32x256xbf16>
    %c72 = arith.constant 72 : index
    %c0_6 = arith.constant 0 : index
    %14 = vector.load %arg1[%c72, %c0_6] : memref<408x256xf32, #tpu.memory_space<vmem>>, vector<1x256xf32>
    %15 = arith.truncf %6 : vector<16x16xf32> to vector<16x16xbf16>
    %cst_7 = arith.constant dense<0.000000e+00> : vector<16x256xf32>
    %16 = tpu.matmul %15, %11, %cst_7 {dimension_numbers = #tpu.dot_dimension_numbers<[1], [0], [0], [1], [0, 0, 1, 1], [], []>} : vector<16x16xbf16>, vector<16x256xbf16>, vector<16x256xf32> -> vector<16x256xf32>
    %17 = vector.broadcast %14 : vector<1x256xf32> to vector<16x256xf32>
    %18 = arith.addf %16, %17 : vector<16x256xf32>
    %19 = vector.extract_strided_slice %18 {offsets = [0, 0], sizes = [16, 128], strides = [1, 1]} : vector<16x256xf32> to vector<16x128xf32>
    %20 = vector.extract_strided_slice %18 {offsets = [0, 128], sizes = [16, 128], strides = [1, 1]} : vector<16x256xf32> to vector<16x128xf32>
    %cst_8 = arith.constant 0.000000e+00 : f32
    %21 = vector.broadcast %cst_8 : f32 to vector<4x32xf32>
    %cst_9 = arith.constant 0.000000e+00 : f32
    %22 = vector.broadcast %cst_9 : f32 to vector<4x32xf32>
    %23 = arith.truncf %21 : vector<4x32xf32> to vector<4x32xbf16>
    %cst_10 = arith.constant dense<0.000000e+00> : vector<4x256xf32>
    %24 = tpu.matmul %23, %13, %cst_10 {dimension_numbers = #tpu.dot_dimension_numbers<[1], [0], [0], [1], [0, 0, 1, 1], [], []>} : vector<4x32xbf16>, vector<32x256xbf16>, vector<4x256xf32> -> vector<4x256xf32>
    %25 = vector.extract_strided_slice %19 {offsets = [0, 0], sizes = [2, 128], strides = [1, 1]} : vector<16x128xf32> to vector<2x128xf32>
    %26 = vector.extract_strided_slice %20 {offsets = [14, 0], sizes = [2, 128], strides = [1, 1]} : vector<16x128xf32> to vector<2x128xf32>
    %27 = tpu.concatenate %25, %26 in 0 : vector<2x128xf32>, vector<2x128xf32> -> vector<4x128xf32>
    %28 = vector.extract_strided_slice %24 {offsets = [0, 0], sizes = [4, 128], strides = [1, 1]} : vector<4x256xf32> to vector<4x128xf32>
    %29 = vector.extract_strided_slice %24 {offsets = [0, 128], sizes = [4, 128], strides = [1, 1]} : vector<4x256xf32> to vector<4x128xf32>
    %30 = arith.select %9, %28, %29 : vector<4x128xi1>, vector<4x128xf32>
    %31 = arith.addf %30, %27 : vector<4x128xf32>
    %32 = arith.negf %31 : vector<4x128xf32>
    %33 = math.exp %32 : vector<4x128xf32>
    %cst_11 = arith.constant 1.000000e+00 : f32
    %34 = vector.broadcast %cst_11 : f32 to vector<4x128xf32>
    %35 = arith.addf %34, %33 : vector<4x128xf32>
    %36 = arith.divf %34, %35 : vector<4x128xf32>
    %37 = math.tanh %31 : vector<4x128xf32>
    %38 = vector.extract_strided_slice %36 {offsets = [0, 0], sizes = [4, 32], strides = [1, 1]} : vector<4x128xf32> to vector<4x32xf32>
    %39 = vector.extract_strided_slice %36 {offsets = [0, 32], sizes = [4, 32], strides = [1, 1]} : vector<4x128xf32> to vector<4x32xf32>
    %40 = vector.extract_strided_slice %37 {offsets = [0, 64], sizes = [4, 32], strides = [1, 1]} : vector<4x128xf32> to vector<4x32xf32>
    %41 = vector.extract_strided_slice %36 {offsets = [0, 96], sizes = [4, 32], strides = [1, 1]} : vector<4x128xf32> to vector<4x32xf32>
    %42 = arith.mulf %39, %22 : vector<4x32xf32>
    %43 = arith.mulf %38, %40 : vector<4x32xf32>
    %44 = arith.addf %42, %43 : vector<4x32xf32>
    %45 = math.tanh %44 : vector<4x32xf32>
    %46 = arith.mulf %41, %45 : vector<4x32xf32>
    %47 = vector.extract_strided_slice %46 {offsets = [0, 0], sizes = [2, 32], strides = [1, 1]} : vector<4x32xf32> to vector<2x32xf32>
    %c0_12 = arith.constant 0 : index
    %c0_13 = arith.constant 0 : index
    %48 = vector.load %arg3[%c0_12, %c0_13] : memref<16x32xf32, #tpu.memory_space<vmem>>, vector<2x32xf32>
    tpu.vector_store %arg3[%c0_12, %c0_13], %47 {strides = array<i32>} : memref<16x32xf32, #tpu.memory_space<vmem>>, vector<2x32xf32>,
    %49 = vector.extract_strided_slice %46 {offsets = [2, 0], sizes = [2, 32], strides = [1, 1]} : vector<4x32xf32> to vector<2x32xf32>
    %c14 = arith.constant 14 : index
    %c0_14 = arith.constant 0 : index
    %50 = vector.load %arg4[%c14, %c0_14] : memref<16x32xf32, #tpu.memory_space<vmem>>, vector<2x32xf32>
    tpu.vector_store %arg4[%c14, %c0_14], %49 {strides = array<i32>} : memref<16x32xf32, #tpu.memory_space<vmem>>, vector<2x32xf32>,
    %51 = arith.truncf %46 : vector<4x32xf32> to vector<4x32xbf16>
    %cst_15 = arith.constant dense<0.000000e+00> : vector<4x256xf32>
    %52 = tpu.matmul %51, %13, %cst_15 {dimension_numbers = #tpu.dot_dimension_numbers<[1], [0], [0], [1], [0, 0, 1, 1], [], []>} : vector<4x32xbf16>, vector<32x256xbf16>, vector<4x256xf32> -> vector<4x256xf32>
    %53 = vector.extract_strided_slice %19 {offsets = [2, 0], sizes = [2, 128], strides = [1, 1]} : vector<16x128xf32> to vector<2x128xf32>
    %54 = vector.extract_strided_slice %20 {offsets = [12, 0], sizes = [2, 128], strides = [1, 1]} : vector<16x128xf32> to vector<2x128xf32>
    %55 = tpu.concatenate %53, %54 in 0 : vector<2x128xf32>, vector<2x128xf32> -> vector<4x128xf32>
    %56 = vector.extract_strided_slice %52 {offsets = [0, 0], sizes = [4, 128], strides = [1, 1]} : vector<4x256xf32> to vector<4x128xf32>
    %57 = vector.extract_strided_slice %52 {offsets = [0, 128], sizes = [4, 128], strides = [1, 1]} : vector<4x256xf32> to vector<4x128xf32>
    %58 = arith.select %9, %56, %57 : vector<4x128xi1>, vector<4x128xf32>
    %59 = arith.addf %58, %55 : vector<4x128xf32>
    %60 = arith.negf %59 : vector<4x128xf32>
    %61 = math.exp %60 : vector<4x128xf32>
    %cst_16 = arith.constant 1.000000e+00 : f32
    %62 = vector.broadcast %cst_16 : f32 to vector<4x128xf32>
    %63 = arith.addf %62, %61 : vector<4x128xf32>
    %64 = arith.divf %62, %63 : vector<4x128xf32>
    %65 = math.tanh %59 : vector<4x128xf32>
    %66 = vector.extract_strided_slice %64 {offsets = [0, 0], sizes = [4, 32], strides = [1, 1]} : vector<4x128xf32> to vector<4x32xf32>
    %67 = vector.extract_strided_slice %64 {offsets = [0, 32], sizes = [4, 32], strides = [1, 1]} : vector<4x128xf32> to vector<4x32xf32>
    %68 = vector.extract_strided_slice %65 {offsets = [0, 64], sizes = [4, 32], strides = [1, 1]} : vector<4x128xf32> to vector<4x32xf32>
    %69 = vector.extract_strided_slice %64 {offsets = [0, 96], sizes = [4, 32], strides = [1, 1]} : vector<4x128xf32> to vector<4x32xf32>
    %70 = arith.mulf %67, %44 : vector<4x32xf32>
    %71 = arith.mulf %66, %68 : vector<4x32xf32>
    %72 = arith.addf %70, %71 : vector<4x32xf32>
    %73 = math.tanh %72 : vector<4x32xf32>
    %74 = arith.mulf %69, %73 : vector<4x32xf32>
    %75 = vector.extract_strided_slice %74 {offsets = [0, 0], sizes = [2, 32], strides = [1, 1]} : vector<4x32xf32> to vector<2x32xf32>
    %c2 = arith.constant 2 : index
    %c0_17 = arith.constant 0 : index
    %76 = vector.load %arg3[%c2, %c0_17] : memref<16x32xf32, #tpu.memory_space<vmem>>, vector<2x32xf32>
    tpu.vector_store %arg3[%c2, %c0_17], %75 {strides = array<i32>} : memref<16x32xf32, #tpu.memory_space<vmem>>, vector<2x32xf32>,
    %77 = vector.extract_strided_slice %74 {offsets = [2, 0], sizes = [2, 32], strides = [1, 1]} : vector<4x32xf32> to vector<2x32xf32>
    %c12 = arith.constant 12 : index
    %c0_18 = arith.constant 0 : index
    %78 = vector.load %arg4[%c12, %c0_18] : memref<16x32xf32, #tpu.memory_space<vmem>>, vector<2x32xf32>
    tpu.vector_store %arg4[%c12, %c0_18], %77 {strides = array<i32>} : memref<16x32xf32, #tpu.memory_space<vmem>>, vector<2x32xf32>,
    %79 = arith.truncf %74 : vector<4x32xf32> to vector<4x32xbf16>
    %cst_19 = arith.constant dense<0.000000e+00> : vector<4x256xf32>
    %80 = tpu.matmul %79, %13, %cst_19 {dimension_numbers = #tpu.dot_dimension_numbers<[1], [0], [0], [1], [0, 0, 1, 1], [], []>} : vector<4x32xbf16>, vector<32x256xbf16>, vector<4x256xf32> -> vector<4x256xf32>
    %81 = vector.extract_strided_slice %19 {offsets = [4, 0], sizes = [2, 128], strides = [1, 1]} : vector<16x128xf32> to vector<2x128xf32>
    %82 = vector.extract_strided_slice %20 {offsets = [10, 0], sizes = [2, 128], strides = [1, 1]} : vector<16x128xf32> to vector<2x128xf32>
    %83 = tpu.concatenate %81, %82 in 0 : vector<2x128xf32>, vector<2x128xf32> -> vector<4x128xf32>
    %84 = vector.extract_strided_slice %80 {offsets = [0, 0], sizes = [4, 128], strides = [1, 1]} : vector<4x256xf32> to vector<4x128xf32>
    %85 = vector.extract_strided_slice %80 {offsets = [0, 128], sizes = [4, 128], strides = [1, 1]} : vector<4x256xf32> to vector<4x128xf32>
    %86 = arith.select %9, %84, %85 : vector<4x128xi1>, vector<4x128xf32>
    %87 = arith.addf %86, %83 : vector<4x128xf32>
    %88 = arith.negf %87 : vector<4x128xf32>
    %89 = math.exp %88 : vector<4x128xf32>
    %cst_20 = arith.constant 1.000000e+00 : f32
    %90 = vector.broadcast %cst_20 : f32 to vector<4x128xf32>
    %91 = arith.addf %90, %89 : vector<4x128xf32>
    %92 = arith.divf %90, %91 : vector<4x128xf32>
    %93 = math.tanh %87 : vector<4x128xf32>
    %94 = vector.extract_strided_slice %92 {offsets = [0, 0], sizes = [4, 32], strides = [1, 1]} : vector<4x128xf32> to vector<4x32xf32>
    %95 = vector.extract_strided_slice %92 {offsets = [0, 32], sizes = [4, 32], strides = [1, 1]} : vector<4x128xf32> to vector<4x32xf32>
    %96 = vector.extract_strided_slice %93 {offsets = [0, 64], sizes = [4, 32], strides = [1, 1]} : vector<4x128xf32> to vector<4x32xf32>
    %97 = vector.extract_strided_slice %92 {offsets = [0, 96], sizes = [4, 32], strides = [1, 1]} : vector<4x128xf32> to vector<4x32xf32>
    %98 = arith.mulf %95, %72 : vector<4x32xf32>
    %99 = arith.mulf %94, %96 : vector<4x32xf32>
    %100 = arith.addf %98, %99 : vector<4x32xf32>
    %101 = math.tanh %100 : vector<4x32xf32>
    %102 = arith.mulf %97, %101 : vector<4x32xf32>
    %103 = vector.extract_strided_slice %102 {offsets = [0, 0], sizes = [2, 32], strides = [1, 1]} : vector<4x32xf32> to vector<2x32xf32>
    %c4 = arith.constant 4 : index
    %c0_21 = arith.constant 0 : index
    %104 = vector.load %arg3[%c4, %c0_21] : memref<16x32xf32, #tpu.memory_space<vmem>>, vector<2x32xf32>
    tpu.vector_store %arg3[%c4, %c0_21], %103 {strides = array<i32>} : memref<16x32xf32, #tpu.memory_space<vmem>>, vector<2x32xf32>,
    %105 = vector.extract_strided_slice %102 {offsets = [2, 0], sizes = [2, 32], strides = [1, 1]} : vector<4x32xf32> to vector<2x32xf32>
    %c10 = arith.constant 10 : index
    %c0_22 = arith.constant 0 : index
    %106 = vector.load %arg4[%c10, %c0_22] : memref<16x32xf32, #tpu.memory_space<vmem>>, vector<2x32xf32>
    tpu.vector_store %arg4[%c10, %c0_22], %105 {strides = array<i32>} : memref<16x32xf32, #tpu.memory_space<vmem>>, vector<2x32xf32>,
    %107 = arith.truncf %102 : vector<4x32xf32> to vector<4x32xbf16>
    %cst_23 = arith.constant dense<0.000000e+00> : vector<4x256xf32>
    %108 = tpu.matmul %107, %13, %cst_23 {dimension_numbers = #tpu.dot_dimension_numbers<[1], [0], [0], [1], [0, 0, 1, 1], [], []>} : vector<4x32xbf16>, vector<32x256xbf16>, vector<4x256xf32> -> vector<4x256xf32>
    %109 = vector.extract_strided_slice %19 {offsets = [6, 0], sizes = [2, 128], strides = [1, 1]} : vector<16x128xf32> to vector<2x128xf32>
    %110 = vector.extract_strided_slice %20 {offsets = [8, 0], sizes = [2, 128], strides = [1, 1]} : vector<16x128xf32> to vector<2x128xf32>
    %111 = tpu.concatenate %109, %110 in 0 : vector<2x128xf32>, vector<2x128xf32> -> vector<4x128xf32>
    %112 = vector.extract_strided_slice %108 {offsets = [0, 0], sizes = [4, 128], strides = [1, 1]} : vector<4x256xf32> to vector<4x128xf32>
    %113 = vector.extract_strided_slice %108 {offsets = [0, 128], sizes = [4, 128], strides = [1, 1]} : vector<4x256xf32> to vector<4x128xf32>
    %114 = arith.select %9, %112, %113 : vector<4x128xi1>, vector<4x128xf32>
    %115 = arith.addf %114, %111 : vector<4x128xf32>
    %116 = arith.negf %115 : vector<4x128xf32>
    %117 = math.exp %116 : vector<4x128xf32>
    %cst_24 = arith.constant 1.000000e+00 : f32
    %118 = vector.broadcast %cst_24 : f32 to vector<4x128xf32>
    %119 = arith.addf %118, %117 : vector<4x128xf32>
    %120 = arith.divf %118, %119 : vector<4x128xf32>
    %121 = math.tanh %115 : vector<4x128xf32>
    %122 = vector.extract_strided_slice %120 {offsets = [0, 0], sizes = [4, 32], strides = [1, 1]} : vector<4x128xf32> to vector<4x32xf32>
    %123 = vector.extract_strided_slice %120 {offsets = [0, 32], sizes = [4, 32], strides = [1, 1]} : vector<4x128xf32> to vector<4x32xf32>
    %124 = vector.extract_strided_slice %121 {offsets = [0, 64], sizes = [4, 32], strides = [1, 1]} : vector<4x128xf32> to vector<4x32xf32>
    %125 = vector.extract_strided_slice %120 {offsets = [0, 96], sizes = [4, 32], strides = [1, 1]} : vector<4x128xf32> to vector<4x32xf32>
    %126 = arith.mulf %123, %100 : vector<4x32xf32>
    %127 = arith.mulf %122, %124 : vector<4x32xf32>
    %128 = arith.addf %126, %127 : vector<4x32xf32>
    %129 = math.tanh %128 : vector<4x32xf32>
    %130 = arith.mulf %125, %129 : vector<4x32xf32>
    %131 = vector.extract_strided_slice %130 {offsets = [0, 0], sizes = [2, 32], strides = [1, 1]} : vector<4x32xf32> to vector<2x32xf32>
    %c6 = arith.constant 6 : index
    %c0_25 = arith.constant 0 : index
    %132 = vector.load %arg3[%c6, %c0_25] : memref<16x32xf32, #tpu.memory_space<vmem>>, vector<2x32xf32>
    tpu.vector_store %arg3[%c6, %c0_25], %131 {strides = array<i32>} : memref<16x32xf32, #tpu.memory_space<vmem>>, vector<2x32xf32>,
    %133 = vector.extract_strided_slice %130 {offsets = [2, 0], sizes = [2, 32], strides = [1, 1]} : vector<4x32xf32> to vector<2x32xf32>
    %c8 = arith.constant 8 : index
    %c0_26 = arith.constant 0 : index
    %134 = vector.load %arg4[%c8, %c0_26] : memref<16x32xf32, #tpu.memory_space<vmem>>, vector<2x32xf32>
    tpu.vector_store %arg4[%c8, %c0_26], %133 {strides = array<i32>} : memref<16x32xf32, #tpu.memory_space<vmem>>, vector<2x32xf32>,
    %135 = arith.truncf %130 : vector<4x32xf32> to vector<4x32xbf16>
    %cst_27 = arith.constant dense<0.000000e+00> : vector<4x256xf32>
    %136 = tpu.matmul %135, %13, %cst_27 {dimension_numbers = #tpu.dot_dimension_numbers<[1], [0], [0], [1], [0, 0, 1, 1], [], []>} : vector<4x32xbf16>, vector<32x256xbf16>, vector<4x256xf32> -> vector<4x256xf32>
    %137 = vector.extract_strided_slice %19 {offsets = [8, 0], sizes = [2, 128], strides = [1, 1]} : vector<16x128xf32> to vector<2x128xf32>
    %138 = vector.extract_strided_slice %20 {offsets = [6, 0], sizes = [2, 128], strides = [1, 1]} : vector<16x128xf32> to vector<2x128xf32>
    %139 = tpu.concatenate %137, %138 in 0 : vector<2x128xf32>, vector<2x128xf32> -> vector<4x128xf32>
    %140 = vector.extract_strided_slice %136 {offsets = [0, 0], sizes = [4, 128], strides = [1, 1]} : vector<4x256xf32> to vector<4x128xf32>
    %141 = vector.extract_strided_slice %136 {offsets = [0, 128], sizes = [4, 128], strides = [1, 1]} : vector<4x256xf32> to vector<4x128xf32>
    %142 = arith.select %9, %140, %141 : vector<4x128xi1>, vector<4x128xf32>
    %143 = arith.addf %142, %139 : vector<4x128xf32>
    %144 = arith.negf %143 : vector<4x128xf32>
    %145 = math.exp %144 : vector<4x128xf32>
    %cst_28 = arith.constant 1.000000e+00 : f32
    %146 = vector.broadcast %cst_28 : f32 to vector<4x128xf32>
    %147 = arith.addf %146, %145 : vector<4x128xf32>
    %148 = arith.divf %146, %147 : vector<4x128xf32>
    %149 = math.tanh %143 : vector<4x128xf32>
    %150 = vector.extract_strided_slice %148 {offsets = [0, 0], sizes = [4, 32], strides = [1, 1]} : vector<4x128xf32> to vector<4x32xf32>
    %151 = vector.extract_strided_slice %148 {offsets = [0, 32], sizes = [4, 32], strides = [1, 1]} : vector<4x128xf32> to vector<4x32xf32>
    %152 = vector.extract_strided_slice %149 {offsets = [0, 64], sizes = [4, 32], strides = [1, 1]} : vector<4x128xf32> to vector<4x32xf32>
    %153 = vector.extract_strided_slice %148 {offsets = [0, 96], sizes = [4, 32], strides = [1, 1]} : vector<4x128xf32> to vector<4x32xf32>
    %154 = arith.mulf %151, %128 : vector<4x32xf32>
    %155 = arith.mulf %150, %152 : vector<4x32xf32>
    %156 = arith.addf %154, %155 : vector<4x32xf32>
    %157 = math.tanh %156 : vector<4x32xf32>
    %158 = arith.mulf %153, %157 : vector<4x32xf32>
    %159 = vector.extract_strided_slice %158 {offsets = [0, 0], sizes = [2, 32], strides = [1, 1]} : vector<4x32xf32> to vector<2x32xf32>
    %c8_29 = arith.constant 8 : index
    %c0_30 = arith.constant 0 : index
    %160 = vector.load %arg3[%c8_29, %c0_30] : memref<16x32xf32, #tpu.memory_space<vmem>>, vector<2x32xf32>
    tpu.vector_store %arg3[%c8_29, %c0_30], %159 {strides = array<i32>} : memref<16x32xf32, #tpu.memory_space<vmem>>, vector<2x32xf32>,
    %161 = vector.extract_strided_slice %158 {offsets = [2, 0], sizes = [2, 32], strides = [1, 1]} : vector<4x32xf32> to vector<2x32xf32>
    %c6_31 = arith.constant 6 : index
    %c0_32 = arith.constant 0 : index
    %162 = vector.load %arg4[%c6_31, %c0_32] : memref<16x32xf32, #tpu.memory_space<vmem>>, vector<2x32xf32>
    tpu.vector_store %arg4[%c6_31, %c0_32], %161 {strides = array<i32>} : memref<16x32xf32, #tpu.memory_space<vmem>>, vector<2x32xf32>,
    %163 = arith.truncf %158 : vector<4x32xf32> to vector<4x32xbf16>
    %cst_33 = arith.constant dense<0.000000e+00> : vector<4x256xf32>
    %164 = tpu.matmul %163, %13, %cst_33 {dimension_numbers = #tpu.dot_dimension_numbers<[1], [0], [0], [1], [0, 0, 1, 1], [], []>} : vector<4x32xbf16>, vector<32x256xbf16>, vector<4x256xf32> -> vector<4x256xf32>
    %165 = vector.extract_strided_slice %19 {offsets = [10, 0], sizes = [2, 128], strides = [1, 1]} : vector<16x128xf32> to vector<2x128xf32>
    %166 = vector.extract_strided_slice %20 {offsets = [4, 0], sizes = [2, 128], strides = [1, 1]} : vector<16x128xf32> to vector<2x128xf32>
    %167 = tpu.concatenate %165, %166 in 0 : vector<2x128xf32>, vector<2x128xf32> -> vector<4x128xf32>
    %168 = vector.extract_strided_slice %164 {offsets = [0, 0], sizes = [4, 128], strides = [1, 1]} : vector<4x256xf32> to vector<4x128xf32>
    %169 = vector.extract_strided_slice %164 {offsets = [0, 128], sizes = [4, 128], strides = [1, 1]} : vector<4x256xf32> to vector<4x128xf32>
    %170 = arith.select %9, %168, %169 : vector<4x128xi1>, vector<4x128xf32>
    %171 = arith.addf %170, %167 : vector<4x128xf32>
    %172 = arith.negf %171 : vector<4x128xf32>
    %173 = math.exp %172 : vector<4x128xf32>
    %cst_34 = arith.constant 1.000000e+00 : f32
    %174 = vector.broadcast %cst_34 : f32 to vector<4x128xf32>
    %175 = arith.addf %174, %173 : vector<4x128xf32>
    %176 = arith.divf %174, %175 : vector<4x128xf32>
    %177 = math.tanh %171 : vector<4x128xf32>
    %178 = vector.extract_strided_slice %176 {offsets = [0, 0], sizes = [4, 32], strides = [1, 1]} : vector<4x128xf32> to vector<4x32xf32>
    %179 = vector.extract_strided_slice %176 {offsets = [0, 32], sizes = [4, 32], strides = [1, 1]} : vector<4x128xf32> to vector<4x32xf32>
    %180 = vector.extract_strided_slice %177 {offsets = [0, 64], sizes = [4, 32], strides = [1, 1]} : vector<4x128xf32> to vector<4x32xf32>
    %181 = vector.extract_strided_slice %176 {offsets = [0, 96], sizes = [4, 32], strides = [1, 1]} : vector<4x128xf32> to vector<4x32xf32>
    %182 = arith.mulf %179, %156 : vector<4x32xf32>
    %183 = arith.mulf %178, %180 : vector<4x32xf32>
    %184 = arith.addf %182, %183 : vector<4x32xf32>
    %185 = math.tanh %184 : vector<4x32xf32>
    %186 = arith.mulf %181, %185 : vector<4x32xf32>
    %187 = vector.extract_strided_slice %186 {offsets = [0, 0], sizes = [2, 32], strides = [1, 1]} : vector<4x32xf32> to vector<2x32xf32>
    %c10_35 = arith.constant 10 : index
    %c0_36 = arith.constant 0 : index
    %188 = vector.load %arg3[%c10_35, %c0_36] : memref<16x32xf32, #tpu.memory_space<vmem>>, vector<2x32xf32>
    tpu.vector_store %arg3[%c10_35, %c0_36], %187 {strides = array<i32>} : memref<16x32xf32, #tpu.memory_space<vmem>>, vector<2x32xf32>,
    %189 = vector.extract_strided_slice %186 {offsets = [2, 0], sizes = [2, 32], strides = [1, 1]} : vector<4x32xf32> to vector<2x32xf32>
    %c4_37 = arith.constant 4 : index
    %c0_38 = arith.constant 0 : index
    %190 = vector.load %arg4[%c4_37, %c0_38] : memref<16x32xf32, #tpu.memory_space<vmem>>, vector<2x32xf32>
    tpu.vector_store %arg4[%c4_37, %c0_38], %189 {strides = array<i32>} : memref<16x32xf32, #tpu.memory_space<vmem>>, vector<2x32xf32>,
    %191 = arith.truncf %186 : vector<4x32xf32> to vector<4x32xbf16>
    %cst_39 = arith.constant dense<0.000000e+00> : vector<4x256xf32>
    %192 = tpu.matmul %191, %13, %cst_39 {dimension_numbers = #tpu.dot_dimension_numbers<[1], [0], [0], [1], [0, 0, 1, 1], [], []>} : vector<4x32xbf16>, vector<32x256xbf16>, vector<4x256xf32> -> vector<4x256xf32>
    %193 = vector.extract_strided_slice %19 {offsets = [12, 0], sizes = [2, 128], strides = [1, 1]} : vector<16x128xf32> to vector<2x128xf32>
    %194 = vector.extract_strided_slice %20 {offsets = [2, 0], sizes = [2, 128], strides = [1, 1]} : vector<16x128xf32> to vector<2x128xf32>
    %195 = tpu.concatenate %193, %194 in 0 : vector<2x128xf32>, vector<2x128xf32> -> vector<4x128xf32>
    %196 = vector.extract_strided_slice %192 {offsets = [0, 0], sizes = [4, 128], strides = [1, 1]} : vector<4x256xf32> to vector<4x128xf32>
    %197 = vector.extract_strided_slice %192 {offsets = [0, 128], sizes = [4, 128], strides = [1, 1]} : vector<4x256xf32> to vector<4x128xf32>
    %198 = arith.select %9, %196, %197 : vector<4x128xi1>, vector<4x128xf32>
    %199 = arith.addf %198, %195 : vector<4x128xf32>
    %200 = arith.negf %199 : vector<4x128xf32>
    %201 = math.exp %200 : vector<4x128xf32>
    %cst_40 = arith.constant 1.000000e+00 : f32
    %202 = vector.broadcast %cst_40 : f32 to vector<4x128xf32>
    %203 = arith.addf %202, %201 : vector<4x128xf32>
    %204 = arith.divf %202, %203 : vector<4x128xf32>
    %205 = math.tanh %199 : vector<4x128xf32>
    %206 = vector.extract_strided_slice %204 {offsets = [0, 0], sizes = [4, 32], strides = [1, 1]} : vector<4x128xf32> to vector<4x32xf32>
    %207 = vector.extract_strided_slice %204 {offsets = [0, 32], sizes = [4, 32], strides = [1, 1]} : vector<4x128xf32> to vector<4x32xf32>
    %208 = vector.extract_strided_slice %205 {offsets = [0, 64], sizes = [4, 32], strides = [1, 1]} : vector<4x128xf32> to vector<4x32xf32>
    %209 = vector.extract_strided_slice %204 {offsets = [0, 96], sizes = [4, 32], strides = [1, 1]} : vector<4x128xf32> to vector<4x32xf32>
    %210 = arith.mulf %207, %184 : vector<4x32xf32>
    %211 = arith.mulf %206, %208 : vector<4x32xf32>
    %212 = arith.addf %210, %211 : vector<4x32xf32>
    %213 = math.tanh %212 : vector<4x32xf32>
    %214 = arith.mulf %209, %213 : vector<4x32xf32>
    %215 = vector.extract_strided_slice %214 {offsets = [0, 0], sizes = [2, 32], strides = [1, 1]} : vector<4x32xf32> to vector<2x32xf32>
    %c12_41 = arith.constant 12 : index
    %c0_42 = arith.constant 0 : index
    %216 = vector.load %arg3[%c12_41, %c0_42] : memref<16x32xf32, #tpu.memory_space<vmem>>, vector<2x32xf32>
    tpu.vector_store %arg3[%c12_41, %c0_42], %215 {strides = array<i32>} : memref<16x32xf32, #tpu.memory_space<vmem>>, vector<2x32xf32>,
    %217 = vector.extract_strided_slice %214 {offsets = [2, 0], sizes = [2, 32], strides = [1, 1]} : vector<4x32xf32> to vector<2x32xf32>
    %c2_43 = arith.constant 2 : index
    %c0_44 = arith.constant 0 : index
    %218 = vector.load %arg4[%c2_43, %c0_44] : memref<16x32xf32, #tpu.memory_space<vmem>>, vector<2x32xf32>
    tpu.vector_store %arg4[%c2_43, %c0_44], %217 {strides = array<i32>} : memref<16x32xf32, #tpu.memory_space<vmem>>, vector<2x32xf32>,
    %219 = arith.truncf %214 : vector<4x32xf32> to vector<4x32xbf16>
    %cst_45 = arith.constant dense<0.000000e+00> : vector<4x256xf32>
    %220 = tpu.matmul %219, %13, %cst_45 {dimension_numbers = #tpu.dot_dimension_numbers<[1], [0], [0], [1], [0, 0, 1, 1], [], []>} : vector<4x32xbf16>, vector<32x256xbf16>, vector<4x256xf32> -> vector<4x256xf32>
    %221 = vector.extract_strided_slice %19 {offsets = [14, 0], sizes = [2, 128], strides = [1, 1]} : vector<16x128xf32> to vector<2x128xf32>
    %222 = vector.extract_strided_slice %20 {offsets = [0, 0], sizes = [2, 128], strides = [1, 1]} : vector<16x128xf32> to vector<2x128xf32>
    %223 = tpu.concatenate %221, %222 in 0 : vector<2x128xf32>, vector<2x128xf32> -> vector<4x128xf32>
    %224 = vector.extract_strided_slice %220 {offsets = [0, 0], sizes = [4, 128], strides = [1, 1]} : vector<4x256xf32> to vector<4x128xf32>
    %225 = vector.extract_strided_slice %220 {offsets = [0, 128], sizes = [4, 128], strides = [1, 1]} : vector<4x256xf32> to vector<4x128xf32>
    %226 = arith.select %9, %224, %225 : vector<4x128xi1>, vector<4x128xf32>
    %227 = arith.addf %226, %223 : vector<4x128xf32>
    %228 = arith.negf %227 : vector<4x128xf32>
    %229 = math.exp %228 : vector<4x128xf32>
    %cst_46 = arith.constant 1.000000e+00 : f32
    %230 = vector.broadcast %cst_46 : f32 to vector<4x128xf32>
    %231 = arith.addf %230, %229 : vector<4x128xf32>
    %232 = arith.divf %230, %231 : vector<4x128xf32>
    %233 = math.tanh %227 : vector<4x128xf32>
    %234 = vector.extract_strided_slice %232 {offsets = [0, 0], sizes = [4, 32], strides = [1, 1]} : vector<4x128xf32> to vector<4x32xf32>
    %235 = vector.extract_strided_slice %232 {offsets = [0, 32], sizes = [4, 32], strides = [1, 1]} : vector<4x128xf32> to vector<4x32xf32>
    %236 = vector.extract_strided_slice %233 {offsets = [0, 64], sizes = [4, 32], strides = [1, 1]} : vector<4x128xf32> to vector<4x32xf32>
    %237 = vector.extract_strided_slice %232 {offsets = [0, 96], sizes = [4, 32], strides = [1, 1]} : vector<4x128xf32> to vector<4x32xf32>
    %238 = arith.mulf %235, %212 : vector<4x32xf32>
    %239 = arith.mulf %234, %236 : vector<4x32xf32>
    %240 = arith.addf %238, %239 : vector<4x32xf32>
    %241 = math.tanh %240 : vector<4x32xf32>
    %242 = arith.mulf %237, %241 : vector<4x32xf32>
    %243 = vector.extract_strided_slice %242 {offsets = [0, 0], sizes = [2, 32], strides = [1, 1]} : vector<4x32xf32> to vector<2x32xf32>
    %c14_47 = arith.constant 14 : index
    %c0_48 = arith.constant 0 : index
    %244 = vector.load %arg3[%c14_47, %c0_48] : memref<16x32xf32, #tpu.memory_space<vmem>>, vector<2x32xf32>
    tpu.vector_store %arg3[%c14_47, %c0_48], %243 {strides = array<i32>} : memref<16x32xf32, #tpu.memory_space<vmem>>, vector<2x32xf32>,
    %245 = vector.extract_strided_slice %242 {offsets = [2, 0], sizes = [2, 32], strides = [1, 1]} : vector<4x32xf32> to vector<2x32xf32>
    %c0_49 = arith.constant 0 : index
    %c0_50 = arith.constant 0 : index
    %246 = vector.load %arg4[%c0_49, %c0_50] : memref<16x32xf32, #tpu.memory_space<vmem>>, vector<2x32xf32>
    tpu.vector_store %arg4[%c0_49, %c0_50], %245 {strides = array<i32>} : memref<16x32xf32, #tpu.memory_space<vmem>>, vector<2x32xf32>,
    %c0_51 = arith.constant 0 : index
    %c0_52 = arith.constant 0 : index
    %247 = vector.load %arg3[%c0_51, %c0_52] : memref<16x32xf32, #tpu.memory_space<vmem>>, vector<16x32xf32>
    %c0_53 = arith.constant 0 : index
    %c0_54 = arith.constant 0 : index
    %248 = vector.load %arg4[%c0_53, %c0_54] : memref<16x32xf32, #tpu.memory_space<vmem>>, vector<16x32xf32>
    %249 = tpu.concatenate %247, %248 in 1 : vector<16x32xf32>, vector<16x32xf32> -> vector<16x64xf32>
    %c80 = arith.constant 80 : index
    %c0_55 = arith.constant 0 : index
    %250 = vector.load %arg1[%c80, %c0_55] : memref<408x256xf32, #tpu.memory_space<vmem>>, vector<64x256xf32>
    %251 = arith.truncf %250 : vector<64x256xf32> to vector<64x256xbf16>
    %c144 = arith.constant 144 : index
    %c0_56 = arith.constant 0 : index
    %252 = vector.load %arg1[%c144, %c0_56] : memref<408x256xf32, #tpu.memory_space<vmem>>, vector<32x256xf32>
    %253 = arith.truncf %252 : vector<32x256xf32> to vector<32x256xbf16>
    %c176 = arith.constant 176 : index
    %c0_57 = arith.constant 0 : index
    %254 = vector.load %arg1[%c176, %c0_57] : memref<408x256xf32, #tpu.memory_space<vmem>>, vector<1x256xf32>
    %255 = arith.truncf %249 : vector<16x64xf32> to vector<16x64xbf16>
    %cst_58 = arith.constant dense<0.000000e+00> : vector<16x256xf32>
    %256 = tpu.matmul %255, %251, %cst_58 {dimension_numbers = #tpu.dot_dimension_numbers<[1], [0], [0], [1], [0, 0, 1, 1], [], []>} : vector<16x64xbf16>, vector<64x256xbf16>, vector<16x256xf32> -> vector<16x256xf32>
    %257 = vector.broadcast %254 : vector<1x256xf32> to vector<16x256xf32>
    %258 = arith.addf %256, %257 : vector<16x256xf32>
    %259 = vector.extract_strided_slice %258 {offsets = [0, 0], sizes = [16, 128], strides = [1, 1]} : vector<16x256xf32> to vector<16x128xf32>
    %260 = vector.extract_strided_slice %258 {offsets = [0, 128], sizes = [16, 128], strides = [1, 1]} : vector<16x256xf32> to vector<16x128xf32>
    %cst_59 = arith.constant 0.000000e+00 : f32
    %261 = vector.broadcast %cst_59 : f32 to vector<4x32xf32>
    %cst_60 = arith.constant 0.000000e+00 : f32
    %262 = vector.broadcast %cst_60 : f32 to vector<4x32xf32>
    %263 = arith.truncf %261 : vector<4x32xf32> to vector<4x32xbf16>
    %cst_61 = arith.constant dense<0.000000e+00> : vector<4x256xf32>
    %264 = tpu.matmul %263, %253, %cst_61 {dimension_numbers = #tpu.dot_dimension_numbers<[1], [0], [0], [1], [0, 0, 1, 1], [], []>} : vector<4x32xbf16>, vector<32x256xbf16>, vector<4x256xf32> -> vector<4x256xf32>
    %265 = vector.extract_strided_slice %259 {offsets = [0, 0], sizes = [2, 128], strides = [1, 1]} : vector<16x128xf32> to vector<2x128xf32>
    %266 = vector.extract_strided_slice %260 {offsets = [14, 0], sizes = [2, 128], strides = [1, 1]} : vector<16x128xf32> to vector<2x128xf32>
    %267 = tpu.concatenate %265, %266 in 0 : vector<2x128xf32>, vector<2x128xf32> -> vector<4x128xf32>
    %268 = vector.extract_strided_slice %264 {offsets = [0, 0], sizes = [4, 128], strides = [1, 1]} : vector<4x256xf32> to vector<4x128xf32>
    %269 = vector.extract_strided_slice %264 {offsets = [0, 128], sizes = [4, 128], strides = [1, 1]} : vector<4x256xf32> to vector<4x128xf32>
    %270 = arith.select %9, %268, %269 : vector<4x128xi1>, vector<4x128xf32>
    %271 = arith.addf %270, %267 : vector<4x128xf32>
    %272 = arith.negf %271 : vector<4x128xf32>
    %273 = math.exp %272 : vector<4x128xf32>
    %cst_62 = arith.constant 1.000000e+00 : f32
    %274 = vector.broadcast %cst_62 : f32 to vector<4x128xf32>
    %275 = arith.addf %274, %273 : vector<4x128xf32>
    %276 = arith.divf %274, %275 : vector<4x128xf32>
    %277 = math.tanh %271 : vector<4x128xf32>
    %278 = vector.extract_strided_slice %276 {offsets = [0, 0], sizes = [4, 32], strides = [1, 1]} : vector<4x128xf32> to vector<4x32xf32>
    %279 = vector.extract_strided_slice %276 {offsets = [0, 32], sizes = [4, 32], strides = [1, 1]} : vector<4x128xf32> to vector<4x32xf32>
    %280 = vector.extract_strided_slice %277 {offsets = [0, 64], sizes = [4, 32], strides = [1, 1]} : vector<4x128xf32> to vector<4x32xf32>
    %281 = vector.extract_strided_slice %276 {offsets = [0, 96], sizes = [4, 32], strides = [1, 1]} : vector<4x128xf32> to vector<4x32xf32>
    %282 = arith.mulf %279, %262 : vector<4x32xf32>
    %283 = arith.mulf %278, %280 : vector<4x32xf32>
    %284 = arith.addf %282, %283 : vector<4x32xf32>
    %285 = math.tanh %284 : vector<4x32xf32>
    %286 = arith.mulf %281, %285 : vector<4x32xf32>
    %287 = vector.extract_strided_slice %286 {offsets = [0, 0], sizes = [2, 32], strides = [1, 1]} : vector<4x32xf32> to vector<2x32xf32>
    %c0_63 = arith.constant 0 : index
    %c0_64 = arith.constant 0 : index
    %288 = vector.load %arg3[%c0_63, %c0_64] : memref<16x32xf32, #tpu.memory_space<vmem>>, vector<2x32xf32>
    tpu.vector_store %arg3[%c0_63, %c0_64], %287 {strides = array<i32>} : memref<16x32xf32, #tpu.memory_space<vmem>>, vector<2x32xf32>,
    %289 = vector.extract_strided_slice %286 {offsets = [2, 0], sizes = [2, 32], strides = [1, 1]} : vector<4x32xf32> to vector<2x32xf32>
    %c14_65 = arith.constant 14 : index
    %c0_66 = arith.constant 0 : index
    %290 = vector.load %arg4[%c14_65, %c0_66] : memref<16x32xf32, #tpu.memory_space<vmem>>, vector<2x32xf32>
    tpu.vector_store %arg4[%c14_65, %c0_66], %289 {strides = array<i32>} : memref<16x32xf32, #tpu.memory_space<vmem>>, vector<2x32xf32>,
    %291 = arith.truncf %286 : vector<4x32xf32> to vector<4x32xbf16>
    %cst_67 = arith.constant dense<0.000000e+00> : vector<4x256xf32>
    %292 = tpu.matmul %291, %253, %cst_67 {dimension_numbers = #tpu.dot_dimension_numbers<[1], [0], [0], [1], [0, 0, 1, 1], [], []>} : vector<4x32xbf16>, vector<32x256xbf16>, vector<4x256xf32> -> vector<4x256xf32>
    %293 = vector.extract_strided_slice %259 {offsets = [2, 0], sizes = [2, 128], strides = [1, 1]} : vector<16x128xf32> to vector<2x128xf32>
    %294 = vector.extract_strided_slice %260 {offsets = [12, 0], sizes = [2, 128], strides = [1, 1]} : vector<16x128xf32> to vector<2x128xf32>
    %295 = tpu.concatenate %293, %294 in 0 : vector<2x128xf32>, vector<2x128xf32> -> vector<4x128xf32>
    %296 = vector.extract_strided_slice %292 {offsets = [0, 0], sizes = [4, 128], strides = [1, 1]} : vector<4x256xf32> to vector<4x128xf32>
    %297 = vector.extract_strided_slice %292 {offsets = [0, 128], sizes = [4, 128], strides = [1, 1]} : vector<4x256xf32> to vector<4x128xf32>
    %298 = arith.select %9, %296, %297 : vector<4x128xi1>, vector<4x128xf32>
    %299 = arith.addf %298, %295 : vector<4x128xf32>
    %300 = arith.negf %299 : vector<4x128xf32>
    %301 = math.exp %300 : vector<4x128xf32>
    %cst_68 = arith.constant 1.000000e+00 : f32
    %302 = vector.broadcast %cst_68 : f32 to vector<4x128xf32>
    %303 = arith.addf %302, %301 : vector<4x128xf32>
    %304 = arith.divf %302, %303 : vector<4x128xf32>
    %305 = math.tanh %299 : vector<4x128xf32>
    %306 = vector.extract_strided_slice %304 {offsets = [0, 0], sizes = [4, 32], strides = [1, 1]} : vector<4x128xf32> to vector<4x32xf32>
    %307 = vector.extract_strided_slice %304 {offsets = [0, 32], sizes = [4, 32], strides = [1, 1]} : vector<4x128xf32> to vector<4x32xf32>
    %308 = vector.extract_strided_slice %305 {offsets = [0, 64], sizes = [4, 32], strides = [1, 1]} : vector<4x128xf32> to vector<4x32xf32>
    %309 = vector.extract_strided_slice %304 {offsets = [0, 96], sizes = [4, 32], strides = [1, 1]} : vector<4x128xf32> to vector<4x32xf32>
    %310 = arith.mulf %307, %284 : vector<4x32xf32>
    %311 = arith.mulf %306, %308 : vector<4x32xf32>
    %312 = arith.addf %310, %311 : vector<4x32xf32>
    %313 = math.tanh %312 : vector<4x32xf32>
    %314 = arith.mulf %309, %313 : vector<4x32xf32>
    %315 = vector.extract_strided_slice %314 {offsets = [0, 0], sizes = [2, 32], strides = [1, 1]} : vector<4x32xf32> to vector<2x32xf32>
    %c2_69 = arith.constant 2 : index
    %c0_70 = arith.constant 0 : index
    %316 = vector.load %arg3[%c2_69, %c0_70] : memref<16x32xf32, #tpu.memory_space<vmem>>, vector<2x32xf32>
    tpu.vector_store %arg3[%c2_69, %c0_70], %315 {strides = array<i32>} : memref<16x32xf32, #tpu.memory_space<vmem>>, vector<2x32xf32>,
    %317 = vector.extract_strided_slice %314 {offsets = [2, 0], sizes = [2, 32], strides = [1, 1]} : vector<4x32xf32> to vector<2x32xf32>
    %c12_71 = arith.constant 12 : index
    %c0_72 = arith.constant 0 : index
    %318 = vector.load %arg4[%c12_71, %c0_72] : memref<16x32xf32, #tpu.memory_space<vmem>>, vector<2x32xf32>
    tpu.vector_store %arg4[%c12_71, %c0_72], %317 {strides = array<i32>} : memref<16x32xf32, #tpu.memory_space<vmem>>, vector<2x32xf32>,
    %319 = arith.truncf %314 : vector<4x32xf32> to vector<4x32xbf16>
    %cst_73 = arith.constant dense<0.000000e+00> : vector<4x256xf32>
    %320 = tpu.matmul %319, %253, %cst_73 {dimension_numbers = #tpu.dot_dimension_numbers<[1], [0], [0], [1], [0, 0, 1, 1], [], []>} : vector<4x32xbf16>, vector<32x256xbf16>, vector<4x256xf32> -> vector<4x256xf32>
    %321 = vector.extract_strided_slice %259 {offsets = [4, 0], sizes = [2, 128], strides = [1, 1]} : vector<16x128xf32> to vector<2x128xf32>
    %322 = vector.extract_strided_slice %260 {offsets = [10, 0], sizes = [2, 128], strides = [1, 1]} : vector<16x128xf32> to vector<2x128xf32>
    %323 = tpu.concatenate %321, %322 in 0 : vector<2x128xf32>, vector<2x128xf32> -> vector<4x128xf32>
    %324 = vector.extract_strided_slice %320 {offsets = [0, 0], sizes = [4, 128], strides = [1, 1]} : vector<4x256xf32> to vector<4x128xf32>
    %325 = vector.extract_strided_slice %320 {offsets = [0, 128], sizes = [4, 128], strides = [1, 1]} : vector<4x256xf32> to vector<4x128xf32>
    %326 = arith.select %9, %324, %325 : vector<4x128xi1>, vector<4x128xf32>
    %327 = arith.addf %326, %323 : vector<4x128xf32>
    %328 = arith.negf %327 : vector<4x128xf32>
    %329 = math.exp %328 : vector<4x128xf32>
    %cst_74 = arith.constant 1.000000e+00 : f32
    %330 = vector.broadcast %cst_74 : f32 to vector<4x128xf32>
    %331 = arith.addf %330, %329 : vector<4x128xf32>
    %332 = arith.divf %330, %331 : vector<4x128xf32>
    %333 = math.tanh %327 : vector<4x128xf32>
    %334 = vector.extract_strided_slice %332 {offsets = [0, 0], sizes = [4, 32], strides = [1, 1]} : vector<4x128xf32> to vector<4x32xf32>
    %335 = vector.extract_strided_slice %332 {offsets = [0, 32], sizes = [4, 32], strides = [1, 1]} : vector<4x128xf32> to vector<4x32xf32>
    %336 = vector.extract_strided_slice %333 {offsets = [0, 64], sizes = [4, 32], strides = [1, 1]} : vector<4x128xf32> to vector<4x32xf32>
    %337 = vector.extract_strided_slice %332 {offsets = [0, 96], sizes = [4, 32], strides = [1, 1]} : vector<4x128xf32> to vector<4x32xf32>
    %338 = arith.mulf %335, %312 : vector<4x32xf32>
    %339 = arith.mulf %334, %336 : vector<4x32xf32>
    %340 = arith.addf %338, %339 : vector<4x32xf32>
    %341 = math.tanh %340 : vector<4x32xf32>
    %342 = arith.mulf %337, %341 : vector<4x32xf32>
    %343 = vector.extract_strided_slice %342 {offsets = [0, 0], sizes = [2, 32], strides = [1, 1]} : vector<4x32xf32> to vector<2x32xf32>
    %c4_75 = arith.constant 4 : index
    %c0_76 = arith.constant 0 : index
    %344 = vector.load %arg3[%c4_75, %c0_76] : memref<16x32xf32, #tpu.memory_space<vmem>>, vector<2x32xf32>
    tpu.vector_store %arg3[%c4_75, %c0_76], %343 {strides = array<i32>} : memref<16x32xf32, #tpu.memory_space<vmem>>, vector<2x32xf32>,
    %345 = vector.extract_strided_slice %342 {offsets = [2, 0], sizes = [2, 32], strides = [1, 1]} : vector<4x32xf32> to vector<2x32xf32>
    %c10_77 = arith.constant 10 : index
    %c0_78 = arith.constant 0 : index
    %346 = vector.load %arg4[%c10_77, %c0_78] : memref<16x32xf32, #tpu.memory_space<vmem>>, vector<2x32xf32>
    tpu.vector_store %arg4[%c10_77, %c0_78], %345 {strides = array<i32>} : memref<16x32xf32, #tpu.memory_space<vmem>>, vector<2x32xf32>,
    %347 = arith.truncf %342 : vector<4x32xf32> to vector<4x32xbf16>
    %cst_79 = arith.constant dense<0.000000e+00> : vector<4x256xf32>
    %348 = tpu.matmul %347, %253, %cst_79 {dimension_numbers = #tpu.dot_dimension_numbers<[1], [0], [0], [1], [0, 0, 1, 1], [], []>} : vector<4x32xbf16>, vector<32x256xbf16>, vector<4x256xf32> -> vector<4x256xf32>
    %349 = vector.extract_strided_slice %259 {offsets = [6, 0], sizes = [2, 128], strides = [1, 1]} : vector<16x128xf32> to vector<2x128xf32>
    %350 = vector.extract_strided_slice %260 {offsets = [8, 0], sizes = [2, 128], strides = [1, 1]} : vector<16x128xf32> to vector<2x128xf32>
    %351 = tpu.concatenate %349, %350 in 0 : vector<2x128xf32>, vector<2x128xf32> -> vector<4x128xf32>
    %352 = vector.extract_strided_slice %348 {offsets = [0, 0], sizes = [4, 128], strides = [1, 1]} : vector<4x256xf32> to vector<4x128xf32>
    %353 = vector.extract_strided_slice %348 {offsets = [0, 128], sizes = [4, 128], strides = [1, 1]} : vector<4x256xf32> to vector<4x128xf32>
    %354 = arith.select %9, %352, %353 : vector<4x128xi1>, vector<4x128xf32>
    %355 = arith.addf %354, %351 : vector<4x128xf32>
    %356 = arith.negf %355 : vector<4x128xf32>
    %357 = math.exp %356 : vector<4x128xf32>
    %cst_80 = arith.constant 1.000000e+00 : f32
    %358 = vector.broadcast %cst_80 : f32 to vector<4x128xf32>
    %359 = arith.addf %358, %357 : vector<4x128xf32>
    %360 = arith.divf %358, %359 : vector<4x128xf32>
    %361 = math.tanh %355 : vector<4x128xf32>
    %362 = vector.extract_strided_slice %360 {offsets = [0, 0], sizes = [4, 32], strides = [1, 1]} : vector<4x128xf32> to vector<4x32xf32>
    %363 = vector.extract_strided_slice %360 {offsets = [0, 32], sizes = [4, 32], strides = [1, 1]} : vector<4x128xf32> to vector<4x32xf32>
    %364 = vector.extract_strided_slice %361 {offsets = [0, 64], sizes = [4, 32], strides = [1, 1]} : vector<4x128xf32> to vector<4x32xf32>
    %365 = vector.extract_strided_slice %360 {offsets = [0, 96], sizes = [4, 32], strides = [1, 1]} : vector<4x128xf32> to vector<4x32xf32>
    %366 = arith.mulf %363, %340 : vector<4x32xf32>
    %367 = arith.mulf %362, %364 : vector<4x32xf32>
    %368 = arith.addf %366, %367 : vector<4x32xf32>
    %369 = math.tanh %368 : vector<4x32xf32>
    %370 = arith.mulf %365, %369 : vector<4x32xf32>
    %371 = vector.extract_strided_slice %370 {offsets = [0, 0], sizes = [2, 32], strides = [1, 1]} : vector<4x32xf32> to vector<2x32xf32>
    %c6_81 = arith.constant 6 : index
    %c0_82 = arith.constant 0 : index
    %372 = vector.load %arg3[%c6_81, %c0_82] : memref<16x32xf32, #tpu.memory_space<vmem>>, vector<2x32xf32>
    tpu.vector_store %arg3[%c6_81, %c0_82], %371 {strides = array<i32>} : memref<16x32xf32, #tpu.memory_space<vmem>>, vector<2x32xf32>,
    %373 = vector.extract_strided_slice %370 {offsets = [2, 0], sizes = [2, 32], strides = [1, 1]} : vector<4x32xf32> to vector<2x32xf32>
    %c8_83 = arith.constant 8 : index
    %c0_84 = arith.constant 0 : index
    %374 = vector.load %arg4[%c8_83, %c0_84] : memref<16x32xf32, #tpu.memory_space<vmem>>, vector<2x32xf32>
    tpu.vector_store %arg4[%c8_83, %c0_84], %373 {strides = array<i32>} : memref<16x32xf32, #tpu.memory_space<vmem>>, vector<2x32xf32>,
    %375 = arith.truncf %370 : vector<4x32xf32> to vector<4x32xbf16>
    %cst_85 = arith.constant dense<0.000000e+00> : vector<4x256xf32>
    %376 = tpu.matmul %375, %253, %cst_85 {dimension_numbers = #tpu.dot_dimension_numbers<[1], [0], [0], [1], [0, 0, 1, 1], [], []>} : vector<4x32xbf16>, vector<32x256xbf16>, vector<4x256xf32> -> vector<4x256xf32>
    %377 = vector.extract_strided_slice %259 {offsets = [8, 0], sizes = [2, 128], strides = [1, 1]} : vector<16x128xf32> to vector<2x128xf32>
    %378 = vector.extract_strided_slice %260 {offsets = [6, 0], sizes = [2, 128], strides = [1, 1]} : vector<16x128xf32> to vector<2x128xf32>
    %379 = tpu.concatenate %377, %378 in 0 : vector<2x128xf32>, vector<2x128xf32> -> vector<4x128xf32>
    %380 = vector.extract_strided_slice %376 {offsets = [0, 0], sizes = [4, 128], strides = [1, 1]} : vector<4x256xf32> to vector<4x128xf32>
    %381 = vector.extract_strided_slice %376 {offsets = [0, 128], sizes = [4, 128], strides = [1, 1]} : vector<4x256xf32> to vector<4x128xf32>
    %382 = arith.select %9, %380, %381 : vector<4x128xi1>, vector<4x128xf32>
    %383 = arith.addf %382, %379 : vector<4x128xf32>
    %384 = arith.negf %383 : vector<4x128xf32>
    %385 = math.exp %384 : vector<4x128xf32>
    %cst_86 = arith.constant 1.000000e+00 : f32
    %386 = vector.broadcast %cst_86 : f32 to vector<4x128xf32>
    %387 = arith.addf %386, %385 : vector<4x128xf32>
    %388 = arith.divf %386, %387 : vector<4x128xf32>
    %389 = math.tanh %383 : vector<4x128xf32>
    %390 = vector.extract_strided_slice %388 {offsets = [0, 0], sizes = [4, 32], strides = [1, 1]} : vector<4x128xf32> to vector<4x32xf32>
    %391 = vector.extract_strided_slice %388 {offsets = [0, 32], sizes = [4, 32], strides = [1, 1]} : vector<4x128xf32> to vector<4x32xf32>
    %392 = vector.extract_strided_slice %389 {offsets = [0, 64], sizes = [4, 32], strides = [1, 1]} : vector<4x128xf32> to vector<4x32xf32>
    %393 = vector.extract_strided_slice %388 {offsets = [0, 96], sizes = [4, 32], strides = [1, 1]} : vector<4x128xf32> to vector<4x32xf32>
    %394 = arith.mulf %391, %368 : vector<4x32xf32>
    %395 = arith.mulf %390, %392 : vector<4x32xf32>
    %396 = arith.addf %394, %395 : vector<4x32xf32>
    %397 = math.tanh %396 : vector<4x32xf32>
    %398 = arith.mulf %393, %397 : vector<4x32xf32>
    %399 = vector.extract_strided_slice %398 {offsets = [0, 0], sizes = [2, 32], strides = [1, 1]} : vector<4x32xf32> to vector<2x32xf32>
    %c8_87 = arith.constant 8 : index
    %c0_88 = arith.constant 0 : index
    %400 = vector.load %arg3[%c8_87, %c0_88] : memref<16x32xf32, #tpu.memory_space<vmem>>, vector<2x32xf32>
    tpu.vector_store %arg3[%c8_87, %c0_88], %399 {strides = array<i32>} : memref<16x32xf32, #tpu.memory_space<vmem>>, vector<2x32xf32>,
    %401 = vector.extract_strided_slice %398 {offsets = [2, 0], sizes = [2, 32], strides = [1, 1]} : vector<4x32xf32> to vector<2x32xf32>
    %c6_89 = arith.constant 6 : index
    %c0_90 = arith.constant 0 : index
    %402 = vector.load %arg4[%c6_89, %c0_90] : memref<16x32xf32, #tpu.memory_space<vmem>>, vector<2x32xf32>
    tpu.vector_store %arg4[%c6_89, %c0_90], %401 {strides = array<i32>} : memref<16x32xf32, #tpu.memory_space<vmem>>, vector<2x32xf32>,
    %403 = arith.truncf %398 : vector<4x32xf32> to vector<4x32xbf16>
    %cst_91 = arith.constant dense<0.000000e+00> : vector<4x256xf32>
    %404 = tpu.matmul %403, %253, %cst_91 {dimension_numbers = #tpu.dot_dimension_numbers<[1], [0], [0], [1], [0, 0, 1, 1], [], []>} : vector<4x32xbf16>, vector<32x256xbf16>, vector<4x256xf32> -> vector<4x256xf32>
    %405 = vector.extract_strided_slice %259 {offsets = [10, 0], sizes = [2, 128], strides = [1, 1]} : vector<16x128xf32> to vector<2x128xf32>
    %406 = vector.extract_strided_slice %260 {offsets = [4, 0], sizes = [2, 128], strides = [1, 1]} : vector<16x128xf32> to vector<2x128xf32>
    %407 = tpu.concatenate %405, %406 in 0 : vector<2x128xf32>, vector<2x128xf32> -> vector<4x128xf32>
    %408 = vector.extract_strided_slice %404 {offsets = [0, 0], sizes = [4, 128], strides = [1, 1]} : vector<4x256xf32> to vector<4x128xf32>
    %409 = vector.extract_strided_slice %404 {offsets = [0, 128], sizes = [4, 128], strides = [1, 1]} : vector<4x256xf32> to vector<4x128xf32>
    %410 = arith.select %9, %408, %409 : vector<4x128xi1>, vector<4x128xf32>
    %411 = arith.addf %410, %407 : vector<4x128xf32>
    %412 = arith.negf %411 : vector<4x128xf32>
    %413 = math.exp %412 : vector<4x128xf32>
    %cst_92 = arith.constant 1.000000e+00 : f32
    %414 = vector.broadcast %cst_92 : f32 to vector<4x128xf32>
    %415 = arith.addf %414, %413 : vector<4x128xf32>
    %416 = arith.divf %414, %415 : vector<4x128xf32>
    %417 = math.tanh %411 : vector<4x128xf32>
    %418 = vector.extract_strided_slice %416 {offsets = [0, 0], sizes = [4, 32], strides = [1, 1]} : vector<4x128xf32> to vector<4x32xf32>
    %419 = vector.extract_strided_slice %416 {offsets = [0, 32], sizes = [4, 32], strides = [1, 1]} : vector<4x128xf32> to vector<4x32xf32>
    %420 = vector.extract_strided_slice %417 {offsets = [0, 64], sizes = [4, 32], strides = [1, 1]} : vector<4x128xf32> to vector<4x32xf32>
    %421 = vector.extract_strided_slice %416 {offsets = [0, 96], sizes = [4, 32], strides = [1, 1]} : vector<4x128xf32> to vector<4x32xf32>
    %422 = arith.mulf %419, %396 : vector<4x32xf32>
    %423 = arith.mulf %418, %420 : vector<4x32xf32>
    %424 = arith.addf %422, %423 : vector<4x32xf32>
    %425 = math.tanh %424 : vector<4x32xf32>
    %426 = arith.mulf %421, %425 : vector<4x32xf32>
    %427 = vector.extract_strided_slice %426 {offsets = [0, 0], sizes = [2, 32], strides = [1, 1]} : vector<4x32xf32> to vector<2x32xf32>
    %c10_93 = arith.constant 10 : index
    %c0_94 = arith.constant 0 : index
    %428 = vector.load %arg3[%c10_93, %c0_94] : memref<16x32xf32, #tpu.memory_space<vmem>>, vector<2x32xf32>
    tpu.vector_store %arg3[%c10_93, %c0_94], %427 {strides = array<i32>} : memref<16x32xf32, #tpu.memory_space<vmem>>, vector<2x32xf32>,
    %429 = vector.extract_strided_slice %426 {offsets = [2, 0], sizes = [2, 32], strides = [1, 1]} : vector<4x32xf32> to vector<2x32xf32>
    %c4_95 = arith.constant 4 : index
    %c0_96 = arith.constant 0 : index
    %430 = vector.load %arg4[%c4_95, %c0_96] : memref<16x32xf32, #tpu.memory_space<vmem>>, vector<2x32xf32>
    tpu.vector_store %arg4[%c4_95, %c0_96], %429 {strides = array<i32>} : memref<16x32xf32, #tpu.memory_space<vmem>>, vector<2x32xf32>,
    %431 = arith.truncf %426 : vector<4x32xf32> to vector<4x32xbf16>
    %cst_97 = arith.constant dense<0.000000e+00> : vector<4x256xf32>
    %432 = tpu.matmul %431, %253, %cst_97 {dimension_numbers = #tpu.dot_dimension_numbers<[1], [0], [0], [1], [0, 0, 1, 1], [], []>} : vector<4x32xbf16>, vector<32x256xbf16>, vector<4x256xf32> -> vector<4x256xf32>
    %433 = vector.extract_strided_slice %259 {offsets = [12, 0], sizes = [2, 128], strides = [1, 1]} : vector<16x128xf32> to vector<2x128xf32>
    %434 = vector.extract_strided_slice %260 {offsets = [2, 0], sizes = [2, 128], strides = [1, 1]} : vector<16x128xf32> to vector<2x128xf32>
    %435 = tpu.concatenate %433, %434 in 0 : vector<2x128xf32>, vector<2x128xf32> -> vector<4x128xf32>
    %436 = vector.extract_strided_slice %432 {offsets = [0, 0], sizes = [4, 128], strides = [1, 1]} : vector<4x256xf32> to vector<4x128xf32>
    %437 = vector.extract_strided_slice %432 {offsets = [0, 128], sizes = [4, 128], strides = [1, 1]} : vector<4x256xf32> to vector<4x128xf32>
    %438 = arith.select %9, %436, %437 : vector<4x128xi1>, vector<4x128xf32>
    %439 = arith.addf %438, %435 : vector<4x128xf32>
    %440 = arith.negf %439 : vector<4x128xf32>
    %441 = math.exp %440 : vector<4x128xf32>
    %cst_98 = arith.constant 1.000000e+00 : f32
    %442 = vector.broadcast %cst_98 : f32 to vector<4x128xf32>
    %443 = arith.addf %442, %441 : vector<4x128xf32>
    %444 = arith.divf %442, %443 : vector<4x128xf32>
    %445 = math.tanh %439 : vector<4x128xf32>
    %446 = vector.extract_strided_slice %444 {offsets = [0, 0], sizes = [4, 32], strides = [1, 1]} : vector<4x128xf32> to vector<4x32xf32>
    %447 = vector.extract_strided_slice %444 {offsets = [0, 32], sizes = [4, 32], strides = [1, 1]} : vector<4x128xf32> to vector<4x32xf32>
    %448 = vector.extract_strided_slice %445 {offsets = [0, 64], sizes = [4, 32], strides = [1, 1]} : vector<4x128xf32> to vector<4x32xf32>
    %449 = vector.extract_strided_slice %444 {offsets = [0, 96], sizes = [4, 32], strides = [1, 1]} : vector<4x128xf32> to vector<4x32xf32>
    %450 = arith.mulf %447, %424 : vector<4x32xf32>
    %451 = arith.mulf %446, %448 : vector<4x32xf32>
    %452 = arith.addf %450, %451 : vector<4x32xf32>
    %453 = math.tanh %452 : vector<4x32xf32>
    %454 = arith.mulf %449, %453 : vector<4x32xf32>
    %455 = vector.extract_strided_slice %454 {offsets = [0, 0], sizes = [2, 32], strides = [1, 1]} : vector<4x32xf32> to vector<2x32xf32>
    %c12_99 = arith.constant 12 : index
    %c0_100 = arith.constant 0 : index
    %456 = vector.load %arg3[%c12_99, %c0_100] : memref<16x32xf32, #tpu.memory_space<vmem>>, vector<2x32xf32>
    tpu.vector_store %arg3[%c12_99, %c0_100], %455 {strides = array<i32>} : memref<16x32xf32, #tpu.memory_space<vmem>>, vector<2x32xf32>,
    %457 = vector.extract_strided_slice %454 {offsets = [2, 0], sizes = [2, 32], strides = [1, 1]} : vector<4x32xf32> to vector<2x32xf32>
    %c2_101 = arith.constant 2 : index
    %c0_102 = arith.constant 0 : index
    %458 = vector.load %arg4[%c2_101, %c0_102] : memref<16x32xf32, #tpu.memory_space<vmem>>, vector<2x32xf32>
    tpu.vector_store %arg4[%c2_101, %c0_102], %457 {strides = array<i32>} : memref<16x32xf32, #tpu.memory_space<vmem>>, vector<2x32xf32>,
    %459 = arith.truncf %454 : vector<4x32xf32> to vector<4x32xbf16>
    %cst_103 = arith.constant dense<0.000000e+00> : vector<4x256xf32>
    %460 = tpu.matmul %459, %253, %cst_103 {dimension_numbers = #tpu.dot_dimension_numbers<[1], [0], [0], [1], [0, 0, 1, 1], [], []>} : vector<4x32xbf16>, vector<32x256xbf16>, vector<4x256xf32> -> vector<4x256xf32>
    %461 = vector.extract_strided_slice %259 {offsets = [14, 0], sizes = [2, 128], strides = [1, 1]} : vector<16x128xf32> to vector<2x128xf32>
    %462 = vector.extract_strided_slice %260 {offsets = [0, 0], sizes = [2, 128], strides = [1, 1]} : vector<16x128xf32> to vector<2x128xf32>
    %463 = tpu.concatenate %461, %462 in 0 : vector<2x128xf32>, vector<2x128xf32> -> vector<4x128xf32>
    %464 = vector.extract_strided_slice %460 {offsets = [0, 0], sizes = [4, 128], strides = [1, 1]} : vector<4x256xf32> to vector<4x128xf32>
    %465 = vector.extract_strided_slice %460 {offsets = [0, 128], sizes = [4, 128], strides = [1, 1]} : vector<4x256xf32> to vector<4x128xf32>
    %466 = arith.select %9, %464, %465 : vector<4x128xi1>, vector<4x128xf32>
    %467 = arith.addf %466, %463 : vector<4x128xf32>
    %468 = arith.negf %467 : vector<4x128xf32>
    %469 = math.exp %468 : vector<4x128xf32>
    %cst_104 = arith.constant 1.000000e+00 : f32
    %470 = vector.broadcast %cst_104 : f32 to vector<4x128xf32>
    %471 = arith.addf %470, %469 : vector<4x128xf32>
    %472 = arith.divf %470, %471 : vector<4x128xf32>
    %473 = math.tanh %467 : vector<4x128xf32>
    %474 = vector.extract_strided_slice %472 {offsets = [0, 0], sizes = [4, 32], strides = [1, 1]} : vector<4x128xf32> to vector<4x32xf32>
    %475 = vector.extract_strided_slice %472 {offsets = [0, 32], sizes = [4, 32], strides = [1, 1]} : vector<4x128xf32> to vector<4x32xf32>
    %476 = vector.extract_strided_slice %473 {offsets = [0, 64], sizes = [4, 32], strides = [1, 1]} : vector<4x128xf32> to vector<4x32xf32>
    %477 = vector.extract_strided_slice %472 {offsets = [0, 96], sizes = [4, 32], strides = [1, 1]} : vector<4x128xf32> to vector<4x32xf32>
    %478 = arith.mulf %475, %452 : vector<4x32xf32>
    %479 = arith.mulf %474, %476 : vector<4x32xf32>
    %480 = arith.addf %478, %479 : vector<4x32xf32>
    %481 = math.tanh %480 : vector<4x32xf32>
    %482 = arith.mulf %477, %481 : vector<4x32xf32>
    %483 = vector.extract_strided_slice %482 {offsets = [0, 0], sizes = [2, 32], strides = [1, 1]} : vector<4x32xf32> to vector<2x32xf32>
    %c14_105 = arith.constant 14 : index
    %c0_106 = arith.constant 0 : index
    %484 = vector.load %arg3[%c14_105, %c0_106] : memref<16x32xf32, #tpu.memory_space<vmem>>, vector<2x32xf32>
    tpu.vector_store %arg3[%c14_105, %c0_106], %483 {strides = array<i32>} : memref<16x32xf32, #tpu.memory_space<vmem>>, vector<2x32xf32>,
    %485 = vector.extract_strided_slice %482 {offsets = [2, 0], sizes = [2, 32], strides = [1, 1]} : vector<4x32xf32> to vector<2x32xf32>
    %c0_107 = arith.constant 0 : index
    %c0_108 = arith.constant 0 : index
    %486 = vector.load %arg4[%c0_107, %c0_108] : memref<16x32xf32, #tpu.memory_space<vmem>>, vector<2x32xf32>
    tpu.vector_store %arg4[%c0_107, %c0_108], %485 {strides = array<i32>} : memref<16x32xf32, #tpu.memory_space<vmem>>, vector<2x32xf32>,
    %c0_109 = arith.constant 0 : index
    %c0_110 = arith.constant 0 : index
    %487 = vector.load %arg3[%c0_109, %c0_110] : memref<16x32xf32, #tpu.memory_space<vmem>>, vector<16x32xf32>
    %c0_111 = arith.constant 0 : index
    %c0_112 = arith.constant 0 : index
    %488 = vector.load %arg4[%c0_111, %c0_112] : memref<16x32xf32, #tpu.memory_space<vmem>>, vector<16x32xf32>
    %489 = tpu.concatenate %487, %488 in 1 : vector<16x32xf32>, vector<16x32xf32> -> vector<16x64xf32>
    %c184 = arith.constant 184 : index
    %c0_113 = arith.constant 0 : index
    %490 = vector.load %arg1[%c184, %c0_113] : memref<408x256xf32, #tpu.memory_space<vmem>>, vector<64x128xf32>
    %cst_114 = arith.constant dense<0.000000e+00> : vector<16x128xf32>
    %491 = tpu.matmul %489, %490, %cst_114 {dimension_numbers = #tpu.dot_dimension_numbers<[1], [0], [0], [1], [0, 0, 1, 1], [], []>} : vector<16x64xf32>, vector<64x128xf32>, vector<16x128xf32> -> vector<16x128xf32>
    %c248 = arith.constant 248 : index
    %c0_115 = arith.constant 0 : index
    %492 = vector.load %arg1[%c248, %c0_115] : memref<408x256xf32, #tpu.memory_space<vmem>>, vector<1x128xf32>
    %493 = vector.broadcast %492 : vector<1x128xf32> to vector<16x128xf32>
    %494 = arith.addf %491, %493 : vector<16x128xf32>
    %cst_116 = arith.constant 0.000000e+00 : f32
    %495 = vector.broadcast %cst_116 : f32 to vector<16x128xf32>
    %496 = arith.maximumf %494, %495 : vector<16x128xf32>
    %c256 = arith.constant 256 : index
    %c0_117 = arith.constant 0 : index
    %497 = vector.load %arg1[%c256, %c0_117] : memref<408x256xf32, #tpu.memory_space<vmem>>, vector<1x128xf32>
    %498 = vector.broadcast %497 : vector<1x128xf32> to vector<16x128xf32>
    %499 = arith.mulf %496, %498 : vector<16x128xf32>
    %cst_118 = arith.constant dense<0.000000e+00> : vector<16xf32>
    %500 = vector.multi_reduction <add>, %499, %cst_118 [1] : vector<16x128xf32> to vector<16xf32>
    %501 = vector.shape_cast %500 : vector<16xf32> to vector<16x1xf32>
    %c264 = arith.constant 264 : index
    %c0_119 = arith.constant 0 : index
    %502 = vector.load %arg1[%c264, %c0_119] : memref<408x256xf32, #tpu.memory_space<vmem>>, vector<1x1xf32>
    %503 = vector.broadcast %502 : vector<1x1xf32> to vector<16x1xf32>
    %504 = arith.addf %501, %503 : vector<16x1xf32>
    %cst_120 = arith.constant 0.176776692 : f32
    %505 = vector.broadcast %cst_120 : f32 to vector<16x1xf32>
    %506 = arith.mulf %504, %505 : vector<16x1xf32>
    %507 = vector.extract_strided_slice %506 {offsets = [0, 0], sizes = [2, 1], strides = [1, 1]} : vector<16x1xf32> to vector<2x1xf32>
    %cst_121 = arith.constant 1.000000e+00 : f32
    %508 = vector.broadcast %cst_121 : f32 to vector<2x1xf32>
    %509 = vector.extract_strided_slice %489 {offsets = [0, 0], sizes = [2, 64], strides = [1, 1]} : vector<16x64xf32> to vector<2x64xf32>
    %510 = vector.extract_strided_slice %489 {offsets = [0, 0], sizes = [2, 64], strides = [1, 1]} : vector<16x64xf32> to vector<2x64xf32>
    %511 = vector.extract_strided_slice %506 {offsets = [2, 0], sizes = [2, 1], strides = [1, 1]} : vector<16x1xf32> to vector<2x1xf32>
    %512 = vector.extract_strided_slice %489 {offsets = [2, 0], sizes = [2, 64], strides = [1, 1]} : vector<16x64xf32> to vector<2x64xf32>
    %513 = arith.maximumf %507, %511 : vector<2x1xf32>
    %514 = arith.subf %507, %513 : vector<2x1xf32>
    %515 = math.exp %514 : vector<2x1xf32>
    %516 = arith.subf %511, %513 : vector<2x1xf32>
    %517 = math.exp %516 : vector<2x1xf32>
    %518 = arith.mulf %515, %508 : vector<2x1xf32>
    %519 = arith.addf %518, %517 : vector<2x1xf32>
    %520 = vector.broadcast %515 : vector<2x1xf32> to vector<2x64xf32>
    %521 = arith.mulf %520, %509 : vector<2x64xf32>
    %522 = vector.broadcast %517 : vector<2x1xf32> to vector<2x64xf32>
    %523 = arith.mulf %522, %512 : vector<2x64xf32>
    %524 = arith.addf %521, %523 : vector<2x64xf32>
    %525 = arith.addf %510, %512 : vector<2x64xf32>
    %526 = vector.extract_strided_slice %506 {offsets = [4, 0], sizes = [2, 1], strides = [1, 1]} : vector<16x1xf32> to vector<2x1xf32>
    %527 = vector.extract_strided_slice %489 {offsets = [4, 0], sizes = [2, 64], strides = [1, 1]} : vector<16x64xf32> to vector<2x64xf32>
    %528 = arith.maximumf %513, %526 : vector<2x1xf32>
    %529 = arith.subf %513, %528 : vector<2x1xf32>
    %530 = math.exp %529 : vector<2x1xf32>
    %531 = arith.subf %526, %528 : vector<2x1xf32>
    %532 = math.exp %531 : vector<2x1xf32>
    %533 = arith.mulf %530, %519 : vector<2x1xf32>
    %534 = arith.addf %533, %532 : vector<2x1xf32>
    %535 = vector.broadcast %530 : vector<2x1xf32> to vector<2x64xf32>
    %536 = arith.mulf %535, %524 : vector<2x64xf32>
    %537 = vector.broadcast %532 : vector<2x1xf32> to vector<2x64xf32>
    %538 = arith.mulf %537, %527 : vector<2x64xf32>
    %539 = arith.addf %536, %538 : vector<2x64xf32>
    %540 = arith.addf %525, %527 : vector<2x64xf32>
    %541 = vector.extract_strided_slice %506 {offsets = [6, 0], sizes = [2, 1], strides = [1, 1]} : vector<16x1xf32> to vector<2x1xf32>
    %542 = vector.extract_strided_slice %489 {offsets = [6, 0], sizes = [2, 64], strides = [1, 1]} : vector<16x64xf32> to vector<2x64xf32>
    %543 = arith.maximumf %528, %541 : vector<2x1xf32>
    %544 = arith.subf %528, %543 : vector<2x1xf32>
    %545 = math.exp %544 : vector<2x1xf32>
    %546 = arith.subf %541, %543 : vector<2x1xf32>
    %547 = math.exp %546 : vector<2x1xf32>
    %548 = arith.mulf %545, %534 : vector<2x1xf32>
    %549 = arith.addf %548, %547 : vector<2x1xf32>
    %550 = vector.broadcast %545 : vector<2x1xf32> to vector<2x64xf32>
    %551 = arith.mulf %550, %539 : vector<2x64xf32>
    %552 = vector.broadcast %547 : vector<2x1xf32> to vector<2x64xf32>
    %553 = arith.mulf %552, %542 : vector<2x64xf32>
    %554 = arith.addf %551, %553 : vector<2x64xf32>
    %555 = arith.addf %540, %542 : vector<2x64xf32>
    %556 = vector.extract_strided_slice %506 {offsets = [8, 0], sizes = [2, 1], strides = [1, 1]} : vector<16x1xf32> to vector<2x1xf32>
    %557 = vector.extract_strided_slice %489 {offsets = [8, 0], sizes = [2, 64], strides = [1, 1]} : vector<16x64xf32> to vector<2x64xf32>
    %558 = arith.maximumf %543, %556 : vector<2x1xf32>
    %559 = arith.subf %543, %558 : vector<2x1xf32>
    %560 = math.exp %559 : vector<2x1xf32>
    %561 = arith.subf %556, %558 : vector<2x1xf32>
    %562 = math.exp %561 : vector<2x1xf32>
    %563 = arith.mulf %560, %549 : vector<2x1xf32>
    %564 = arith.addf %563, %562 : vector<2x1xf32>
    %565 = vector.broadcast %560 : vector<2x1xf32> to vector<2x64xf32>
    %566 = arith.mulf %565, %554 : vector<2x64xf32>
    %567 = vector.broadcast %562 : vector<2x1xf32> to vector<2x64xf32>
    %568 = arith.mulf %567, %557 : vector<2x64xf32>
    %569 = arith.addf %566, %568 : vector<2x64xf32>
    %570 = arith.addf %555, %557 : vector<2x64xf32>
    %571 = vector.extract_strided_slice %506 {offsets = [10, 0], sizes = [2, 1], strides = [1, 1]} : vector<16x1xf32> to vector<2x1xf32>
    %572 = vector.extract_strided_slice %489 {offsets = [10, 0], sizes = [2, 64], strides = [1, 1]} : vector<16x64xf32> to vector<2x64xf32>
    %573 = arith.maximumf %558, %571 : vector<2x1xf32>
    %574 = arith.subf %558, %573 : vector<2x1xf32>
    %575 = math.exp %574 : vector<2x1xf32>
    %576 = arith.subf %571, %573 : vector<2x1xf32>
    %577 = math.exp %576 : vector<2x1xf32>
    %578 = arith.mulf %575, %564 : vector<2x1xf32>
    %579 = arith.addf %578, %577 : vector<2x1xf32>
    %580 = vector.broadcast %575 : vector<2x1xf32> to vector<2x64xf32>
    %581 = arith.mulf %580, %569 : vector<2x64xf32>
    %582 = vector.broadcast %577 : vector<2x1xf32> to vector<2x64xf32>
    %583 = arith.mulf %582, %572 : vector<2x64xf32>
    %584 = arith.addf %581, %583 : vector<2x64xf32>
    %585 = arith.addf %570, %572 : vector<2x64xf32>
    %586 = vector.extract_strided_slice %506 {offsets = [12, 0], sizes = [2, 1], strides = [1, 1]} : vector<16x1xf32> to vector<2x1xf32>
    %587 = vector.extract_strided_slice %489 {offsets = [12, 0], sizes = [2, 64], strides = [1, 1]} : vector<16x64xf32> to vector<2x64xf32>
    %588 = arith.maximumf %573, %586 : vector<2x1xf32>
    %589 = arith.subf %573, %588 : vector<2x1xf32>
    %590 = math.exp %589 : vector<2x1xf32>
    %591 = arith.subf %586, %588 : vector<2x1xf32>
    %592 = math.exp %591 : vector<2x1xf32>
    %593 = arith.mulf %590, %579 : vector<2x1xf32>
    %594 = arith.addf %593, %592 : vector<2x1xf32>
    %595 = vector.broadcast %590 : vector<2x1xf32> to vector<2x64xf32>
    %596 = arith.mulf %595, %584 : vector<2x64xf32>
    %597 = vector.broadcast %592 : vector<2x1xf32> to vector<2x64xf32>
    %598 = arith.mulf %597, %587 : vector<2x64xf32>
    %599 = arith.addf %596, %598 : vector<2x64xf32>
    %600 = arith.addf %585, %587 : vector<2x64xf32>
    %601 = vector.extract_strided_slice %506 {offsets = [14, 0], sizes = [2, 1], strides = [1, 1]} : vector<16x1xf32> to vector<2x1xf32>
    %602 = vector.extract_strided_slice %489 {offsets = [14, 0], sizes = [2, 64], strides = [1, 1]} : vector<16x64xf32> to vector<2x64xf32>
    %603 = arith.maximumf %588, %601 : vector<2x1xf32>
    %604 = arith.subf %588, %603 : vector<2x1xf32>
    %605 = math.exp %604 : vector<2x1xf32>
    %606 = arith.subf %601, %603 : vector<2x1xf32>
    %607 = math.exp %606 : vector<2x1xf32>
    %608 = arith.mulf %605, %594 : vector<2x1xf32>
    %609 = arith.addf %608, %607 : vector<2x1xf32>
    %610 = vector.broadcast %605 : vector<2x1xf32> to vector<2x64xf32>
    %611 = arith.mulf %610, %599 : vector<2x64xf32>
    %612 = vector.broadcast %607 : vector<2x1xf32> to vector<2x64xf32>
    %613 = arith.mulf %612, %602 : vector<2x64xf32>
    %614 = arith.addf %611, %613 : vector<2x64xf32>
    %615 = arith.addf %600, %602 : vector<2x64xf32>
    %616 = vector.broadcast %609 : vector<2x1xf32> to vector<2x64xf32>
    %617 = arith.divf %614, %616 : vector<2x64xf32>
    %c272 = arith.constant 272 : index
    %c0_122 = arith.constant 0 : index
    %618 = vector.load %arg1[%c272, %c0_122] : memref<408x256xf32, #tpu.memory_space<vmem>>, vector<64x128xf32>
    %cst_123 = arith.constant dense<0.000000e+00> : vector<2x128xf32>
    %619 = tpu.matmul %617, %618, %cst_123 {dimension_numbers = #tpu.dot_dimension_numbers<[1], [0], [0], [1], [0, 0, 1, 1], [], []>} : vector<2x64xf32>, vector<64x128xf32>, vector<2x128xf32> -> vector<2x128xf32>
    %c336 = arith.constant 336 : index
    %c0_124 = arith.constant 0 : index
    %620 = vector.load %arg1[%c336, %c0_124] : memref<408x256xf32, #tpu.memory_space<vmem>>, vector<64x128xf32>
    %cst_125 = arith.constant dense<0.000000e+00> : vector<2x128xf32>
    %621 = tpu.matmul %615, %620, %cst_125 {dimension_numbers = #tpu.dot_dimension_numbers<[1], [0], [0], [1], [0, 0, 1, 1], [], []>} : vector<2x64xf32>, vector<64x128xf32>, vector<2x128xf32> -> vector<2x128xf32>
    %622 = arith.addf %619, %621 : vector<2x128xf32>
    %c400 = arith.constant 400 : index
    %c0_126 = arith.constant 0 : index
    %623 = vector.load %arg1[%c400, %c0_126] : memref<408x256xf32, #tpu.memory_space<vmem>>, vector<1x128xf32>
    %624 = vector.broadcast %623 : vector<1x128xf32> to vector<2x128xf32>
    %625 = arith.addf %622, %624 : vector<2x128xf32>
    %c0_127 = arith.constant 0 : index
    %c0_128 = arith.constant 0 : index
    %626 = vector.load %arg2[%c0_127, %c0_128] : memref<2x128xf32, #tpu.memory_space<vmem>>, vector<2x128xf32>
    tpu.vector_store %arg2[%c0_127, %c0_128], %625 {strides = array<i32>} : memref<2x128xf32, #tpu.memory_space<vmem>>, vector<2x128xf32>,
    return
  }
}

</mosaic_0001>

<bundles_post_ra>
// kernel: attention_model_forward.1
= control target key start
LH: loop header
LB: loop body
LE: loop exit
PB: predicated region body
PF: predicated region fallthrough
CT: control target
= control target key end

     0   :  { %7 = vsyncpa [#allocation5], 0  ;;  %s2659_s0 = inlined_call_operand.vmem [shape: f32[16,16], index: 0, kind: input, shape index: {}]   ;;  %s2660_s1 = inlined_call_operand.hbm [shape: f32[408,256], index: 1, kind: input, shape index: {}]   ;;  %s2661_s2 = inlined_call_operand.hbm [shape: f32[2,128], index: 2, kind: output, shape index: {}]  }
   0x1   :  { %8 = vsyncpa [#allocation6], 0  ;;  %s15_s11 = sshll.u32 %s2660_s1, 4  ;;  %s2214_s12 = smov [#allocation4]   ;;  %s16_s11 = int_to_ptr.hbm [resolvable:$true] %s15_s11 }
   0x2   :  { %s17_s13 = sshll.u32 %s2214_s12, 4  ;;  %s2215_s14 = smov 256   ;;  %s18_s13 = int_to_ptr.vmem [resolvable:$true] %s17_s13 }
   0x3   :  { %s2216_s15 = smov 16  }
   0x4   :  { %23 = dma.hbm_to_vmem [thread:$0]  %s16_s11, 13056, %s18_s13, [#allocation5], %s2215_s14, %s2215_s14, %s2216_s15  }
   0x5   :  { %2210 = dma.done.wait [#allocation5], 13056  }
   0x6   :  { %2211 = vsyncadd [#allocation5], 4294954240  ;;  %v32_v0 = vld [vmem:[#allocation4 + $0x10] sm:$0xff]  ;;  %v31_v1 = vld [vmem:[#allocation4] sm:$0xff]  ;;  %vm34_vm0 = vcmask 130048   ;;  %v2217_v21 = vmov 0   ;;  %v66_v38 = vlaneseq }
   0x7   :  { %55 = vmatpush.msra.mxu0 %v32_v0  ;;  %v29_v2 = vld [vmem:[%s2659_s0] sm:$0xff]  ;;  %v30_v3 = vld [vmem:[%s2659_s0 + $0x8] sm:$0xff]  ;;  %v69_v4 = vld [vmem:[#allocation4 + $0x30] sm:$0xff]  ;;  %1997 = vset.pattern.permute.xlu2 %v2217_v21  ;;  %vm159_vm1 = vcmask 1041408   ;;  %s2218_s0 = smov 64   ;;  %s2219_s19 = smov 32  }
   0x8   :  { %v71_v5 = vld [vmem:[#allocation4 + $0x40] sm:$0xff]  ;;  %v70_v6 = vld [vmem:[#allocation4 + $0x38] sm:$0xff]  ;;  %v72_v8 = vld [vmem:[#allocation4 + $0x48] sm:$0xff]  ;;  %1999 = vset.pattern.permute.xlu1 %v2217_v21  ;;  %1998 = vset.pattern.permute.xlu0 %v2217_v21  ;;  %v2282_v44 = vshrl.u32 %v66_v38, 7  ;;  %vm126_vm7 = vcmask 261120   ;;  %s2220_s20 = smov [#allocation7]  }
   0x9   :  { %56 = vmatpush.msra.mxu0 %v31_v1  ;;  %v73_v7 = vpack.c.bf16 %v71_v5, %v69_v4  ;;  %v79_v9 = vld [vmem:[#allocation4 + $0x70] sm:$0xff]  ;;  %v81_v10 = vld [vmem:[#allocation4 + $0x80] sm:$0xff]  ;;  %v74_v11 = vpack.c.bf16 %v72_v8, %v70_v6  ;;  %v80_v16 = vld [vmem:[#allocation4 + $0x78] sm:$0xff]  ;;  %s1919_s21 = sshll.u32 %s2220_s20, 4  ;;  %s1921_s24 = sshll.u32 %s2661_s2, 4  ;;  %s1920_s21 = int_to_ptr.vmem [resolvable:$true] %s1919_s21  ;;  %s1922_s24 = int_to_ptr.hbm [resolvable:$true] %s1921_s24 }
   0xa   :  { %1931 = vmatmul.msk.f32.vlgmr.msra.gmra.mxu0 %vm34_vm0, %v29_v2  ;;  %v2247_v12 = vpack.c.bf16 %v81_v10, %v79_v9  ;;  %v75_v13 = vld [vmem:[#allocation4 + $0x50] sm:$0xff]  ;;  %v77_v14 = vld [vmem:[#allocation4 + $0x60] sm:$0xff]  ;;  %v82_v17 = vld [vmem:[#allocation4 + $0x88] sm:$0xff]  ;;  %vm68_vm2 = vcmp.lt.s32.totalorder %v2282_v44, 2 }
   0xb   :  { %105 = vmatpush.bf16.msra.mxu1 %v73_v7  ;;  %119 = vmatpush.bf16.msra.mxu2 %v74_v11  ;;  %v2251_v15 = vpack.c.bf16 %v77_v14, %v75_v13  ;;  %v76_v18 = vld [vmem:[#allocation4 + $0x58] sm:$0xff]  ;;  %v2254_v19 = vpack.c.bf16 %v82_v17, %v80_v16  ;;  %v78_v20 = vld [vmem:[#allocation4 + $0x68] sm:$0xff]  ;;  %v33_v24 = vld [vmem:[#allocation4 + $0x20] ss:$0 sm:$0xff] }
   0xc   :  { %136 = vmatpush.bf16.msra.mxu3 %v2247_v12  ;;  %v2260_v22 = vpack.c.bf16 %v78_v20, %v76_v18  ;;  %v88_v36 = vld [vmem:[#allocation4 + $0x90] ss:$8 sm:$0x3] }
   0xd   :  { %149 = vmatpush.bf16.msrb.mxu0 %v2254_v19  ;;  %v92_v37 = vperm.slane %v88_v36, 1  ;;  %v91_v39 = vperm.slane %v88_v36, 0 }
   0xf   :  { %221 = vmatpush.bf16.msrb.mxu1 %v2247_v12  ;;  %234 = vmatpush.bf16.msrb.mxu2 %v2254_v19 }
  0x10   :  { %137 = vmatpush.bf16.msra.mxu3 %v2251_v15 }
  0x11   :  { %150 = vmatpush.bf16.msrb.mxu0 %v2260_v22 }
  0x12   :  { %1932 = vmatmul.msk.f32.gmra.mxu0 %vm34_vm0, %v30_v3 }
  0x13   :  { %222 = vmatpush.bf16.msrb.mxu1 %v2251_v15  ;;  %138 = vmatmul.bf16.vlgmr.msra.gmra.mxu3 %v2217_v21 }
  0x14   :  { %305 = vmatpush.bf16.msrb.mxu3 %v2247_v12  ;;  %235 = vmatpush.bf16.msrb.mxu2 %v2260_v22 }
  0x15   :  { %318 = vmatpush.bf16.msra.mxu0 %v2254_v19 }
  0x18   :  { %306 = vmatpush.bf16.msrb.mxu3 %v2251_v15 }
  0x19   :  { %319 = vmatpush.bf16.msra.mxu0 %v2260_v22 }
  0x1a   :  { %151 = vmatmul.bf16.vlgmr.msrb.gmra.mxu0 %v2217_v21 }
  0x1c   :  { %469 = vmatpush.bf16.msra.mxu3 %v2247_v12 }
  0x1d   :  { %482 = vmatpush.bf16.msrb.mxu0 %v2254_v19 }
  0x20   :  { %470 = vmatpush.bf16.msra.mxu3 %v2251_v15 }
  0x21   :  { %483 = vmatpush.bf16.msrb.mxu0 %v2260_v22 }
  0x87   :  { %v58_v23 = vpop.f32.mrf.mxu0 }
  0x88   :  { %v59_v25 = vadd.f32 %v58_v23, %v33_v24 }
  0x8a   :  { %2000 = vtanh.f32 %v59_v25 }
  0x8f   :  { %v61_v26 = vpop.f32.mrf.mxu0 }
  0x90   :  { %v62_v27 = vadd.f32 %v61_v26, %v33_v24  ;;  %v2001_v28 = vpop.eup %2000 }
  0x92   :  { %2002 = vtanh.f32 %v62_v27 }
  0x96   :  { %v139_v31 = vpop.f32.mrf.mxu3 }
  0x97   :  { %v152_v32 = vpop.f32.mrf.mxu0 }
  0x98   :  { %v2003_v29 = vpop.eup %2002  ;;  %v161_v59 = vsel %vm68_vm2, %v139_v31, %v152_v32 }
  0x99   :  { %v89_v30 = vpack.c.bf16 %v2003_v29, %v2001_v28 }
  0x9b   :  { %1933 = vmatmul.msk.bf16.vlgmr.msra.gmra.mxu1 %vm34_vm0, %v89_v30  ;;  %1934 = vmatmul.msk.bf16.vlgmr.msra.gmra.mxu2 %vm34_vm0, %v89_v30 }
  0x9c   :  { %399 = vmatpush.bf16.msra.mxu2 %v2254_v19  ;;  %386 = vmatpush.bf16.msra.mxu1 %v2247_v12 }
  0x9e   :  { %v141_v33 = vpop.f32.mrf.mxu3 }
  0x9f   :  { %v154_v34 = vpop.f32.mrf.mxu0 }
  0xa0   :  { %400 = vmatpush.bf16.msra.mxu2 %v2260_v22  ;;  %387 = vmatpush.bf16.msra.mxu1 %v2251_v15 }
 0x118   :  { %v107_v35 = vpop.f32.mrf.mxu1 }
 0x119   :  { %v108_v46 = vadd.f32 %v107_v35, %v91_v39 }
 0x11b   :  { %v325_v58 = vrot.slane %v108_v46, 4  ;;  %v242_v60 = vrot.slane %v108_v46, 2  ;;  %v406_v61 = vrot.slane %v108_v46, 6 }
 0x11e   :  { %v121_v40 = vpop.f32.mrf.mxu2 }
 0x11f   :  { %v122_v41 = vadd.f32 %v121_v40, %v92_v37 }
 0x120   :  { %v109_v42 = vpop.f32.mrf.mxu1 }
 0x121   :  { %v110_v43 = vadd.f32 %v109_v42, %v91_v39  ;;  %v490_v45 = vrot.slane %v122_v41, 4  ;;  %v574_v47 = vrot.slane %v122_v41, 2  ;;  %v738_v48 = vrot.slane %v122_v41, 6 }
 0x123   :  { %v2285_v49 = vsel %vm159_vm1, %v110_v43, %v490_v45  ;;  %v572_v50 = vrot.slane %v110_v43, 2  ;;  %v655_v51 = vrot.slane %v110_v43, 4  ;;  %v736_v52 = vrot.slane %v110_v43, 6 }
 0x125   :  { %v2289_v53 = vsel %vm159_vm1, %v572_v50, %v574_v47  ;;  %v2292_v54 = vsel %vm159_vm1, %v655_v51, %v122_v41  ;;  %v2295_v55 = vsel %vm159_vm1, %v736_v52, %v738_v48 }
 0x126   :  { %v123_v56 = vpop.f32.mrf.mxu2 }
 0x127   :  { %v124_v57 = vadd.f32 %v123_v56, %v92_v37 }
 0x129   :  { %v157_v62 = vrot.slane %v124_v57, 4  ;;  %v244_v63 = vrot.slane %v124_v57, 2  ;;  %v2300_v0 = vsel %vm159_vm1, %v325_v58, %v124_v57  ;;  %v408_v1 = vrot.slane %v124_v57, 6 }
 0x12b   :  { %v160_v2 = vsel %vm159_vm1, %v108_v46, %v157_v62  ;;  %v246_v3 = vsel %vm159_vm1, %v242_v60, %v244_v63  ;;  %v2305_v4 = vsel %vm159_vm1, %v406_v61, %v408_v1 }
 0x12c   :  { %v162_v5 = vadd.f32 %v161_v59, %v160_v2 }
 0x12e   :  { %2004 = vtanh.f32 %v162_v5  ;;  %v1935_v7 = vmul.f32 -1.442695, %v162_v5 }
 0x130   :  { %2006 = vpow2.f32 %v1935_v7 }
 0x134   :  { %v2005_v6 = vpop.eup %2004 }
 0x135   :  { %185 = vrot.lane.b32.xlu0 %v2005_v6, %s2218_s0 }
 0x136   :  { %v2007_v8 = vpop.eup %2006 }
 0x137   :  { %v166_v9 = vadd.f32 1.0, %v2007_v8 }
 0x139   :  { %2008 = vrcp.f32 %v166_v9  ;;  %v178_v17 = vand.u32 2147483648, %v166_v9  ;;  %vm172_vm4 = vweird.f32 %v166_v9  ;;  %v176_v18 = vand.u32 2147483647, %v166_v9 }
 0x13b   :  { %v179_v23 = vor.u32 1.1754944e-38, %v178_v17  ;;  %vm177_vm6 = vcmp.eq.f32.partialorder %v176_v18, 8.507059e+37 }
 0x13f   :  { %v2009_v10 = vpop.eup %2008 }
 0x140   :  { %v168_v11 = vmul.f32 %v2009_v10, %v166_v9  ;;  %vm173_vm3 = vweird.f32 %v2009_v10 }
 0x141   :  { %vm174_vm5 = vmor %vm172_vm4, %vm173_vm3 }
 0x142   :  { %v169_v13 = vsub.f32 1.0, %v168_v11 }
 0x144   :  { %v170_v14 = vmul.f32 %v2009_v10, %v169_v13 }
 0x146   :  { %v171_v16 = vadd.f32 %v2009_v10, %v170_v14 }
 0x148   :  { %v175_v20 = vsel %vm174_vm5, %v2009_v10, %v171_v16 }
 0x149   :  { %v180_v25 = vsel %vm177_vm6, %v179_v23, %v175_v20 }
 0x14a   :  { %v183_v27 = vmul.f32 0.0, %v180_v25 }
 0x1a7   :  { %v186_v24 = vpop.permute.xlu0 %185 }
 0x1a8   :  { %v188_v26 = vmul.f32 %v186_v24, %v180_v25 }
 0x1aa   :  { %190 = vrot.lane.b32.xlu0 %v188_v26, %s2219_s19 }
 0x21c   :  { %v191_v28 = vpop.permute.xlu0 %190 }
 0x21d   :  { %v193_v29 = vadd.f32 %v191_v28, %v183_v27 }
 0x21f   :  { %2010 = vtanh.f32 %v193_v29 }
 0x225   :  { %v2011_v30 = vpop.eup %2010 }
 0x226   :  { %196 = vrot.lane.b32.xlu1 %v2011_v30, %s2218_s0 }
 0x298   :  { %v197_v31 = vpop.permute.xlu1 %196 }
 0x299   :  { %v2310_v32 = vmul.f32 %v197_v31, %v180_v25 }
 0x29b   :  { %v208_v33 = vpack.c.bf16 %v2310_v32, %v2310_v32 }
 0x29d   :  { %210 = vrot.lane.b32.xlu1 %v208_v33, %s2219_s19 }
 0x30f   :  { %v211_v34 = vpop.permute.xlu1 %210 }
 0x310   :  { %1936 = vmatmul.msk.bf16.vlgmr.msrb.gmra.mxu1 %vm126_vm7, %v211_v34  ;;  %1937 = vmatmul.msk.bf16.vlgmr.msrb.gmra.mxu2 %vm126_vm7, %v211_v34 }
 0x311   :  { %564 = vmatpush.bf16.msrb.mxu2 %v2254_v19  ;;  %551 = vmatpush.bf16.msrb.mxu1 %v2247_v12 }
 0x315   :  { %565 = vmatpush.bf16.msrb.mxu2 %v2260_v22  ;;  %552 = vmatpush.bf16.msrb.mxu1 %v2251_v15 }
 0x38d   :  { %v224_v35 = vpop.f32.mrf.mxu1 }
 0x393   :  { %v237_v36 = vpop.f32.mrf.mxu2 }
 0x394   :  { %v247_v37 = vsel %vm68_vm2, %v224_v35, %v237_v36 }
 0x395   :  { %v248_v38 = vadd.f32 %v247_v37, %v246_v3  ;;  %v226_v39 = vpop.f32.mrf.mxu1 }
 0x397   :  { %2012 = vtanh.f32 %v248_v38  ;;  %v1938_v42 = vmul.f32 -1.442695, %v248_v38 }
 0x399   :  { %2014 = vpow2.f32 %v1938_v42 }
 0x39b   :  { %v239_v40 = vpop.f32.mrf.mxu2 }
 0x39d   :  { %v2013_v41 = vpop.eup %2012 }
 0x39e   :  { %271 = vrot.lane.b32.xlu2 %v2013_v41, %s2218_s0 }
 0x39f   :  { %v2015_v43 = vpop.eup %2014 }
 0x3a0   :  { %v252_v45 = vadd.f32 1.0, %v2015_v43 }
 0x3a2   :  { %2016 = vrcp.f32 %v252_v45  ;;  %v264_v52 = vand.u32 2147483648, %v252_v45  ;;  %vm258_vm9 = vweird.f32 %v252_v45  ;;  %v262_v56 = vand.u32 2147483647, %v252_v45 }
 0x3a4   :  { %v265_v58 = vor.u32 1.1754944e-38, %v264_v52  ;;  %vm263_vm11 = vcmp.eq.f32.partialorder %v262_v56, 8.507059e+37 }
 0x3a8   :  { %v2017_v46 = vpop.eup %2016 }
 0x3a9   :  { %v254_v47 = vmul.f32 %v2017_v46, %v252_v45  ;;  %vm259_vm8 = vweird.f32 %v2017_v46 }
 0x3aa   :  { %vm260_vm10 = vmor %vm258_vm9, %vm259_vm8 }
 0x3ab   :  { %v255_v48 = vsub.f32 1.0, %v254_v47 }
 0x3ad   :  { %v256_v50 = vmul.f32 %v2017_v46, %v255_v48 }
 0x3af   :  { %v257_v51 = vadd.f32 %v2017_v46, %v256_v50 }
 0x3b1   :  { %v261_v57 = vsel %vm260_vm10, %v2017_v46, %v257_v51 }
 0x3b2   :  { %v266_v60 = vsel %vm263_vm11, %v265_v58, %v261_v57 }
 0x3b3   :  { %v269_v62 = vmul.f32 %v266_v60, %v193_v29 }
 0x3f8   :  { %v272_v59 = vpop.permute.xlu2 %271 }
 0x3f9   :  { %v274_v61 = vmul.f32 %v272_v59, %v266_v60 }
 0x3fb   :  { %276 = vrot.lane.b32.xlu2 %v274_v61, %s2219_s19 }
 0x455   :  { %v277_v63 = vpop.permute.xlu2 %276 }
 0x456   :  { %v279_v1 = vadd.f32 %v277_v63, %v269_v62 }
 0x458   :  { %2018 = vtanh.f32 %v279_v1 }
 0x45e   :  { %v2019_v2 = vpop.eup %2018 }
 0x45f   :  { %282 = vrot.lane.b32.xlu0 %v2019_v2, %s2218_s0 }
 0x4d1   :  { %v283_v3 = vpop.permute.xlu0 %282 }
 0x4d2   :  { %v2326_v5 = vmul.f32 %v283_v3, %v266_v60 }
 0x4d4   :  { %v292_v6 = vpack.c.bf16 %v2326_v5, %v2326_v5 }
 0x4d6   :  { %294 = vrot.lane.b32.xlu1 %v292_v6, %s2219_s19 }
 0x548   :  { %v295_v7 = vpop.permute.xlu1 %294 }
 0x549   :  { %1939 = vmatmul.msk.bf16.vlgmr.msrb.gmra.mxu3 %vm126_vm7, %v295_v7  ;;  %1940 = vmatmul.msk.bf16.vlgmr.msra.gmra.mxu0 %vm126_vm7, %v295_v7 }
 0x54a   :  { %635 = vmatpush.bf16.msrb.mxu3 %v2247_v12  ;;  %648 = vmatpush.bf16.msra.mxu0 %v2254_v19 }
 0x54e   :  { %636 = vmatpush.bf16.msrb.mxu3 %v2251_v15  ;;  %649 = vmatpush.bf16.msra.mxu0 %v2260_v22 }
 0x5c6   :  { %v321_v8 = vpop.f32.mrf.mxu0 }
 0x5cc   :  { %v308_v9 = vpop.f32.mrf.mxu3 }
 0x5cd   :  { %v328_v10 = vsel %vm68_vm2, %v308_v9, %v321_v8 }
 0x5ce   :  { %v329_v11 = vadd.f32 %v328_v10, %v2300_v0  ;;  %v323_v13 = vpop.f32.mrf.mxu0 }
 0x5d0   :  { %2020 = vtanh.f32 %v329_v11  ;;  %v1941_v17 = vmul.f32 -1.442695, %v329_v11 }
 0x5d2   :  { %2022 = vpow2.f32 %v1941_v17 }
 0x5d4   :  { %v310_v14 = vpop.f32.mrf.mxu3 }
 0x5d6   :  { %v2021_v16 = vpop.eup %2020 }
 0x5d7   :  { %352 = vrot.lane.b32.xlu2 %v2021_v16, %s2218_s0 }
 0x5d8   :  { %v2023_v18 = vpop.eup %2022 }
 0x5d9   :  { %v333_v20 = vadd.f32 1.0, %v2023_v18 }
 0x5db   :  { %2024 = vrcp.f32 %v333_v20  ;;  %v345_v28 = vand.u32 2147483648, %v333_v20  ;;  %vm339_vm13 = vweird.f32 %v333_v20  ;;  %v343_v0 = vand.u32 2147483647, %v333_v20 }
 0x5dd   :  { %v346_v30 = vor.u32 1.1754944e-38, %v345_v28  ;;  %vm344_vm15 = vcmp.eq.f32.partialorder %v343_v0, 8.507059e+37 }
 0x5e1   :  { %v2025_v23 = vpop.eup %2024 }
 0x5e2   :  { %v335_v24 = vmul.f32 %v2025_v23, %v333_v20  ;;  %vm340_vm12 = vweird.f32 %v2025_v23 }
 0x5e3   :  { %vm341_vm14 = vmor %vm339_vm13, %vm340_vm12 }
 0x5e4   :  { %v336_v25 = vsub.f32 1.0, %v335_v24 }
 0x5e6   :  { %v337_v26 = vmul.f32 %v2025_v23, %v336_v25 }
 0x5e8   :  { %v338_v27 = vadd.f32 %v2025_v23, %v337_v26 }
 0x5ea   :  { %v342_v29 = vsel %vm341_vm14, %v2025_v23, %v338_v27 }
 0x5eb   :  { %v347_v33 = vsel %vm344_vm15, %v346_v30, %v342_v29 }
 0x5ec   :  { %v350_v35 = vmul.f32 %v347_v33, %v279_v1 }
 0x631   :  { %v353_v31 = vpop.permute.xlu2 %352 }
 0x632   :  { %v355_v34 = vmul.f32 %v353_v31, %v347_v33 }
 0x634   :  { %357 = vrot.lane.b32.xlu0 %v355_v34, %s2219_s19 }
 0x6a6   :  { %v358_v36 = vpop.permute.xlu0 %357 }
 0x6a7   :  { %v360_v37 = vadd.f32 %v358_v36, %v350_v35 }
 0x6a9   :  { %2026 = vtanh.f32 %v360_v37 }
 0x6af   :  { %v2027_v38 = vpop.eup %2026 }
 0x6b0   :  { %363 = vrot.lane.b32.xlu1 %v2027_v38, %s2218_s0 }
 0x722   :  { %v364_v39 = vpop.permute.xlu1 %363 }
 0x723   :  { %v2343_v40 = vmul.f32 %v364_v39, %v347_v33 }
 0x725   :  { %v373_v41 = vpack.c.bf16 %v2343_v40, %v2343_v40 }
 0x727   :  { %375 = vrot.lane.b32.xlu2 %v373_v41, %s2219_s19 }
 0x781   :  { %v376_v42 = vpop.permute.xlu2 %375 }
 0x782   :  { %1942 = vmatmul.msk.bf16.vlgmr.msra.gmra.mxu1 %vm126_vm7, %v376_v42  ;;  %1943 = vmatmul.msk.bf16.vlgmr.msra.gmra.mxu2 %vm126_vm7, %v376_v42 }
 0x783   :  { %729 = vmatpush.bf16.msra.mxu2 %v2254_v19  ;;  %716 = vmatpush.bf16.msra.mxu1 %v2247_v12 }
 0x787   :  { %730 = vmatpush.bf16.msra.mxu2 %v2260_v22  ;;  %717 = vmatpush.bf16.msra.mxu1 %v2251_v15 }
 0x7ff   :  { %v389_v43 = vpop.f32.mrf.mxu1 }
 0x805   :  { %v402_v45 = vpop.f32.mrf.mxu2 }
 0x806   :  { %v411_v46 = vsel %vm68_vm2, %v389_v43, %v402_v45 }
 0x807   :  { %v412_v47 = vadd.f32 %v411_v46, %v2305_v4  ;;  %v391_v48 = vpop.f32.mrf.mxu1 }
 0x809   :  { %2028 = vtanh.f32 %v412_v47  ;;  %v1944_v19 = vmul.f32 -1.442695, %v412_v47 }
 0x80b   :  { %2030 = vpow2.f32 %v1944_v19 }
 0x80d   :  { %v404_v50 = vpop.f32.mrf.mxu2 }
 0x80f   :  { %v2029_v51 = vpop.eup %2028 }
 0x810   :  { %435 = vrot.lane.b32.xlu0 %v2029_v51, %s2218_s0 }
 0x811   :  { %v2031_v12 = vpop.eup %2030 }
 0x812   :  { %v416_v52 = vadd.f32 1.0, %v2031_v12 }
 0x814   :  { %2032 = vrcp.f32 %v416_v52  ;;  %v428_v59 = vand.u32 2147483648, %v416_v52  ;;  %vm422_vm3 = vweird.f32 %v416_v52  ;;  %v426_v4 = vand.u32 2147483647, %v416_v52 }
 0x816   :  { %v429_v61 = vor.u32 1.1754944e-38, %v428_v59  ;;  %vm427_vm5 = vcmp.eq.f32.partialorder %v426_v4, 8.507059e+37 }
 0x81a   :  { %v2033_v22 = vpop.eup %2032 }
 0x81b   :  { %v418_v15 = vmul.f32 %v2033_v22, %v416_v52  ;;  %vm423_vm0 = vweird.f32 %v2033_v22 }
 0x81c   :  { %vm424_vm4 = vmor %vm422_vm3, %vm423_vm0 }
 0x81d   :  { %v419_v56 = vsub.f32 1.0, %v418_v15 }
 0x81f   :  { %v420_v57 = vmul.f32 %v2033_v22, %v419_v56 }
 0x821   :  { %v421_v58 = vadd.f32 %v2033_v22, %v420_v57 }
 0x823   :  { %v425_v60 = vsel %vm424_vm4, %v2033_v22, %v421_v58 }
 0x824   :  { %v430_v63 = vsel %vm427_vm5, %v429_v61, %v425_v60 }
 0x825   :  { %v433_v2 = vmul.f32 %v430_v63, %v360_v37 }
 0x882   :  { %v436_v62 = vpop.permute.xlu0 %435 }
 0x883   :  { %v438_v1 = vmul.f32 %v436_v62, %v430_v63 }
 0x885   :  { %440 = vrot.lane.b32.xlu1 %v438_v1, %s2219_s19 }
 0x8f7   :  { %v441_v3 = vpop.permute.xlu1 %440 }
 0x8f8   :  { %v443_v6 = vadd.f32 %v441_v3, %v433_v2 }
 0x8fa   :  { %2034 = vtanh.f32 %v443_v6 }
 0x900   :  { %v2035_v7 = vpop.eup %2034 }
 0x901   :  { %446 = vrot.lane.b32.xlu2 %v2035_v7, %s2218_s0 }
 0x95b   :  { %v447_v8 = vpop.permute.xlu2 %446 }
 0x95c   :  { %v2360_v9 = vmul.f32 %v447_v8, %v430_v63 }
 0x95e   :  { %v456_v10 = vpack.c.bf16 %v2360_v9, %v2360_v9 }
 0x960   :  { %458 = vrot.lane.b32.xlu0 %v456_v10, %s2219_s19 }
 0x9d2   :  { %v459_v11 = vpop.permute.xlu0 %458 }
 0x9d3   :  { %1945 = vmatmul.msk.bf16.vlgmr.msra.gmra.mxu3 %vm126_vm7, %v459_v11  ;;  %1946 = vmatmul.msk.bf16.vlgmr.msrb.gmra.mxu0 %vm126_vm7, %v459_v11 }
 0xa50   :  { %v485_v13 = vpop.f32.mrf.mxu0 }
 0xa56   :  { %v472_v14 = vpop.f32.mrf.mxu3 }
 0xa57   :  { %v493_v16 = vsel %vm68_vm2, %v472_v14, %v485_v13 }
 0xa58   :  { %v494_v17 = vadd.f32 %v493_v16, %v2285_v49  ;;  %v487_v18 = vpop.f32.mrf.mxu0 }
 0xa5a   :  { %2036 = vtanh.f32 %v494_v17  ;;  %v1947_v24 = vmul.f32 -1.442695, %v494_v17 }
 0xa5c   :  { %2038 = vpow2.f32 %v1947_v24 }
 0xa5e   :  { %v474_v20 = vpop.f32.mrf.mxu3 }
 0xa60   :  { %v2037_v23 = vpop.eup %2036 }
 0xa61   :  { %517 = vrot.lane.b32.xlu1 %v2037_v23, %s2218_s0 }
 0xa62   :  { %v2039_v25 = vpop.eup %2038 }
 0xa63   :  { %v498_v26 = vadd.f32 1.0, %v2039_v25 }
 0xa65   :  { %2040 = vrcp.f32 %v498_v26  ;;  %v510_v31 = vand.u32 2147483648, %v498_v26  ;;  %vm504_vm8 = vweird.f32 %v498_v26  ;;  %v508_v49 = vand.u32 2147483647, %v498_v26 }
 0xa67   :  { %v511_v34 = vor.u32 1.1754944e-38, %v510_v31  ;;  %vm509_vm10 = vcmp.eq.f32.partialorder %v508_v49, 8.507059e+37 }
 0xa6b   :  { %v2041_v27 = vpop.eup %2040 }
 0xa6c   :  { %v500_v28 = vmul.f32 %v2041_v27, %v498_v26  ;;  %vm505_vm6 = vweird.f32 %v2041_v27 }
 0xa6d   :  { %vm506_vm9 = vmor %vm504_vm8, %vm505_vm6 }
 0xa6e   :  { %v501_v0 = vsub.f32 1.0, %v500_v28 }
 0xa70   :  { %v502_v29 = vmul.f32 %v2041_v27, %v501_v0 }
 0xa72   :  { %v503_v30 = vadd.f32 %v2041_v27, %v502_v29 }
 0xa74   :  { %v507_v33 = vsel %vm506_vm9, %v2041_v27, %v503_v30 }
 0xa75   :  { %v512_v36 = vsel %vm509_vm10, %v511_v34, %v507_v33  ;;  %vm204_vm10 = vcmask 254976  }
 0xa76   :  { %v515_v38 = vmul.f32 %v512_v36, %v443_v6 }
 0xad3   :  { %v518_v35 = vpop.permute.xlu1 %517 }
 0xad4   :  { %v520_v37 = vmul.f32 %v518_v35, %v512_v36 }
 0xad6   :  { %522 = vrot.lane.b32.xlu2 %v520_v37, %s2219_s19 }
 0xb30   :  { %v523_v39 = vpop.permute.xlu2 %522 }
 0xb31   :  { %v525_v41 = vadd.f32 %v523_v39, %v515_v38 }
 0xb33   :  { %2042 = vtanh.f32 %v525_v41 }
 0xb39   :  { %v2043_v42 = vpop.eup %2042 }
 0xb3a   :  { %528 = vrot.lane.b32.xlu0 %v2043_v42, %s2218_s0 }
 0xbac   :  { %v529_v43 = vpop.permute.xlu0 %528 }
 0xbad   :  { %v2373_v45 = vmul.f32 %v529_v43, %v512_v36 }
 0xbaf   :  { %v538_v46 = vpack.c.bf16 %v2373_v45, %v2373_v45 }
 0xbb1   :  { %540 = vrot.lane.b32.xlu1 %v538_v46, %s2219_s19 }
 0xc23   :  { %v541_v47 = vpop.permute.xlu1 %540 }
 0xc24   :  { %1948 = vmatmul.msk.bf16.vlgmr.msrb.gmra.mxu1 %vm126_vm7, %v541_v47  ;;  %1949 = vmatmul.msk.bf16.vlgmr.msrb.gmra.mxu2 %vm126_vm7, %v541_v47 }
 0xca1   :  { %v554_v48 = vpop.f32.mrf.mxu1 }
 0xca7   :  { %v567_v50 = vpop.f32.mrf.mxu2 }
 0xca8   :  { %v577_v51 = vsel %vm68_vm2, %v554_v48, %v567_v50 }
 0xca9   :  { %v578_v19 = vadd.f32 %v577_v51, %v2289_v53  ;;  %v556_v12 = vpop.f32.mrf.mxu1 }
 0xcab   :  { %2044 = vtanh.f32 %v578_v19  ;;  %v1950_v15 = vmul.f32 -1.442695, %v578_v19 }
 0xcad   :  { %2046 = vpow2.f32 %v1950_v15 }
 0xcaf   :  { %v569_v52 = vpop.f32.mrf.mxu2 }
 0xcb1   :  { %v2045_v22 = vpop.eup %2044 }
 0xcb2   :  { %601 = vrot.lane.b32.xlu2 %v2045_v22, %s2218_s0 }
 0xcb3   :  { %v2047_v56 = vpop.eup %2046 }
 0xcb4   :  { %v582_v57 = vadd.f32 1.0, %v2047_v56 }
 0xcb6   :  { %2048 = vrcp.f32 %v582_v57  ;;  %v594_v62 = vand.u32 2147483648, %v582_v57  ;;  %vm588_vm12 = vweird.f32 %v582_v57  ;;  %v592_v53 = vand.u32 2147483647, %v582_v57 }
 0xcb8   :  { %v595_v1 = vor.u32 1.1754944e-38, %v594_v62  ;;  %vm593_vm14 = vcmp.eq.f32.partialorder %v592_v53, 8.507059e+37 }
 0xcbc   :  { %v2049_v58 = vpop.eup %2048 }
 0xcbd   :  { %v584_v59 = vmul.f32 %v2049_v58, %v582_v57  ;;  %vm589_vm11 = vweird.f32 %v2049_v58 }
 0xcbe   :  { %vm590_vm13 = vmor %vm588_vm12, %vm589_vm11  ;;  %vm206_vm11 = vcmask 257026   ;;  %vm844_vm12 = vcmask 523264  }
 0xcbf   :  { %v585_v4 = vsub.f32 1.0, %v584_v59 }
 0xcc1   :  { %v586_v60 = vmul.f32 %v2049_v58, %v585_v4 }
 0xcc3   :  { %v587_v61 = vadd.f32 %v2049_v58, %v586_v60 }
 0xcc5   :  { %v591_v63 = vsel %vm590_vm13, %v2049_v58, %v587_v61 }
 0xcc6   :  { %v596_v3 = vsel %vm593_vm14, %v595_v1, %v591_v63 }
 0xcc7   :  { %v599_v7 = vmul.f32 %v596_v3, %v525_v41 }
 0xd0c   :  { %v602_v2 = vpop.permute.xlu2 %601 }
 0xd0d   :  { %v604_v6 = vmul.f32 %v602_v2, %v596_v3 }
 0xd0f   :  { %606 = vrot.lane.b32.xlu0 %v604_v6, %s2219_s19 }
 0xd81   :  { %v607_v8 = vpop.permute.xlu0 %606 }
 0xd82   :  { %v609_v10 = vadd.f32 %v607_v8, %v599_v7 }
 0xd84   :  { %2050 = vtanh.f32 %v609_v10 }
 0xd8a   :  { %v2051_v11 = vpop.eup %2050 }
 0xd8b   :  { %612 = vrot.lane.b32.xlu1 %v2051_v11, %s2218_s0 }
 0xdfd   :  { %v613_v13 = vpop.permute.xlu1 %612 }
 0xdfe   :  { %v2386_v14 = vmul.f32 %v613_v13, %v596_v3 }
 0xe00   :  { %v622_v16 = vpack.c.bf16 %v2386_v14, %v2386_v14 }
 0xe02   :  { %624 = vrot.lane.b32.xlu2 %v622_v16, %s2219_s19 }
 0xe5c   :  { %v625_v17 = vpop.permute.xlu2 %624 }
 0xe5d   :  { %1951 = vmatmul.msk.bf16.vlgmr.msrb.gmra.mxu3 %vm126_vm7, %v625_v17  ;;  %1952 = vmatmul.msk.bf16.vlgmr.msra.gmra.mxu0 %vm126_vm7, %v625_v17 }
 0xeda   :  { %v651_v18 = vpop.f32.mrf.mxu0 }
 0xee0   :  { %v638_v20 = vpop.f32.mrf.mxu3 }
 0xee1   :  { %v658_v23 = vsel %vm68_vm2, %v638_v20, %v651_v18 }
 0xee2   :  { %v659_v24 = vadd.f32 %v658_v23, %v2292_v54  ;;  %v653_v25 = vpop.f32.mrf.mxu0 }
 0xee4   :  { %2052 = vtanh.f32 %v659_v24  ;;  %v1953_v28 = vmul.f32 -1.442695, %v659_v24 }
 0xee6   :  { %2054 = vpow2.f32 %v1953_v28 }
 0xee8   :  { %v640_v26 = vpop.f32.mrf.mxu3 }
 0xee9   :  { %v813_v26 = vld [vmem:[#allocation4 + $0x108] sm:$0xff] }
 0xeea   :  { %v2053_v27 = vpop.eup %2052 }
 0xeeb   :  { %682 = vrot.lane.b32.xlu0 %v2053_v27, %s2218_s0  ;;  %v815_v27 = vld [vmem:[#allocation4 + $0x118] sm:$0xff] }
 0xeec   :  { %v2055_v0 = vpop.eup %2054  ;;  %v823_v28 = vpack.c.bf16 %v815_v27, %v813_v26 }
 0xeed   :  { %v663_v29 = vadd.f32 1.0, %v2055_v0  ;;  %v814_v0 = vld [vmem:[#allocation4 + $0x110] sm:$0xff] }
 0xeee   :  { %866 = vmatpush.bf16.msrb.mxu0 %v823_v28 }
 0xeef   :  { %2056 = vrcp.f32 %v663_v29  ;;  %v675_v35 = vand.u32 2147483648, %v663_v29  ;;  %vm669_vm0 = vweird.f32 %v663_v29  ;;  %v673_v54 = vand.u32 2147483647, %v663_v29 }
 0xef1   :  { %v676_v37 = vor.u32 1.1754944e-38, %v675_v35  ;;  %vm674_vm4 = vcmp.eq.f32.partialorder %v673_v54, 8.507059e+37  ;;  %v831_v35 = vld [vmem:[#allocation4 + $0x158] sm:$0xff] }
 0xef5   :  { %v2057_v30 = vpop.eup %2056 }
 0xef6   :  { %v665_v31 = vmul.f32 %v2057_v30, %v663_v29  ;;  %vm670_vm15 = vweird.f32 %v2057_v30  ;;  %v811_v29 = vld [vmem:[#allocation4 + $0xf8] sm:$0xff] }
 0xef7   :  { %vm671_vm3 = vmor %vm669_vm0, %vm670_vm15 }
 0xef8   :  { %v666_v49 = vsub.f32 1.0, %v665_v31  ;;  %v808_v31 = vld [vmem:[#allocation4 + $0xe0] sm:$0xff] }
 0xefa   :  { %v667_v33 = vmul.f32 %v2057_v30, %v666_v49  ;;  %v810_v49 = vld [vmem:[#allocation4 + $0xf0] sm:$0xff] }
 0xefb   :  { %v820_v54 = vpack.c.bf16 %v810_v49, %v808_v31 }
 0xefc   :  { %v668_v34 = vadd.f32 %v2057_v30, %v667_v33  ;;  %v829_v33 = vld [vmem:[#allocation4 + $0x148] sm:$0xff] }
 0xefe   :  { %v672_v36 = vsel %vm671_vm3, %v2057_v30, %v668_v34 }
 0xeff   :  { %v677_v39 = vsel %vm674_vm4, %v676_v37, %v672_v36  ;;  %v2436_v36 = vpack.c.bf16 %v831_v35, %v829_v33  ;;  %v805_v37 = vld [vmem:[#allocation4 + $0xc8] sm:$0xff] }
 0xf00   :  { %v680_v42 = vmul.f32 %v677_v39, %v609_v10 }
 0xf01   :  { %895 = vmatpush.bf16.msrb.mxu2 %v2436_v36 }
 0xf5d   :  { %v683_v38 = vpop.permute.xlu0 %682 }
 0xf5e   :  { %v685_v41 = vmul.f32 %v683_v38, %v677_v39  ;;  %v807_v38 = vld [vmem:[#allocation4 + $0xd8] sm:$0xff] }
 0xf60   :  { %687 = vrot.lane.b32.xlu1 %v685_v41, %s2219_s19  ;;  %v806_v41 = vld [vmem:[#allocation4 + $0xd0] sm:$0xff] }
 0xfd2   :  { %v688_v43 = vpop.permute.xlu1 %687 }
 0xfd3   :  { %v690_v46 = vadd.f32 %v688_v43, %v680_v42  ;;  %v819_v42 = vpack.c.bf16 %v807_v38, %v805_v37 }
 0xfd5   :  { %2058 = vtanh.f32 %v690_v46 }
 0xfdb   :  { %v2059_v47 = vpop.eup %2058 }
 0xfdc   :  { %693 = vrot.lane.b32.xlu2 %v2059_v47, %s2218_s0 }
0x1036   :  { %v694_v48 = vpop.permute.xlu2 %693 }
0x1037   :  { %v696_v50 = vmul.f32 %v694_v48, %v677_v39  ;;  %v804_v39 = vld [vmem:[#allocation4 + $0xc0] sm:$0xff] }
0x1038   :  { %v818_v43 = vpack.c.bf16 %v806_v41, %v804_v39 }
0x1039   :  { %v703_v51 = vpack.c.bf16 %v696_v50, %v696_v50 }
0x103b   :  { %705 = vrot.lane.b32.xlu0 %v703_v51, %s2219_s19  ;;  %v825_v51 = vld [vmem:[#allocation4 + $0x128] sm:$0xff] }
0x10ad   :  { %v706_v19 = vpop.permute.xlu0 %705 }
0x10ae   :  { %1954 = vmatmul.msk.bf16.vlgmr.msra.gmra.mxu1 %vm126_vm7, %v706_v19  ;;  %1955 = vmatmul.msk.bf16.vlgmr.msra.gmra.mxu2 %vm126_vm7, %v706_v19  ;;  %v827_v19 = vld [vmem:[#allocation4 + $0x138] sm:$0xff] }
0x112b   :  { %v719_v12 = vpop.f32.mrf.mxu1 }
0x1131   :  { %v732_v52 = vpop.f32.mrf.mxu2 }
0x1132   :  { %v741_v22 = vsel %vm68_vm2, %v719_v12, %v732_v52  ;;  %v2442_v12 = vpack.c.bf16 %v827_v19, %v825_v51  ;;  %v801_v52 = vld [vmem:[#allocation4 + $0xa8] sm:$0xff] }
0x1133   :  { %v742_v15 = vadd.f32 %v741_v22, %v2295_v55  ;;  %v721_v56 = vpop.f32.mrf.mxu1  ;;  %v803_v22 = vld [vmem:[#allocation4 + $0xb8] sm:$0xff] }
0x1134   :  { %896 = vmatpush.bf16.msrb.mxu2 %v2442_v12  ;;  %v817_v56 = vpack.c.bf16 %v803_v22, %v801_v52 }
0x1135   :  { %2060 = vtanh.f32 %v742_v15  ;;  %v1956_v59 = vmul.f32 -1.442695, %v742_v15  ;;  %v828_v15 = vld [vmem:[#allocation4 + $0x140] sm:$0xff] }
0x1137   :  { %2062 = vpow2.f32 %v1956_v59  ;;  %v802_v59 = vld [vmem:[#allocation4 + $0xb0] sm:$0xff]  ;;  %897 = vmatmul.bf16.vlgmr.msrb.gmra.mxu2 %v2217_v21 }
0x1138   :  { %1061 = vmatpush.bf16.msra.mxu2 %v2436_v36 }
0x1139   :  { %v734_v57 = vpop.f32.mrf.mxu2 }
0x113a   :  { %v830_v57 = vld [vmem:[#allocation4 + $0x150] sm:$0xff] }
0x113b   :  { %v2061_v58 = vpop.eup %2060 }
0x113c   :  { %765 = vrot.lane.b32.xlu1 %v2061_v58, %s2218_s0  ;;  %v800_v58 = vld [vmem:[#allocation4 + $0xa0] sm:$0xff]  ;;  %1062 = vmatpush.bf16.msra.mxu2 %v2442_v12 }
0x113d   :  { %v2063_v4 = vpop.eup %2062 }
0x113e   :  { %v746_v60 = vadd.f32 1.0, %v2063_v4  ;;  %v2445_v4 = vpack.c.bf16 %v830_v57, %v828_v15 }
0x1140   :  { %2064 = vrcp.f32 %v746_v60  ;;  %v758_v1 = vand.u32 2147483648, %v746_v60  ;;  %vm752_vm6 = vweird.f32 %v746_v60  ;;  %v756_v2 = vand.u32 2147483647, %v746_v60  ;;  %882 = vmatpush.bf16.msrb.mxu1 %v2445_v4  ;;  %1225 = vmatpush.bf16.msrb.mxu2 %v2436_v36 }
0x1142   :  { %v759_v3 = vor.u32 1.1754944e-38, %v758_v1  ;;  %vm757_vm9 = vcmp.eq.f32.partialorder %v756_v2, 8.507059e+37 }
0x1144   :  { %201 = vrot.lane.b32.xlu1 %v2310_v32, %s2219_s19  ;;  %1226 = vmatpush.bf16.msrb.mxu2 %v2442_v12 }
0x1146   :  { %v2065_v55 = vpop.eup %2064 }
0x1147   :  { %v748_v61 = vmul.f32 %v2065_v55, %v746_v60  ;;  %vm753_vm5 = vweird.f32 %v2065_v55  ;;  %v816_v60 = vpack.c.bf16 %v802_v59, %v800_v58 }
0x1148   :  { %vm754_vm8 = vmor %vm752_vm6, %vm753_vm5 }
0x1149   :  { %v749_v62 = vsub.f32 1.0, %v748_v61  ;;  %v826_v61 = vld [vmem:[#allocation4 + $0x130] sm:$0xff] }
0x114b   :  { %v750_v53 = vmul.f32 %v2065_v55, %v749_v62 }
0x114c   :  { %451 = vrot.lane.b32.xlu1 %v2360_v9, %s2219_s19 }
0x114d   :  { %v751_v63 = vadd.f32 %v2065_v55, %v750_v53 }
0x114f   :  { %v755_v32 = vsel %vm754_vm8, %v2065_v55, %v751_v63  ;;  %v824_v55 = vld [vmem:[#allocation4 + $0x120] sm:$0xff] }
0x1150   :  { %v760_v6 = vsel %vm757_vm9, %v759_v3, %v755_v32  ;;  %v2450_v62 = vpack.c.bf16 %v826_v61, %v824_v55 }
0x1151   :  { %v763_v13 = vmul.f32 %v760_v6, %v690_v46 }
0x1152   :  { %883 = vmatpush.bf16.msrb.mxu1 %v2450_v62 }
0x1154   :  { %698 = vrot.lane.b32.xlu1 %v696_v50, %s2219_s19 }
0x1155   :  { %884 = vmatmul.bf16.vlgmr.msrb.gmra.mxu1 %v2217_v21 }
0x1156   :  { %1048 = vmatpush.bf16.msra.mxu1 %v2445_v4 }
0x115a   :  { %1049 = vmatpush.bf16.msra.mxu1 %v2450_v62 }
0x115e   :  { %1212 = vmatpush.bf16.msrb.mxu1 %v2445_v4 }
0x1162   :  { %1213 = vmatpush.bf16.msrb.mxu1 %v2450_v62 }
0x11ae   :  { %v766_v9 = vpop.permute.xlu1 %765 }
0x11af   :  { %v768_v7 = vmul.f32 %v766_v9, %v760_v6 }
0x11b1   :  { %770 = vrot.lane.b32.xlu2 %v768_v7, %s2219_s19 }
0x11b6   :  { %v202_v8 = vpop.permute.xlu1 %201 }
0x11b7   :  { %205 = vst.msk [vmem:[#allocation2] sm:$0x3] %vm204_vm10, %v202_v8 }
0x11b8   :  { %207 = vst.msk [vmem:[#allocation3 + $0xc] sm:$0xc] %vm206_vm11, %v202_v8 }
0x11b9   :  { %287 = vrot.lane.b32.xlu2 %v2326_v5, %s2219_s19 }
0x11ba   :  { %v898_v7 = vpop.f32.mrf.mxu2 }
0x11be   :  { %v452_v10 = vpop.permute.xlu1 %451 }
0x11bf   :  { %454 = vst.msk [vmem:[#allocation2 + $0x6] sm:$0x3] %vm204_vm10, %v452_v10 }
0x11c0   :  { %455 = vst.msk [vmem:[#allocation3 + $0x6] sm:$0xc] %vm206_vm11, %v452_v10 }
0x11c1   :  { %533 = vrot.lane.b32.xlu2 %v2373_v45, %s2219_s19 }
0x11c2   :  { %v900_v10 = vpop.f32.mrf.mxu2 }
0x11c6   :  { %v699_v11 = vpop.permute.xlu1 %698 }
0x11c7   :  { %701 = vst.msk [vmem:[#allocation2 + $0xc] sm:$0x3] %vm204_vm10, %v699_v11 }
0x11c8   :  { %702 = vst.msk [vmem:[#allocation3] sm:$0xc] %vm206_vm11, %v699_v11  ;;  %v837_v11 = vld [vmem:[#allocation4 + $0x160] ss:$8 sm:$0x3] }
0x11d2   :  { %v885_v21 = vpop.f32.mrf.mxu1 }
0x11da   :  { %v887_v8 = vpop.f32.mrf.mxu1 }
0x120b   :  { %v771_v16 = vpop.permute.xlu2 %770 }
0x120c   :  { %v773_v17 = vadd.f32 %v771_v16, %v763_v13  ;;  %v841_v13 = vperm.slane %v837_v11, 1 }
0x120e   :  { %2066 = vtanh.f32 %v773_v17 }
0x1213   :  { %v288_v18 = vpop.permute.xlu2 %287 }
0x1214   :  { %v2067_v20 = vpop.eup %2066  ;;  %290 = vst.msk [vmem:[#allocation2 + $0x2] sm:$0x3] %vm204_vm10, %v288_v18 }
0x1215   :  { %291 = vst.msk [vmem:[#allocation3 + $0xa] sm:$0xc] %vm206_vm11, %v288_v18  ;;  %776 = vrot.lane.b32.xlu0 %v2067_v20, %s2218_s0  ;;  %v840_v18 = vperm.slane %v837_v11, 0 }
0x121b   :  { %v534_v5 = vpop.permute.xlu2 %533 }
0x121c   :  { %536 = vst.msk [vmem:[#allocation2 + $0x8] sm:$0x3] %vm204_vm10, %v534_v5 }
0x121d   :  { %537 = vst.msk [vmem:[#allocation3 + $0x4] sm:$0xc] %vm206_vm11, %v534_v5  ;;  %368 = vrot.lane.b32.xlu0 %v2343_v40, %s2219_s19  ;;  %v812_v40 = vld [vmem:[#allocation4 + $0x100] sm:$0xff] }
0x121e   :  { %v822_v30 = vpack.c.bf16 %v814_v0, %v812_v40 }
0x1220   :  { %852 = vmatpush.bf16.msra.mxu3 %v822_v30 }
0x1224   :  { %853 = vmatpush.bf16.msra.mxu3 %v820_v54 }
0x1225   :  { %617 = vrot.lane.b32.xlu0 %v2386_v14, %s2219_s19  ;;  %v809_v14 = vld [vmem:[#allocation4 + $0xe8] sm:$0xff] }
0x1226   :  { %v821_v34 = vpack.c.bf16 %v811_v29, %v809_v14 }
0x1228   :  { %867 = vmatpush.bf16.msrb.mxu0 %v821_v34  ;;  %854 = vmatpush.bf16.msra.mxu3 %v818_v43 }
0x122c   :  { %868 = vmatpush.bf16.msrb.mxu0 %v819_v42  ;;  %855 = vmatpush.bf16.msra.mxu3 %v816_v60 }
0x1230   :  { %869 = vmatpush.bf16.msrb.mxu0 %v817_v56  ;;  %964 = vmatpush.bf16.msrb.mxu3 %v2445_v4 }
0x1234   :  { %977 = vmatpush.bf16.msra.mxu0 %v2436_v36  ;;  %965 = vmatpush.bf16.msrb.mxu3 %v2450_v62 }
0x1238   :  { %978 = vmatpush.bf16.msra.mxu0 %v2442_v12 }
0x1287   :  { %v777_v45 = vpop.permute.xlu0 %776 }
0x1288   :  { %v779_v23 = vmul.f32 %v777_v45, %v760_v6 }
0x128a   :  { %781 = vrot.lane.b32.xlu2 %v779_v23, %s2219_s19 }
0x128f   :  { %v369_v24 = vpop.permute.xlu0 %368 }
0x1290   :  { %371 = vst.msk [vmem:[#allocation2 + $0x4] sm:$0x3] %vm204_vm10, %v369_v24 }
0x1291   :  { %372 = vst.msk [vmem:[#allocation3 + $0x8] sm:$0xc] %vm206_vm11, %v369_v24 }
0x1297   :  { %v618_v25 = vpop.permute.xlu0 %617  ;;  %v786_v2 = vld [vmem:[#allocation2] sm:$0xff] }
0x1298   :  { %620 = vst.msk [vmem:[#allocation2 + $0xa] sm:$0x3] %vm204_vm10, %v618_v25  ;;  %v789_v48 = vld [vmem:[#allocation3 + $0x8] sm:$0xff] }
0x1299   :  { %621 = vst.msk [vmem:[#allocation3 + $0x2] sm:$0xc] %vm206_vm11, %v618_v25  ;;  %v906_v25 = vsel %vm68_vm2, %v885_v21, %v898_v7 }
0x12e4   :  { %v782_v46 = vpop.permute.xlu2 %781 }
0x12e5   :  { %784 = vst.msk [vmem:[#allocation2 + $0xe] sm:$0x3] %vm204_vm10, %v782_v46 }
0x12e6   :  { %785 = vst.msk [vmem:[#allocation3 - $0x2] sm:$0xc] %vm206_vm11, %v782_v46 }
0x12ec   :  { %v787_v32 = vld [vmem:[#allocation2 + $0x8] sm:$0xff] }
0x12ed   :  { %v788_v47 = vld [vmem:[#allocation3] sm:$0xff] }
0x12ee   :  { %v1992_v50 = vpack.i.bf16 %v789_v48, %v788_v47 }
0x12f0   :  { %1993 = vrot.lane.b32.xlu0 %v1992_v50, %s2219_s19 }
0x1362   :  { %v1994_v53 = vpop.permute.xlu0 %1993 }
0x1363   :  { %v1996_v63 = vunpack.i.h.bf16 %v1994_v53  ;;  %v1995_v1 = vunpack.i.l.bf16 %v1994_v53 }
0x1365   :  { %v798_v3 = vsel %vm126_vm7, %v786_v2, %v1995_v1  ;;  %v799_v9 = vsel %vm126_vm7, %v787_v32, %v1996_v63 }
0x1366   :  { %v838_v6 = vpack.c.bf16 %v799_v9, %v798_v3 }
0x1368   :  { %1957 = vmatmul.msk.bf16.vlgmr.msra.gmra.mxu3 %vm844_vm12, %v838_v6  ;;  %1958 = vmatmul.msk.bf16.vlgmr.msrb.gmra.mxu0 %vm844_vm12, %v838_v6 }
0x1369   :  { %1129 = vmatpush.bf16.msra.mxu3 %v2445_v4  ;;  %1142 = vmatpush.bf16.msrb.mxu0 %v2436_v36 }
0x136d   :  { %1130 = vmatpush.bf16.msra.mxu3 %v2450_v62  ;;  %1143 = vmatpush.bf16.msrb.mxu0 %v2442_v12 }
0x13e5   :  { %v871_v16 = vpop.f32.mrf.mxu0 }
0x13e6   :  { %v872_v17 = vadd.f32 %v871_v16, %v841_v13 }
0x13e8   :  { %v1233_v35 = vrot.slane %v872_v17, 4  ;;  %v1317_v54 = vrot.slane %v872_v17, 2  ;;  %v1481_v37 = vrot.slane %v872_v17, 6 }
0x13eb   :  { %v857_v20 = vpop.f32.mrf.mxu3 }
0x13ec   :  { %v858_v5 = vadd.f32 %v857_v20, %v840_v18 }
0x13ed   :  { %v873_v45 = vpop.f32.mrf.mxu0 }
0x13ee   :  { %v874_v23 = vadd.f32 %v873_v45, %v841_v13  ;;  %v1068_v24 = vrot.slane %v858_v5, 4  ;;  %v985_v26 = vrot.slane %v858_v5, 2  ;;  %v1149_v27 = vrot.slane %v858_v5, 6 }
0x13f0   :  { %v903_v40 = vrot.slane %v874_v23, 4  ;;  %v987_v28 = vrot.slane %v874_v23, 2  ;;  %v2476_v0 = vsel %vm159_vm1, %v1068_v24, %v874_v23  ;;  %v1151_v14 = vrot.slane %v874_v23, 6 }
0x13f2   :  { %v905_v29 = vsel %vm159_vm1, %v858_v5, %v903_v40  ;;  %v989_v30 = vsel %vm159_vm1, %v985_v26, %v987_v28  ;;  %v2481_v31 = vsel %vm159_vm1, %v1149_v27, %v1151_v14 }
0x13f3   :  { %v907_v49 = vadd.f32 %v906_v25, %v905_v29  ;;  %v859_v33 = vpop.f32.mrf.mxu3 }
0x13f4   :  { %v860_v34 = vadd.f32 %v859_v33, %v840_v18 }
0x13f5   :  { %2068 = vtanh.f32 %v907_v49  ;;  %v1959_v50 = vmul.f32 -1.442695, %v907_v49 }
0x13f6   :  { %v2484_v38 = vsel %vm159_vm1, %v860_v34, %v1233_v35  ;;  %v1315_v39 = vrot.slane %v860_v34, 2  ;;  %v1398_v41 = vrot.slane %v860_v34, 4  ;;  %v1479_v42 = vrot.slane %v860_v34, 6 }
0x13f7   :  { %2070 = vpow2.f32 %v1959_v50 }
0x13f8   :  { %v2487_v43 = vsel %vm159_vm1, %v1315_v39, %v1317_v54  ;;  %v2490_v46 = vsel %vm159_vm1, %v1398_v41, %v872_v17  ;;  %v2493_v47 = vsel %vm159_vm1, %v1479_v42, %v1481_v37 }
0x13fb   :  { %v2069_v48 = vpop.eup %2068 }
0x13fc   :  { %930 = vrot.lane.b32.xlu1 %v2069_v48, %s2218_s0 }
0x13fd   :  { %v2071_v51 = vpop.eup %2070 }
0x13fe   :  { %v911_v19 = vadd.f32 1.0, %v2071_v51 }
0x1400   :  { %2072 = vrcp.f32 %v911_v19  ;;  %v923_v58 = vand.u32 2147483648, %v911_v19  ;;  %vm917_vm14 = vweird.f32 %v911_v19  ;;  %v921_v59 = vand.u32 2147483647, %v911_v19 }
0x1402   :  { %v924_v55 = vor.u32 1.1754944e-38, %v923_v58  ;;  %vm922_vm1 = vcmp.eq.f32.partialorder %v921_v59, 8.507059e+37 }
0x1406   :  { %v2073_v52 = vpop.eup %2072 }
0x1407   :  { %v913_v22 = vmul.f32 %v2073_v52, %v911_v19  ;;  %vm918_vm13 = vweird.f32 %v2073_v52 }
0x1408   :  { %vm919_vm15 = vmor %vm917_vm14, %vm918_vm13 }
0x1409   :  { %v914_v15 = vsub.f32 1.0, %v913_v22 }
0x140b   :  { %v915_v56 = vmul.f32 %v2073_v52, %v914_v15 }
0x140d   :  { %v916_v57 = vadd.f32 %v2073_v52, %v915_v56 }
0x140f   :  { %v920_v60 = vsel %vm919_vm15, %v2073_v52, %v916_v57 }
0x1410   :  { %v925_v53 = vsel %vm922_vm1, %v924_v55, %v920_v60 }
0x1411   :  { %v928_v1 = vmul.f32 0.0, %v925_v53 }
0x146e   :  { %v931_v61 = vpop.permute.xlu1 %930 }
0x146f   :  { %v933_v63 = vmul.f32 %v931_v61, %v925_v53 }
0x1471   :  { %935 = vrot.lane.b32.xlu2 %v933_v63, %s2219_s19 }
0x14cb   :  { %v936_v2 = vpop.permute.xlu2 %935 }
0x14cc   :  { %v938_v32 = vadd.f32 %v936_v2, %v928_v1 }
0x14ce   :  { %2074 = vtanh.f32 %v938_v32 }
0x14d4   :  { %v2075_v3 = vpop.eup %2074 }
0x14d5   :  { %941 = vrot.lane.b32.xlu0 %v2075_v3, %s2218_s0 }
0x1547   :  { %v942_v9 = vpop.permute.xlu0 %941 }
0x1548   :  { %v2498_v6 = vmul.f32 %v942_v9, %v925_v53 }
0x154a   :  { %v951_v21 = vpack.c.bf16 %v2498_v6, %v2498_v6 }
0x154c   :  { %953 = vrot.lane.b32.xlu1 %v951_v21, %s2219_s19 }
0x15be   :  { %v954_v7 = vpop.permute.xlu1 %953 }
0x15bf   :  { %1960 = vmatmul.msk.bf16.vlgmr.msrb.gmra.mxu3 %vm126_vm7, %v954_v7  ;;  %1961 = vmatmul.msk.bf16.vlgmr.msra.gmra.mxu0 %vm126_vm7, %v954_v7 }
0x15c0   :  { %1294 = vmatpush.bf16.msrb.mxu3 %v2445_v4  ;;  %1307 = vmatpush.bf16.msra.mxu0 %v2436_v36 }
0x15c4   :  { %1295 = vmatpush.bf16.msrb.mxu3 %v2450_v62  ;;  %1308 = vmatpush.bf16.msra.mxu0 %v2442_v12 }
0x163c   :  { %v980_v8 = vpop.f32.mrf.mxu0 }
0x1642   :  { %v967_v10 = vpop.f32.mrf.mxu3 }
0x1643   :  { %v990_v11 = vsel %vm68_vm2, %v967_v10, %v980_v8 }
0x1644   :  { %v991_v13 = vadd.f32 %v990_v11, %v989_v30  ;;  %v982_v16 = vpop.f32.mrf.mxu0 }
0x1646   :  { %2076 = vtanh.f32 %v991_v13  ;;  %v1962_v20 = vmul.f32 -1.442695, %v991_v13 }
0x1648   :  { %2078 = vpow2.f32 %v1962_v20 }
0x164a   :  { %v969_v17 = vpop.f32.mrf.mxu3 }
0x164c   :  { %v2077_v18 = vpop.eup %2076 }
0x164d   :  { %1014 = vrot.lane.b32.xlu2 %v2077_v18, %s2218_s0 }
0x164e   :  { %v2079_v5 = vpop.eup %2078 }
0x164f   :  { %v995_v45 = vadd.f32 1.0, %v2079_v5 }
0x1651   :  { %2080 = vrcp.f32 %v995_v45  ;;  %v1007_v40 = vand.u32 2147483648, %v995_v45  ;;  %vm1001_vm3 = vweird.f32 %v995_v45  ;;  %v1005_v28 = vand.u32 2147483647, %v995_v45 }
0x1653   :  { %v1008_v29 = vor.u32 1.1754944e-38, %v1007_v40  ;;  %vm1006_vm5 = vcmp.eq.f32.partialorder %v1005_v28, 8.507059e+37 }
0x1657   :  { %v2081_v23 = vpop.eup %2080 }
0x1658   :  { %v997_v24 = vmul.f32 %v2081_v23, %v995_v45  ;;  %vm1002_vm0 = vweird.f32 %v2081_v23 }
0x1659   :  { %vm1003_vm4 = vmor %vm1001_vm3, %vm1002_vm0 }
0x165a   :  { %v998_v25 = vsub.f32 1.0, %v997_v24 }
0x165c   :  { %v999_v26 = vmul.f32 %v2081_v23, %v998_v25 }
0x165e   :  { %v1000_v27 = vadd.f32 %v2081_v23, %v999_v26 }
0x1660   :  { %v1004_v14 = vsel %vm1003_vm4, %v2081_v23, %v1000_v27 }
0x1661   :  { %v1009_v49 = vsel %vm1006_vm5, %v1008_v29, %v1004_v14 }
0x1662   :  { %v1012_v34 = vmul.f32 %v1009_v49, %v938_v32 }
0x16a7   :  { %v1015_v30 = vpop.permute.xlu2 %1014 }
0x16a8   :  { %v1017_v33 = vmul.f32 %v1015_v30, %v1009_v49 }
0x16aa   :  { %1019 = vrot.lane.b32.xlu0 %v1017_v33, %s2219_s19 }
0x171c   :  { %v1020_v35 = vpop.permute.xlu0 %1019 }
0x171d   :  { %v1022_v54 = vadd.f32 %v1020_v35, %v1012_v34 }
0x171f   :  { %2082 = vtanh.f32 %v1022_v54 }
0x1725   :  { %v2083_v37 = vpop.eup %2082 }
0x1726   :  { %1025 = vrot.lane.b32.xlu1 %v2083_v37, %s2218_s0 }
0x1798   :  { %v1026_v39 = vpop.permute.xlu1 %1025 }
0x1799   :  { %v2514_v41 = vmul.f32 %v1026_v39, %v1009_v49 }
0x179b   :  { %v1035_v42 = vpack.c.bf16 %v2514_v41, %v2514_v41 }
0x179d   :  { %1037 = vrot.lane.b32.xlu2 %v1035_v42, %s2219_s19 }
0x17f7   :  { %v1038_v48 = vpop.permute.xlu2 %1037 }
0x17f8   :  { %1963 = vmatmul.msk.bf16.vlgmr.msra.gmra.mxu1 %vm126_vm7, %v1038_v48  ;;  %1964 = vmatmul.msk.bf16.vlgmr.msra.gmra.mxu2 %vm126_vm7, %v1038_v48 }
0x17f9   :  { %1391 = vmatpush.bf16.msra.mxu2 %v2436_v36  ;;  %1378 = vmatpush.bf16.msra.mxu1 %v2445_v4 }
0x17fd   :  { %1392 = vmatpush.bf16.msra.mxu2 %v2442_v12  ;;  %1379 = vmatpush.bf16.msra.mxu1 %v2450_v62 }
0x1875   :  { %v1051_v50 = vpop.f32.mrf.mxu1 }
0x187b   :  { %v1064_v51 = vpop.f32.mrf.mxu2 }
0x187c   :  { %v1071_v19 = vsel %vm68_vm2, %v1051_v50, %v1064_v51 }
0x187d   :  { %v1072_v52 = vadd.f32 %v1071_v19, %v2476_v0  ;;  %v1053_v22 = vpop.f32.mrf.mxu1 }
0x187f   :  { %2084 = vtanh.f32 %v1072_v52  ;;  %v1965_v57 = vmul.f32 -1.442695, %v1072_v52 }
0x1881   :  { %2086 = vpow2.f32 %v1965_v57 }
0x1883   :  { %v1066_v15 = vpop.f32.mrf.mxu2 }
0x1885   :  { %v2085_v56 = vpop.eup %2084 }
0x1886   :  { %1095 = vrot.lane.b32.xlu0 %v2085_v56, %s2218_s0 }
0x1887   :  { %v2087_v58 = vpop.eup %2086 }
0x1888   :  { %v1076_v59 = vadd.f32 1.0, %v2087_v58 }
0x188a   :  { %2088 = vrcp.f32 %v1076_v59  ;;  %v1088_v1 = vand.u32 2147483648, %v1076_v59  ;;  %vm1082_vm8 = vweird.f32 %v1076_v59  ;;  %v1086_v0 = vand.u32 2147483647, %v1076_v59 }
0x188c   :  { %v1089_v32 = vor.u32 1.1754944e-38, %v1088_v1  ;;  %vm1087_vm13 = vcmp.eq.f32.partialorder %v1086_v0, 8.507059e+37 }
0x1890   :  { %v2089_v60 = vpop.eup %2088 }
0x1891   :  { %v1078_v55 = vmul.f32 %v2089_v60, %v1076_v59  ;;  %vm1083_vm6 = vweird.f32 %v2089_v60 }
0x1892   :  { %vm1084_vm9 = vmor %vm1082_vm8, %vm1083_vm6 }
0x1893   :  { %v1079_v61 = vsub.f32 1.0, %v1078_v55 }
0x1895   :  { %v1080_v53 = vmul.f32 %v2089_v60, %v1079_v61 }
0x1897   :  { %v1081_v63 = vadd.f32 %v2089_v60, %v1080_v53 }
0x1899   :  { %v1085_v2 = vsel %vm1084_vm9, %v2089_v60, %v1081_v63 }
0x189a   :  { %v1090_v9 = vsel %vm1087_vm13, %v1089_v32, %v1085_v2 }
0x189b   :  { %v1093_v7 = vmul.f32 %v1090_v9, %v1022_v54 }
0x18f8   :  { %v1096_v3 = vpop.permute.xlu0 %1095 }
0x18f9   :  { %v1098_v21 = vmul.f32 %v1096_v3, %v1090_v9 }
0x18fb   :  { %1100 = vrot.lane.b32.xlu1 %v1098_v21, %s2219_s19 }
0x196d   :  { %v1101_v8 = vpop.permute.xlu1 %1100 }
0x196e   :  { %v1103_v10 = vadd.f32 %v1101_v8, %v1093_v7 }
0x1970   :  { %2090 = vtanh.f32 %v1103_v10 }
0x1976   :  { %v2091_v11 = vpop.eup %2090 }
0x1977   :  { %1106 = vrot.lane.b32.xlu2 %v2091_v11, %s2218_s0 }
0x19d1   :  { %v1107_v13 = vpop.permute.xlu2 %1106 }
0x19d2   :  { %v2531_v16 = vmul.f32 %v1107_v13, %v1090_v9 }
0x19d4   :  { %v1116_v17 = vpack.c.bf16 %v2531_v16, %v2531_v16 }
0x19d6   :  { %1118 = vrot.lane.b32.xlu0 %v1116_v17, %s2219_s19 }
0x1a48   :  { %v1119_v18 = vpop.permute.xlu0 %1118 }
0x1a49   :  { %1966 = vmatmul.msk.bf16.vlgmr.msra.gmra.mxu3 %vm126_vm7, %v1119_v18  ;;  %1967 = vmatmul.msk.bf16.vlgmr.msrb.gmra.mxu0 %vm126_vm7, %v1119_v18 }
0x1a4a   :  { %1459 = vmatpush.bf16.msra.mxu3 %v2445_v4  ;;  %1472 = vmatpush.bf16.msrb.mxu0 %v2436_v36 }
0x1a4e   :  { %1460 = vmatpush.bf16.msra.mxu3 %v2450_v62  ;;  %1473 = vmatpush.bf16.msrb.mxu0 %v2442_v12 }
0x1ac6   :  { %v1145_v20 = vpop.f32.mrf.mxu0 }
0x1acc   :  { %v1132_v5 = vpop.f32.mrf.mxu3 }
0x1acd   :  { %v1154_v45 = vsel %vm68_vm2, %v1132_v5, %v1145_v20 }
0x1ace   :  { %v1155_v23 = vadd.f32 %v1154_v45, %v2481_v31  ;;  %v1147_v24 = vpop.f32.mrf.mxu0 }
0x1ad0   :  { %2092 = vtanh.f32 %v1155_v23  ;;  %v1968_v4 = vmul.f32 -1.442695, %v1155_v23 }
0x1ad2   :  { %2094 = vpow2.f32 %v1968_v4 }
0x1ad4   :  { %v1134_v25 = vpop.f32.mrf.mxu3 }
0x1ad6   :  { %v2093_v26 = vpop.eup %2092 }
0x1ad7   :  { %1178 = vrot.lane.b32.xlu1 %v2093_v26, %s2218_s0 }
0x1ad8   :  { %v2095_v36 = vpop.eup %2094 }
0x1ad9   :  { %v1159_v27 = vadd.f32 1.0, %v2095_v36 }
0x1adb   :  { %2096 = vrcp.f32 %v1159_v27  ;;  %v1171_v29 = vand.u32 2147483648, %v1159_v27  ;;  %vm1165_vm15 = vweird.f32 %v1159_v27  ;;  %v1169_v31 = vand.u32 2147483647, %v1159_v27 }
0x1add   :  { %v1172_v49 = vor.u32 1.1754944e-38, %v1171_v29  ;;  %vm1170_vm0 = vcmp.eq.f32.partialorder %v1169_v31, 8.507059e+37 }
0x1ae1   :  { %v2097_v62 = vpop.eup %2096 }
0x1ae2   :  { %v1161_v12 = vmul.f32 %v2097_v62, %v1159_v27  ;;  %vm1166_vm14 = vweird.f32 %v2097_v62 }
0x1ae3   :  { %vm1167_vm1 = vmor %vm1165_vm15, %vm1166_vm14 }
0x1ae4   :  { %v1162_v40 = vsub.f32 1.0, %v1161_v12 }
0x1ae6   :  { %v1163_v28 = vmul.f32 %v2097_v62, %v1162_v40 }
0x1ae8   :  { %v1164_v14 = vadd.f32 %v2097_v62, %v1163_v28 }
0x1aea   :  { %v1168_v30 = vsel %vm1167_vm1, %v2097_v62, %v1164_v14 }
0x1aeb   :  { %v1173_v34 = vsel %vm1170_vm0, %v1172_v49, %v1168_v30 }
0x1aec   :  { %v1176_v54 = vmul.f32 %v1173_v34, %v1103_v10 }
0x1b49   :  { %v1179_v33 = vpop.permute.xlu1 %1178 }
0x1b4a   :  { %v1181_v35 = vmul.f32 %v1179_v33, %v1173_v34 }
0x1b4c   :  { %1183 = vrot.lane.b32.xlu2 %v1181_v35, %s2219_s19 }
0x1ba6   :  { %v1184_v37 = vpop.permute.xlu2 %1183 }
0x1ba7   :  { %v1186_v39 = vadd.f32 %v1184_v37, %v1176_v54 }
0x1ba9   :  { %2098 = vtanh.f32 %v1186_v39 }
0x1baf   :  { %v2099_v42 = vpop.eup %2098 }
0x1bb0   :  { %1189 = vrot.lane.b32.xlu0 %v2099_v42, %s2218_s0 }
0x1c22   :  { %v1190_v48 = vpop.permute.xlu0 %1189 }
0x1c23   :  { %v2548_v50 = vmul.f32 %v1190_v48, %v1173_v34 }
0x1c25   :  { %v1199_v51 = vpack.c.bf16 %v2548_v50, %v2548_v50 }
0x1c27   :  { %1201 = vrot.lane.b32.xlu1 %v1199_v51, %s2219_s19 }
0x1c99   :  { %v1202_v19 = vpop.permute.xlu1 %1201 }
0x1c9a   :  { %1969 = vmatmul.msk.bf16.vlgmr.msrb.gmra.mxu1 %vm126_vm7, %v1202_v19  ;;  %1970 = vmatmul.msk.bf16.vlgmr.msrb.gmra.mxu2 %vm126_vm7, %v1202_v19 }
0x1d17   :  { %v1215_v52 = vpop.f32.mrf.mxu1 }
0x1d1d   :  { %v1228_v22 = vpop.f32.mrf.mxu2 }
0x1d1e   :  { %v1236_v15 = vsel %vm68_vm2, %v1215_v52, %v1228_v22 }
0x1d1f   :  { %v1237_v56 = vadd.f32 %v1236_v15, %v2484_v38  ;;  %v1217_v57 = vpop.f32.mrf.mxu1 }
0x1d21   :  { %2100 = vtanh.f32 %v1237_v56  ;;  %v1971_v60 = vmul.f32 -1.442695, %v1237_v56 }
0x1d23   :  { %2102 = vpow2.f32 %v1971_v60 }
0x1d25   :  { %v1230_v58 = vpop.f32.mrf.mxu2 }
0x1d27   :  { %v2101_v59 = vpop.eup %2100 }
0x1d28   :  { %1260 = vrot.lane.b32.xlu2 %v2101_v59, %s2218_s0 }
0x1d29   :  { %v2103_v55 = vpop.eup %2102 }
0x1d2a   :  { %v1241_v61 = vadd.f32 1.0, %v2103_v55 }
0x1d2c   :  { %2104 = vrcp.f32 %v1241_v61  ;;  %v1253_v32 = vand.u32 2147483648, %v1241_v61  ;;  %vm1247_vm4 = vweird.f32 %v1241_v61  ;;  %v1251_v38 = vand.u32 2147483647, %v1241_v61 }
0x1d2e   :  { %v1254_v9 = vor.u32 1.1754944e-38, %v1253_v32  ;;  %vm1252_vm6 = vcmp.eq.f32.partialorder %v1251_v38, 8.507059e+37 }
0x1d32   :  { %v2105_v53 = vpop.eup %2104 }
0x1d33   :  { %v1243_v63 = vmul.f32 %v2105_v53, %v1241_v61  ;;  %vm1248_vm3 = vweird.f32 %v2105_v53 }
0x1d34   :  { %vm1249_vm5 = vmor %vm1247_vm4, %vm1248_vm3 }
0x1d35   :  { %v1244_v1 = vsub.f32 1.0, %v1243_v63 }
0x1d37   :  { %v1245_v0 = vmul.f32 %v2105_v53, %v1244_v1 }
0x1d39   :  { %v1246_v2 = vadd.f32 %v2105_v53, %v1245_v0 }
0x1d3b   :  { %v1250_v3 = vsel %vm1249_vm5, %v2105_v53, %v1246_v2 }
0x1d3c   :  { %v1255_v7 = vsel %vm1252_vm6, %v1254_v9, %v1250_v3 }
0x1d3d   :  { %v1258_v10 = vmul.f32 %v1255_v7, %v1186_v39 }
0x1d82   :  { %v1261_v21 = vpop.permute.xlu2 %1260 }
0x1d83   :  { %v1263_v8 = vmul.f32 %v1261_v21, %v1255_v7 }
0x1d85   :  { %1265 = vrot.lane.b32.xlu0 %v1263_v8, %s2219_s19 }
0x1df7   :  { %v1266_v11 = vpop.permute.xlu0 %1265 }
0x1df8   :  { %v1268_v13 = vadd.f32 %v1266_v11, %v1258_v10 }
0x1dfa   :  { %2106 = vtanh.f32 %v1268_v13 }
0x1e00   :  { %v2107_v17 = vpop.eup %2106 }
0x1e01   :  { %1271 = vrot.lane.b32.xlu1 %v2107_v17, %s2218_s0 }
0x1e73   :  { %v1272_v18 = vpop.permute.xlu1 %1271 }
0x1e74   :  { %v2561_v20 = vmul.f32 %v1272_v18, %v1255_v7 }
0x1e76   :  { %v1281_v5 = vpack.c.bf16 %v2561_v20, %v2561_v20 }
0x1e78   :  { %1283 = vrot.lane.b32.xlu2 %v1281_v5, %s2219_s19 }
0x1ed2   :  { %v1284_v45 = vpop.permute.xlu2 %1283 }
0x1ed3   :  { %1972 = vmatmul.msk.bf16.vlgmr.msrb.gmra.mxu3 %vm126_vm7, %v1284_v45  ;;  %1973 = vmatmul.msk.bf16.vlgmr.msra.gmra.mxu0 %vm126_vm7, %v1284_v45 }
0x1f50   :  { %v1310_v23 = vpop.f32.mrf.mxu0 }
0x1f56   :  { %v1297_v24 = vpop.f32.mrf.mxu3 }
0x1f57   :  { %v1320_v25 = vsel %vm68_vm2, %v1297_v24, %v1310_v23 }
0x1f58   :  { %v1321_v26 = vadd.f32 %v1320_v25, %v2487_v43  ;;  %v1312_v4 = vpop.f32.mrf.mxu0 }
0x1f5a   :  { %2108 = vtanh.f32 %v1321_v26  ;;  %v1974_v62 = vmul.f32 -1.442695, %v1321_v26 }
0x1f5c   :  { %2110 = vpow2.f32 %v1974_v62 }
0x1f5e   :  { %v1299_v36 = vpop.f32.mrf.mxu3 }
0x1f60   :  { %v2109_v27 = vpop.eup %2108 }
0x1f61   :  { %1344 = vrot.lane.b32.xlu0 %v2109_v27, %s2218_s0 }
0x1f62   :  { %v2111_v12 = vpop.eup %2110 }
0x1f63   :  { %v1325_v40 = vadd.f32 1.0, %v2111_v12 }
0x1f65   :  { %2112 = vrcp.f32 %v1325_v40  ;;  %v1337_v49 = vand.u32 2147483648, %v1325_v40  ;;  %vm1331_vm9 = vweird.f32 %v1325_v40  ;;  %v1335_v43 = vand.u32 2147483647, %v1325_v40 }
0x1f67   :  { %v1338_v34 = vor.u32 1.1754944e-38, %v1337_v49  ;;  %vm1336_vm14 = vcmp.eq.f32.partialorder %v1335_v43, 8.507059e+37 }
0x1f6b   :  { %v2113_v28 = vpop.eup %2112 }
0x1f6c   :  { %v1327_v14 = vmul.f32 %v2113_v28, %v1325_v40  ;;  %vm1332_vm8 = vweird.f32 %v2113_v28 }
0x1f6d   :  { %vm1333_vm13 = vmor %vm1331_vm9, %vm1332_vm8 }
0x1f6e   :  { %v1328_v29 = vsub.f32 1.0, %v1327_v14 }
0x1f70   :  { %v1329_v31 = vmul.f32 %v2113_v28, %v1328_v29 }
0x1f72   :  { %v1330_v30 = vadd.f32 %v2113_v28, %v1329_v31 }
0x1f74   :  { %v1334_v33 = vsel %vm1333_vm13, %v2113_v28, %v1330_v30 }
0x1f75   :  { %v1339_v54 = vsel %vm1336_vm14, %v1338_v34, %v1334_v33 }
0x1f76   :  { %v1342_v39 = vmul.f32 %v1339_v54, %v1268_v13 }
0x1fd3   :  { %v1345_v35 = vpop.permute.xlu0 %1344 }
0x1fd4   :  { %v1347_v37 = vmul.f32 %v1345_v35, %v1339_v54 }
0x1fd6   :  { %1349 = vrot.lane.b32.xlu1 %v1347_v37, %s2219_s19 }
0x2048   :  { %v1350_v42 = vpop.permute.xlu1 %1349 }
0x2049   :  { %v1352_v48 = vadd.f32 %v1350_v42, %v1342_v39 }
0x204b   :  { %2114 = vtanh.f32 %v1352_v48 }
0x2051   :  { %v2115_v51 = vpop.eup %2114 }
0x2052   :  { %1355 = vrot.lane.b32.xlu2 %v2115_v51, %s2218_s0 }
0x20ac   :  { %v1356_v19 = vpop.permute.xlu2 %1355 }
0x20ad   :  { %v2574_v52 = vmul.f32 %v1356_v19, %v1339_v54 }
0x20af   :  { %v1365_v22 = vpack.c.bf16 %v2574_v52, %v2574_v52 }
0x20b1   :  { %1367 = vrot.lane.b32.xlu0 %v1365_v22, %s2219_s19 }
0x2123   :  { %v1368_v15 = vpop.permute.xlu0 %1367 }
0x2124   :  { %1975 = vmatmul.msk.bf16.vlgmr.msra.gmra.mxu1 %vm126_vm7, %v1368_v15  ;;  %1976 = vmatmul.msk.bf16.vlgmr.msra.gmra.mxu2 %vm126_vm7, %v1368_v15 }
0x21a1   :  { %v1381_v56 = vpop.f32.mrf.mxu1 }
0x21a7   :  { %v1394_v57 = vpop.f32.mrf.mxu2 }
0x21a8   :  { %v1401_v58 = vsel %vm68_vm2, %v1381_v56, %v1394_v57 }
0x21a9   :  { %v1402_v59 = vadd.f32 %v1401_v58, %v2490_v46  ;;  %v1383_v60 = vpop.f32.mrf.mxu1 }
0x21ab   :  { %2116 = vtanh.f32 %v1402_v59  ;;  %v1977_v53 = vmul.f32 -1.442695, %v1402_v59 }
0x21ad   :  { %2118 = vpow2.f32 %v1977_v53  ;;  %v1547_v53 = vld [vmem:[#allocation4 + $0x1b0] sm:$0xff] }
0x21af   :  { %v1396_v55 = vpop.f32.mrf.mxu2 }
0x21b0   :  { %v1549_v55 = vld [vmem:[#allocation4 + $0x1d0] sm:$0xff] }
0x21b1   :  { %v2117_v61 = vpop.eup %2116 }
0x21b2   :  { %1425 = vrot.lane.b32.xlu1 %v2117_v61, %s2218_s0  ;;  %v1548_v61 = vld [vmem:[#allocation4 + $0x1c0] sm:$0xff] }
0x21b3   :  { %v2119_v63 = vpop.eup %2118 }
0x21b4   :  { %v1406_v1 = vadd.f32 1.0, %v2119_v63  ;;  %v1546_v63 = vld [vmem:[#allocation4 + $0x1a0] sm:$0xff] }
0x21b6   :  { %2120 = vrcp.f32 %v1406_v1  ;;  %v1418_v9 = vand.u32 2147483648, %v1406_v1  ;;  %vm1412_vm1 = vweird.f32 %v1406_v1  ;;  %v1416_v46 = vand.u32 2147483647, %v1406_v1 }
0x21b8   :  { %v1419_v7 = vor.u32 1.1754944e-38, %v1418_v9  ;;  %vm1417_vm3 = vcmp.eq.f32.partialorder %v1416_v46, 8.507059e+37  ;;  %v1861_v9 = vld [vmem:[#allocation4 + $0x2e0] sm:$0xff]  ;;  %v1860_v46 = vld [vmem:[#allocation4 + $0x2d0] sm:$0xff] }
0x21bc   :  { %v2121_v0 = vpop.eup %2120 }
0x21bd   :  { %v1408_v2 = vmul.f32 %v2121_v0, %v1406_v1  ;;  %vm1413_vm15 = vweird.f32 %v2121_v0  ;;  %v1545_v1 = vld [vmem:[#allocation4 + $0x190] sm:$0xff] }
0x21be   :  { %vm1414_vm0 = vmor %vm1412_vm1, %vm1413_vm15 }
0x21bf   :  { %v1409_v32 = vsub.f32 1.0, %v1408_v2  ;;  %v1543_v2 = vld [vmem:[#allocation4 + $0x170] sm:$0xff] }
0x21c1   :  { %v1410_v38 = vmul.f32 %v2121_v0, %v1409_v32  ;;  %v1864_v32 = vld [vmem:[#allocation4 + $0x310] sm:$0xff] }
0x21c2   :  { %1876 = vmatpush.msrb.mxu2 %v1864_v32 }
0x21c3   :  { %v1411_v3 = vadd.f32 %v2121_v0, %v1410_v38  ;;  %v1863_v38 = vld [vmem:[#allocation4 + $0x300] sm:$0xff] }
0x21c4   :  { %1877 = vmatpush.msrb.mxu2 %v1863_v38 }
0x21c5   :  { %v1415_v21 = vsel %vm1414_vm0, %v2121_v0, %v1411_v3  ;;  %v1544_v0 = vld [vmem:[#allocation4 + $0x180] sm:$0xff]  ;;  %v1862_v3 = vld [vmem:[#allocation4 + $0x2f0] sm:$0xff] }
0x21c6   :  { %v1420_v10 = vsel %vm1417_vm3, %v1419_v7, %v1415_v21  ;;  %1878 = vmatpush.msrb.mxu2 %v1862_v3  ;;  %v1859_v21 = vld [vmem:[#allocation4 + $0x2c0] sm:$0xff]  ;;  %v1858_v7 = vld [vmem:[#allocation4 + $0x2b0] sm:$0xff] }
0x21c7   :  { %v1423_v13 = vmul.f32 %v1420_v10, %v1352_v48 }
0x21c8   :  { %1879 = vmatpush.msrb.mxu2 %v1861_v9 }
0x21ca   :  { %1880 = vmatpush.msrb.mxu2 %v1860_v46 }
0x21cc   :  { %1881 = vmatpush.msrb.mxu2 %v1859_v21 }
0x21ce   :  { %1882 = vmatpush.msrb.mxu2 %v1858_v7 }
0x2224   :  { %v1426_v8 = vpop.permute.xlu1 %1425 }
0x2225   :  { %v1428_v11 = vmul.f32 %v1426_v8, %v1420_v10  ;;  %v1857_v8 = vld [vmem:[#allocation4 + $0x2a0] sm:$0xff] }
0x2226   :  { %1883 = vmatpush.msrb.mxu2 %v1857_v8 }
0x2227   :  { %1430 = vrot.lane.b32.xlu2 %v1428_v11, %s2219_s19 }
0x2281   :  { %v1431_v17 = vpop.permute.xlu2 %1430 }
0x2282   :  { %v1433_v18 = vadd.f32 %v1431_v17, %v1423_v13 }
0x2284   :  { %2122 = vtanh.f32 %v1433_v18 }
0x228a   :  { %v2123_v5 = vpop.eup %2122 }
0x228b   :  { %1436 = vrot.lane.b32.xlu0 %v2123_v5, %s2218_s0 }
0x22fd   :  { %v1437_v45 = vpop.permute.xlu0 %1436 }
0x22fe   :  { %v1439_v23 = vmul.f32 %v1437_v45, %v1420_v10 }
0x2300   :  { %v1446_v24 = vpack.c.bf16 %v1439_v23, %v1439_v23 }
0x2302   :  { %1448 = vrot.lane.b32.xlu1 %v1446_v24, %s2219_s19 }
0x2374   :  { %v1449_v25 = vpop.permute.xlu1 %1448 }
0x2375   :  { %1978 = vmatmul.msk.bf16.vlgmr.msra.gmra.mxu3 %vm126_vm7, %v1449_v25  ;;  %1979 = vmatmul.msk.bf16.vlgmr.msrb.gmra.mxu0 %vm126_vm7, %v1449_v25 }
0x23f2   :  { %v1475_v26 = vpop.f32.mrf.mxu0 }
0x23f8   :  { %v1462_v4 = vpop.f32.mrf.mxu3 }
0x23f9   :  { %v1484_v36 = vsel %vm68_vm2, %v1462_v4, %v1475_v26 }
0x23fa   :  { %v1485_v27 = vadd.f32 %v1484_v36, %v2493_v47  ;;  %v1477_v62 = vpop.f32.mrf.mxu0 }
0x23fc   :  { %2124 = vtanh.f32 %v1485_v27  ;;  %v1980_v28 = vmul.f32 -1.442695, %v1485_v27 }
0x23fe   :  { %2126 = vpow2.f32 %v1980_v28 }
0x2400   :  { %v1464_v12 = vpop.f32.mrf.mxu3 }
0x2402   :  { %v2125_v40 = vpop.eup %2124 }
0x2403   :  { %1508 = vrot.lane.b32.xlu2 %v2125_v40, %s2218_s0 }
0x2404   :  { %v2127_v14 = vpop.eup %2126 }
0x2405   :  { %v1489_v29 = vadd.f32 1.0, %v2127_v14 }
0x2407   :  { %2128 = vrcp.f32 %v1489_v29  ;;  %v1501_v47 = vand.u32 2147483648, %v1489_v29  ;;  %vm1495_vm4 = vweird.f32 %v1489_v29  ;;  %v1499_v33 = vand.u32 2147483647, %v1489_v29 }
0x2409   :  { %v1502_v35 = vor.u32 1.1754944e-38, %v1501_v47  ;;  %vm1500_vm6 = vcmp.eq.f32.partialorder %v1499_v33, 8.507059e+37 }
0x240b   :  { %1276 = vrot.lane.b32.xlu2 %v2561_v20, %s2219_s19 }
0x240d   :  { %v2129_v31 = vpop.eup %2128 }
0x240e   :  { %v1491_v30 = vmul.f32 %v2129_v31, %v1489_v29  ;;  %vm1496_vm2 = vweird.f32 %v2129_v31  ;;  %v1551_v29 = vld [vmem:[#allocation4 + $0x1f0] ss:$0 sm:$0xff] }
0x240f   :  { %vm1497_vm5 = vmor %vm1495_vm4, %vm1496_vm2 }
0x2410   :  { %v1492_v44 = vsub.f32 1.0, %v1491_v30 }
0x2412   :  { %v1493_v49 = vmul.f32 %v2129_v31, %v1492_v44  ;;  %v1583_v44 = vld [vmem:[#allocation4 + $0x200] ss:$0 sm:$0xff] }
0x2414   :  { %v1494_v43 = vadd.f32 %v2129_v31, %v1493_v49 }
0x2416   :  { %v1498_v34 = vsel %vm1497_vm5, %v2129_v31, %v1494_v43 }
0x2417   :  { %v1503_v20 = vsel %vm1500_vm6, %v1502_v35, %v1498_v34 }
0x2418   :  { %v1506_v42 = vmul.f32 %v1503_v20, %v1433_v18 }
0x245d   :  { %v1509_v54 = vpop.permute.xlu2 %1508 }
0x245e   :  { %v1511_v37 = vmul.f32 %v1509_v54, %v1503_v20  ;;  %v1590_v54 = vld [vmem:[#allocation4 + $0x210] ss:$0 sm:$0xff] }
0x2460   :  { %1513 = vrot.lane.b32.xlu0 %v1511_v37, %s2219_s19 }
0x2465   :  { %v1277_v39 = vpop.permute.xlu2 %1276 }
0x2466   :  { %1279 = vst.msk [vmem:[#allocation2 + $0x8] sm:$0x3] %vm204_vm10, %v1277_v39 }
0x2467   :  { %1280 = vst.msk [vmem:[#allocation3 + $0x4] sm:$0xc] %vm206_vm11, %v1277_v39 }
0x2468   :  { %1360 = vrot.lane.b32.xlu0 %v2574_v52, %s2219_s19 }
0x2470   :  { %946 = vrot.lane.b32.xlu0 %v2498_v6, %s2219_s19 }
0x2478   :  { %1194 = vrot.lane.b32.xlu0 %v2548_v50, %s2219_s19 }
0x24d2   :  { %v1514_v48 = vpop.permute.xlu0 %1513 }
0x24d3   :  { %v1516_v51 = vadd.f32 %v1514_v48, %v1506_v42 }
0x24d5   :  { %2130 = vtanh.f32 %v1516_v51 }
0x24da   :  { %v1361_v19 = vpop.permute.xlu0 %1360 }
0x24db   :  { %v2131_v22 = vpop.eup %2130  ;;  %1363 = vst.msk [vmem:[#allocation2 + $0xa] sm:$0x3] %vm204_vm10, %v1361_v19 }
0x24dc   :  { %1364 = vst.msk [vmem:[#allocation3 + $0x2] sm:$0xc] %vm206_vm11, %v1361_v19  ;;  %1519 = vrot.lane.b32.xlu1 %v2131_v22, %s2218_s0 }
0x24e2   :  { %v947_v15 = vpop.permute.xlu0 %946 }
0x24e3   :  { %949 = vst.msk [vmem:[#allocation2] sm:$0x3] %vm204_vm10, %v947_v15 }
0x24e4   :  { %950 = vst.msk [vmem:[#allocation3 + $0xc] sm:$0xc] %vm206_vm11, %v947_v15  ;;  %1441 = vrot.lane.b32.xlu1 %v1439_v23, %s2219_s19 }
0x24ea   :  { %v1195_v6 = vpop.permute.xlu0 %1194 }
0x24eb   :  { %1197 = vst.msk [vmem:[#allocation2 + $0x6] sm:$0x3] %vm204_vm10, %v1195_v6 }
0x24ec   :  { %1198 = vst.msk [vmem:[#allocation3 + $0x6] sm:$0xc] %vm206_vm11, %v1195_v6  ;;  %1030 = vrot.lane.b32.xlu1 %v2514_v41, %s2219_s19 }
0x254e   :  { %v1520_v50 = vpop.permute.xlu1 %1519 }
0x254f   :  { %v1522_v52 = vmul.f32 %v1520_v50, %v1503_v20 }
0x2551   :  { %1524 = vrot.lane.b32.xlu2 %v1522_v52, %s2219_s19 }
0x2556   :  { %v1442_v56 = vpop.permute.xlu1 %1441 }
0x2557   :  { %1444 = vst.msk [vmem:[#allocation2 + $0xc] sm:$0x3] %vm204_vm10, %v1442_v56 }
0x2558   :  { %1445 = vst.msk [vmem:[#allocation3] sm:$0xc] %vm206_vm11, %v1442_v56 }
0x2559   :  { %1111 = vrot.lane.b32.xlu2 %v2531_v16, %s2219_s19  ;;  %v1550_v16 = vld [vmem:[#allocation4 + $0x1e0] sm:$0xff] }
0x255a   :  { %1566 = vmatpush.msrb.mxu1 %v1550_v16 }
0x255c   :  { %1567 = vmatpush.msrb.mxu1 %v1549_v55 }
0x255e   :  { %v1031_v57 = vpop.permute.xlu1 %1030  ;;  %1568 = vmatpush.msrb.mxu1 %v1548_v61 }
0x255f   :  { %1033 = vst.msk [vmem:[#allocation2 + $0x2] sm:$0x3] %vm204_vm10, %v1031_v57 }
0x2560   :  { %1034 = vst.msk [vmem:[#allocation3 + $0xa] sm:$0xc] %vm206_vm11, %v1031_v57  ;;  %1569 = vmatpush.msrb.mxu1 %v1547_v53 }
0x2562   :  { %1570 = vmatpush.msrb.mxu1 %v1546_v63 }
0x2564   :  { %1571 = vmatpush.msrb.mxu1 %v1545_v1 }
0x2566   :  { %1572 = vmatpush.msrb.mxu1 %v1544_v0 }
0x2568   :  { %1573 = vmatpush.msrb.mxu1 %v1543_v2 }
0x25ab   :  { %v1525_v58 = vpop.permute.xlu2 %1524 }
0x25ac   :  { %1527 = vst.msk [vmem:[#allocation2 + $0xe] sm:$0x3] %vm204_vm10, %v1525_v58 }
0x25ad   :  { %1528 = vst.msk [vmem:[#allocation3 - $0x2] sm:$0xc] %vm206_vm11, %v1525_v58 }
0x25b3   :  { %v1112_v41 = vpop.permute.xlu2 %1111  ;;  %v1530_v23 = vld [vmem:[#allocation2 + $0x8] sm:$0xff] }
0x25b4   :  { %1114 = vst.msk [vmem:[#allocation2 + $0x4] sm:$0x3] %vm204_vm10, %v1112_v41  ;;  %v1531_v59 = vld [vmem:[#allocation3] sm:$0xff] }
0x25b5   :  { %1115 = vst.msk [vmem:[#allocation3 + $0x8] sm:$0xc] %vm206_vm11, %v1112_v41  ;;  %1535 = vrot.lane.b32.xlu1 %v1531_v59, %s2219_s19 }
0x25bb   :  { %v1529_v10 = vld [vmem:[#allocation2] sm:$0xff] }
0x25bc   :  { %v1532_v60 = vld [vmem:[#allocation3 + $0x8] sm:$0xff] }
0x25bd   :  { %1537 = vrot.lane.b32.xlu2 %v1532_v60, %s2219_s19 }
0x2617   :  { %v1538_v18 = vpop.permute.xlu2 %1537 }
0x2618   :  { %v2638_v26 = vsel %vm126_vm7, %v1530_v23, %v1538_v18 }
0x2619   :  { %v1756_v27 = vrot.slane %v2638_v26, 2  ;;  %v1791_v12 = vrot.slane %v2638_v26, 4  ;;  %v1826_v28 = vrot.slane %v2638_v26, 6 }
0x2627   :  { %v1536_v11 = vpop.permute.xlu1 %1535 }
0x2628   :  { %v2629_v13 = vsel %vm126_vm7, %v1529_v10, %v1536_v11 }
0x2629   :  { %v1627_v17 = vrot.slane %v2629_v13, 2  ;;  %1981 = vmatmul.msk.f32.vlgmr.msrb.gmra.mxu1 %vm844_vm12, %v2629_v13  ;;  %v1662_v45 = vrot.slane %v2629_v13, 4  ;;  %v1697_v25 = vrot.slane %v2629_v13, 6 }
0x262b   :  { %v1629_v5 = vadd.f32 %v1627_v17, %v2629_v13 }
0x262d   :  { %v1664_v24 = vadd.f32 %v1662_v45, %v1629_v5 }
0x262f   :  { %v1699_v4 = vadd.f32 %v1697_v25, %v1664_v24 }
0x2631   :  { %1982 = vmatmul.msk.f32.gmra.mxu1 %vm844_vm12, %v2638_v26  ;;  %v1722_v36 = vadd.f32 %v1699_v4, %v2638_v26 }
0x2633   :  { %v1758_v62 = vadd.f32 %v1756_v27, %v1722_v36 }
0x2635   :  { %v1793_v40 = vadd.f32 %v1791_v12, %v1758_v62 }
0x2637   :  { %v1828_v14 = vadd.f32 %v1826_v28, %v1793_v40 }
0x2639   :  { %1983 = vmatmul.msk.f32.vlgmr.msrb.gmra.mxu2 %vm844_vm12, %v1828_v14 }
0x26a6   :  { %v1575_v31 = vpop.f32.mrf.mxu1 }
0x26a7   :  { %v1576_v30 = vadd.f32 %v1575_v31, %v1551_v29 }
0x26a9   :  { %v1581_v49 = vmax.f32 %v1576_v30, 0.0 }
0x26ab   :  { %v1584_v43 = vmul.f32 %v1583_v44, %v1581_v49 }
0x26ad   :  { %1586 = vadd.xlane.f32.xlu0 %v1584_v43 }
0x26ae   :  { %v1578_v47 = vpop.f32.mrf.mxu1 }
0x26af   :  { %v1579_v33 = vadd.f32 %v1578_v47, %v1551_v29 }
0x26b1   :  { %v1582_v34 = vmax.f32 %v1579_v33, 0.0 }
0x26b3   :  { %v1585_v35 = vmul.f32 %v1583_v44, %v1582_v34 }
0x26b5   :  { %1588 = vadd.xlane.f32.xlu1 %v1585_v35 }
0x2720   :  { %v1587_v20 = vpop.xlane.xlu0 %1586 }
0x2721   :  { %v1591_v37 = vadd.f32 %v1590_v54, %v1587_v20 }
0x2723   :  { %v1593_v39 = vmul.f32 0.17677669, %v1591_v37 }
0x2725   :  { %v1596_v42 = vrot.slane %v1593_v39, 2  ;;  %v1630_v48 = vrot.slane %v1593_v39, 4  ;;  %v1665_v22 = vrot.slane %v1593_v39, 6 }
0x2727   :  { %v1598_v51 = vmax.f32 %v1593_v39, %v1596_v42 }
0x2728   :  { %v1589_v19 = vpop.xlane.xlu1 %1588 }
0x2729   :  { %v1592_v15 = vadd.f32 %v1590_v54, %v1589_v19  ;;  %v1599_v6 = vsub.f32 %v1593_v39, %v1598_v51  ;;  %v1632_v50 = vmax.f32 %v1598_v51, %v1630_v48  ;;  %v1603_v52 = vrot.slane %v1598_v51, 6 }
0x272b   :  { %v1594_v56 = vmul.f32 0.17677669, %v1592_v15  ;;  %v1600_v57 = vmul.f32 1.442695, %v1599_v6  ;;  %v1667_v58 = vmax.f32 %v1632_v50, %v1665_v22  ;;  %v1605_v41 = vsub.f32 %v1593_v39, %v1603_v52 }
0x272c   :  { %v1633_v59 = vsub.f32 %v1598_v51, %v1632_v50  ;;  %v1637_v60 = vrot.slane %v1632_v50, 4 }
0x272d   :  { %v1724_v16 = vrot.slane %v1594_v56, 2  ;;  %2132 = vpow2.f32 %v1600_v57  ;;  %v1700_v55 = vmax.f32 %v1667_v58, %v1594_v56  ;;  %v1606_v61 = vmul.f32 1.442695, %v1605_v41 }
0x272e   :  { %v1759_v53 = vrot.slane %v1594_v56, 4  ;;  %v1634_v63 = vmul.f32 1.442695, %v1633_v59  ;;  %v1639_v1 = vsub.f32 %v1593_v39, %v1637_v60  ;;  %v1668_v32 = vsub.f32 %v1632_v50, %v1667_v58 }
0x272f   :  { %v1701_v0 = vsub.f32 %v1667_v58, %v1700_v55  ;;  %v1726_v2 = vmax.f32 %v1700_v55, %v1724_v16  ;;  %2134 = vpow2.f32 %v1606_v61  ;;  %v1672_v3 = vrot.slane %v1667_v58, 2 }
0x2730   :  { %v1640_v38 = vmul.f32 1.442695, %v1639_v1  ;;  %2136 = vpow2.f32 %v1634_v63  ;;  %v1794_v21 = vrot.slane %v1594_v56, 6  ;;  %v1669_v18 = vmul.f32 1.442695, %v1668_v32 }
0x2731   :  { %v1702_v9 = vmul.f32 1.442695, %v1701_v0  ;;  %v1761_v46 = vmax.f32 %v1726_v2, %v1759_v53  ;;  %v1674_v7 = vsub.f32 %v1593_v39, %v1672_v3  ;;  %v1731_v8 = vrot.slane %v1726_v2, 6 }
0x2732   :  { %2138 = vpow2.f32 %v1640_v38  ;;  %v1704_v45 = vsub.f32 %v1594_v56, %v1700_v55  ;;  %v1727_v12 = vsub.f32 %v1700_v55, %v1726_v2 }
0x2733   :  { %v2133_v10 = vpop.eup %2132  ;;  %2140 = vpow2.f32 %v1702_v9  ;;  %v1766_v11 = vrot.slane %v1761_v46, 4  ;;  %v1796_v17 = vmax.f32 %v1761_v46, %v1794_v21  ;;  %v1675_v5 = vmul.f32 1.442695, %v1674_v7  ;;  %v1856_v9 = vld [vmem:[#allocation4 + $0x290] sm:$0xff]  ;;  %v1855_v21 = vld [vmem:[#allocation4 + $0x280] sm:$0xff] }
0x2734   :  { %1614 = vperm.xlu2 %1997, %v2133_v10   ;;  %v1733_v25 = vsub.f32 %v1594_v56, %v1731_v8  ;;  %v1705_v14 = vmul.f32 1.442695, %v1704_v45  ;;  %v1762_v49 = vsub.f32 %v1726_v2, %v1761_v46  ;;  %v1728_v47 = vmul.f32 1.442695, %v1727_v12  ;;  %1899 = vmatpush.msrb.mxu3 %v1856_v9  ;;  %v1854_v7 = vld [vmem:[#allocation4 + $0x270] sm:$0xff]  ;;  %v1853_v8 = vld [vmem:[#allocation4 + $0x260] sm:$0xff] }
0x2735   :  { %v2135_v23 = vpop.eup %2134  ;;  %v1768_v24 = vsub.f32 %v1594_v56, %v1766_v11  ;;  %2142 = vpow2.f32 %v1675_v5  ;;  %v1801_v62 = vrot.slane %v1796_v17, 2  ;;  %v1797_v42 = vsub.f32 %v1761_v46, %v1796_v17  ;;  %v1852_v11 = vld [vmem:[#allocation4 + $0x250] sm:$0xff]  ;;  %v1849_v12 = vld [vmem:[#allocation4 + $0x220] sm:$0xff] }
0x2736   :  { %v1609_v4 = vrot.slane %v2135_v23, 2  ;;  %v2137_v36 = vpop.eup %2136  ;;  %2144 = vpow2.f32 %v1669_v18  ;;  %v1734_v31 = vmul.f32 1.442695, %v1733_v25  ;;  %v1763_v37 = vmul.f32 1.442695, %v1762_v49  ;;  %1900 = vmatpush.msrb.mxu3 %v1855_v21 }
0x2737   :  { %v1769_v27 = vmul.f32 1.442695, %v1768_v24  ;;  %v1803_v43 = vsub.f32 %v1594_v56, %v1801_v62  ;;  %v1798_v6 = vmul.f32 1.442695, %v1797_v42 }
0x2738   :  { %v2139_v40 = vpop.eup %2138  ;;  %v1611_v28 = vadd.f32 %v2133_v10, %v1609_v4  ;;  %1901 = vmatpush.msrb.mxu3 %v1854_v7 }
0x2739   :  { %v2141_v29 = vpop.eup %2140  ;;  %v1644_v44 = vrot.slane %v2139_v40, 4  ;;  %2146 = vpow2.f32 %v1769_v27  ;;  %v1804_v39 = vmul.f32 1.442695, %v1803_v43 }
0x273a   :  { %1711 = vperm.xlu1 %1999, %v2141_v29   ;;  %v1642_v30 = vmul.f32 %v2137_v36, %v1611_v28  ;;  %2148 = vpow2.f32 %v1705_v14  ;;  %1902 = vmatpush.msrb.mxu3 %v1853_v8 }
0x273b   :  { %v2143_v33 = vpop.eup %2142  ;;  %2150 = vpow2.f32 %v1734_v31 }
0x273c   :  { %1619 = vperm.xlu2 %1997, %v2135_v23   ;;  %v1646_v34 = vadd.f32 %v1644_v44, %v1642_v30  ;;  %v2145_v35 = vpop.eup %2144  ;;  %v1679_v20 = vrot.slane %v2143_v33, 6  ;;  %2152 = vpow2.f32 %v1728_v47  ;;  %1903 = vmatpush.msrb.mxu3 %v1852_v11  ;;  %v1851_v23 = vld [vmem:[#allocation4 + $0x240] sm:$0xff] }
0x273d   :  { %2154 = vpow2.f32 %v1763_v37 }
0x273e   :  { %v1677_v54 = vmul.f32 %v2145_v35, %v1646_v34  ;;  %2156 = vpow2.f32 %v1804_v39  ;;  %1904 = vmatpush.msrb.mxu3 %v1851_v23 }
0x273f   :  { %v2147_v51 = vpop.eup %2146  ;;  %2158 = vpow2.f32 %v1798_v6 }
0x2740   :  { %v1681_v48 = vadd.f32 %v1679_v20, %v1677_v54  ;;  %v2149_v19 = vpop.eup %2148  ;;  %v1773_v16 = vrot.slane %v2147_v51, 4 }
0x2741   :  { %v2151_v15 = vpop.eup %2150 }
0x2742   :  { %1783 = vperm.xlu1 %1999, %v2147_v51   ;;  %v1707_v22 = vmul.f32 %v2141_v29, %v1681_v48  ;;  %v2153_v52 = vpop.eup %2152  ;;  %v1738_v57 = vrot.slane %v2151_v15, 2 }
0x2743   :  { %v2155_v58 = vpop.eup %2154 }
0x2744   :  { %1649 = vperm.xlu2 %1997, %v2137_v36   ;;  %v1708_v50 = vadd.f32 %v2149_v19, %v1707_v22  ;;  %v2157_v59 = vpop.eup %2156  ;;  %v1850_v36 = vld [vmem:[#allocation4 + $0x230] sm:$0xff] }
0x2745   :  { %v2159_v61 = vpop.eup %2158  ;;  %v1808_v63 = vrot.slane %v2157_v59, 6  ;;  %1905 = vmatpush.msrb.mxu3 %v1850_v36 }
0x2746   :  { %v1736_v56 = vmul.f32 %v2153_v52, %v1708_v50 }
0x2747   :  { %1906 = vmatpush.msrb.mxu3 %v1849_v12 }
0x2748   :  { %v1740_v41 = vadd.f32 %v1738_v57, %v1736_v56 }
0x274a   :  { %1818 = vperm.xlu1 %1999, %v2157_v59   ;;  %v1771_v60 = vmul.f32 %v2155_v58, %v1740_v41 }
0x274c   :  { %1654 = vperm.xlu2 %1997, %v2139_v40   ;;  %v1775_v55 = vadd.f32 %v1773_v16, %v1771_v60 }
0x274e   :  { %v1806_v53 = vmul.f32 %v2159_v61, %v1775_v55 }
0x2750   :  { %v1810_v1 = vadd.f32 %v1808_v63, %v1806_v53  ;;  %v1885_v63 = vpop.f32.mrf.mxu2 }
0x2752   :  { %1831 = vperm.xlu0 %1998, %v1810_v1   ;;  %v1911_v1 = vld [vmem:[#allocation4 + $0x320] ss:$0 sm:$0xff] }
0x2754   :  { %1684 = vperm.xlu2 %1997, %v2145_v35  }
0x275c   :  { %1689 = vperm.xlu2 %1997, %v2143_v33  }
0x2764   :  { %1717 = vperm.xlu2 %1997, %v2149_v19  }
0x276c   :  { %1748 = vperm.xlu2 %1997, %v2151_v15  }
0x2774   :  { %1743 = vperm.xlu2 %1997, %v2153_v52  }
0x277c   :  { %1778 = vperm.xlu2 %1997, %v2155_v58  }
0x2784   :  { %1813 = vperm.xlu2 %1997, %v2159_v61  }
0x278e   :  { %v1615_v0 = vpop.permute.xlu2 %1614 }
0x278f   :  { %v1617_v45 = vmul.f32 %v1615_v0, %v2629_v13 }
0x2796   :  { %v1620_v2 = vpop.permute.xlu2 %1619 }
0x2797   :  { %v1622_v10 = vmul.f32 %v1620_v2, %v2629_v13 }
0x2799   :  { %v1624_v18 = vrot.slane %v1622_v10, 2 }
0x279b   :  { %v1626_v24 = vadd.f32 %v1624_v18, %v1617_v45 }
0x279e   :  { %v1650_v32 = vpop.permute.xlu2 %1649 }
0x279f   :  { %v1652_v40 = vmul.f32 %v1650_v32, %v1626_v24 }
0x27a6   :  { %v1655_v38 = vpop.permute.xlu2 %1654 }
0x27a7   :  { %v1657_v5 = vmul.f32 %v1655_v38, %v2629_v13 }
0x27a9   :  { %v1659_v25 = vrot.slane %v1657_v5, 4 }
0x27ab   :  { %v1661_v14 = vadd.f32 %v1659_v25, %v1652_v40 }
0x27ac   :  { %v1712_v27 = vpop.permute.xlu1 %1711 }
0x27ae   :  { %v1685_v3 = vpop.permute.xlu2 %1684 }
0x27af   :  { %v1687_v31 = vmul.f32 %v1685_v3, %v1661_v14 }
0x27b4   :  { %v1784_v43 = vpop.permute.xlu1 %1783 }
0x27b5   :  { %v1786_v42 = vmul.f32 %v1784_v43, %v2638_v26 }
0x27b6   :  { %v1690_v46 = vpop.permute.xlu2 %1689 }
0x27b7   :  { %v1692_v4 = vmul.f32 %v1690_v46, %v2629_v13  ;;  %v1788_v15 = vrot.slane %v1786_v42, 4 }
0x27b9   :  { %v1694_v29 = vrot.slane %v1692_v4, 6 }
0x27bb   :  { %v1696_v30 = vadd.f32 %v1694_v29, %v1687_v31 }
0x27bc   :  { %v1819_v19 = vpop.permute.xlu1 %1818 }
0x27bd   :  { %v1714_v33 = vmul.f32 %v1712_v27, %v1696_v30  ;;  %v1821_v6 = vmul.f32 %v1819_v19, %v2638_v26 }
0x27be   :  { %v1718_v17 = vpop.permute.xlu2 %1717 }
0x27bf   :  { %v1720_v49 = vmul.f32 %v1718_v17, %v2638_v26  ;;  %v1823_v41 = vrot.slane %v1821_v6, 6 }
0x27c1   :  { %v1721_v35 = vadd.f32 %v1720_v49, %v1714_v33 }
0x27c4   :  { %v1832_v62 = vpop.permute.xlu0 %1831 }
0x27c5   :  { %2160 = vrcp.f32 %v1832_v62  ;;  %v1845_v52 = vand.u32 2147483648, %v1832_v62  ;;  %vm1839_vm10 = vweird.f32 %v1832_v62  ;;  %v1843_v56 = vand.u32 2147483647, %v1832_v62 }
0x27c6   :  { %v1749_v28 = vpop.permute.xlu2 %1748 }
0x27c7   :  { %v1751_v34 = vmul.f32 %v1749_v28, %v2638_v26  ;;  %v1846_v16 = vor.u32 1.1754944e-38, %v1845_v52  ;;  %vm1844_vm8 = vcmp.eq.f32.partialorder %v1843_v56, 8.507059e+37 }
0x27c9   :  { %v1753_v37 = vrot.slane %v1751_v34, 2 }
0x27cb   :  { %v2161_v44 = vpop.eup %2160 }
0x27cc   :  { %v1835_v13 = vmul.f32 %v2161_v44, %v1832_v62  ;;  %vm1840_vm7 = vweird.f32 %v2161_v44 }
0x27cd   :  { %vm1841_vm11 = vmor %vm1839_vm10, %vm1840_vm7 }
0x27ce   :  { %v1744_v47 = vpop.permute.xlu2 %1743  ;;  %v1836_v54 = vsub.f32 1.0, %v1835_v13 }
0x27cf   :  { %v1746_v20 = vmul.f32 %v1744_v47, %v1721_v35 }
0x27d0   :  { %v1837_v48 = vmul.f32 %v2161_v44, %v1836_v54 }
0x27d1   :  { %v1755_v51 = vadd.f32 %v1753_v37, %v1746_v20 }
0x27d2   :  { %v1838_v50 = vadd.f32 %v2161_v44, %v1837_v48 }
0x27d4   :  { %v1842_v60 = vsel %vm1841_vm11, %v2161_v44, %v1838_v50 }
0x27d5   :  { %v1847_v61 = vsel %vm1844_vm8, %v1846_v16, %v1842_v60 }
0x27d6   :  { %v1779_v39 = vpop.permute.xlu2 %1778 }
0x27d7   :  { %v1781_v22 = vmul.f32 %v1779_v39, %v1755_v51 }
0x27d9   :  { %v1790_v57 = vadd.f32 %v1788_v15, %v1781_v22 }
0x27de   :  { %v1814_v58 = vpop.permute.xlu2 %1813 }
0x27df   :  { %v1816_v59 = vmul.f32 %v1814_v58, %v1790_v57 }
0x27e1   :  { %v1825_v55 = vadd.f32 %v1823_v41, %v1816_v59 }
0x27e3   :  { %v1848_v53 = vmul.f32 %v1847_v61, %v1825_v55 }
0x27e5   :  { %1984 = vmatmul.msk.f32.vlgmr.msrb.gmra.mxu3 %vm844_vm12, %v1848_v53 }
0x2868   :  { %v1908_v26 = vpop.f32.mrf.mxu3 }
0x2869   :  { %v1909_v0 = vadd.f32 %v1908_v26, %v1885_v63 }
0x286b   :  { %v1912_v2 = vadd.f32 %v1911_v1, %v1909_v0 }
0x286d   :  { %1913 = vst [vmem:[#allocation7] sm:$0x3] %v1912_v2 }
0x286e   :  { %1924 = dma.vmem_to_hbm [thread:$0]  %s1920_s21, 32, %s1922_s24, [#allocation6]  }
0x286f   :  { %2212 = dma.done.wait [#allocation6], 32  }
0x2870   :  { %2213 = vsyncadd [#allocation6], 4294967264 }
0x2871   :  { %1929 = vsyncpa [#allocation5], 1 }
0x2872   :  { %1930 = vsyncpa [#allocation6], 1 }

</bundles_post_ra>
